<compile_context>
chip_gen: v6e
topology: v6e:2x2x1
jax: 0.10.0
libtpu: 0.0.40
codegen_flags: <defaults>
</compile_context>

<pallas_src>
import math
import jax
import jax.numpy as jnp
from jax.experimental import pallas as pl
from jax.experimental.pallas import tpu as pltpu


def _round_up(a, b):
    return ((a + b - 1) // b) * b


# ----------------------------- Pallas kernel ------------------------------- #

def _make_head_kernel(num_head_blocks, head_channels, use_skip, use_homogeneous,
                      h_beta, max_inv_scale, min_inv_scale):
    hc = head_channels

    def kernel(x_ref, w_in_ref, b_in_ref, w_main_ref, b_main_ref,
               w_out_ref, b_out_ref, mean_ref, out_ref):

        def mm(w_bf16, h_f32):
            # bf16 operands on the MXU, f32 accumulation.
            return jnp.dot(w_bf16, h_f32.astype(jnp.bfloat16),
                           preferred_element_type=jnp.float32)

        x = x_ref[...].astype(jnp.float32)                      # (Cin, TP)

        # Fused first matmul: [W_skip ; W_res3_conv1] @ x (wider Cout fills the MXU).
        y0 = mm(w_in_ref[...], x) + b_in_ref[...]
        if use_skip:
            skip = y0[:hc, :]                                   # head_skip (no relu)
            h = jnp.maximum(y0[hc:, :], 0.0)                    # res3_conv1 + relu
        else:
            skip = x                                            # identity skip
            h = jnp.maximum(y0, 0.0)                            # res3_conv1 + relu

        li = [0]

        def main_conv(hin):
            w = w_main_ref[li[0]]                               # (hc, hc) bf16
            b = b_main_ref[li[0]]                               # (hc, 1)  f32
            li[0] += 1
            return jnp.maximum(mm(w, hin) + b, 0.0)

        h = main_conv(h)                                        # res3_conv2
        h = main_conv(h)                                        # res3_conv3
        res = skip + h

        for _ in range(num_head_blocks):                        # residual blocks
            h = main_conv(res)
            h = main_conv(h)
            h = main_conv(h)
            res = res + h

        sc = main_conv(res)                                     # fc1
        sc = main_conv(sc)                                      # fc2
        sc = mm(w_out_ref[...], sc) + b_out_ref[...]            # fc3 -> (8, TP), padded

        if use_homogeneous:
            h_raw = sc[3:4, :]
            hb = h_beta * h_raw
            # PyTorch softplus(beta, threshold=20); clamp before exp for robustness.
            sp = jnp.where(hb > 20.0, h_raw,
                           jnp.log1p(jnp.exp(jnp.minimum(hb, 20.0))) / h_beta)
            h_slice = jnp.minimum(sp + max_inv_scale, min_inv_scale)
            xyz = sc[:3, :] / h_slice
        else:
            xyz = sc[:3, :]

        out_ref[...] = (xyz + mean_ref[...]).astype(out_ref.dtype)

    return kernel


# ----------------------------- param packing ------------------------------- #

def _pack_params(layers, head_channels, use_skip):
    """layers: list of (w:(Cout,Cin) f32, b:(Cout,) f32) in module order."""
    idx = 0
    if use_skip:
        w_skip, b_skip = layers[0]
        idx = 1
    w_c1, b_c1 = layers[idx]
    idx += 1
    if use_skip:
        w_in = jnp.concatenate([w_skip, w_c1], axis=0)
        b_in = jnp.concatenate([b_skip, b_c1], axis=0)
    else:
        w_in, b_in = w_c1, b_c1

    main = layers[idx:-1]                                       # all (hc,hc) convs
    w_main = jnp.stack([w for w, _ in main])                    # (n_main, hc, hc)
    b_main = jnp.stack([b for _, b in main])[..., None]         # (n_main, hc, 1)

    w3, b3 = layers[-1]                                         # fc3
    out_ch = w3.shape[0]
    w_out = jnp.zeros((8, head_channels), jnp.float32).at[:out_ch].set(w3)
    b_out = jnp.zeros((8,), jnp.float32).at[:out_ch].set(b3)

    return (w_in.astype(jnp.bfloat16), b_in[:, None].astype(jnp.float32),
            w_main.astype(jnp.bfloat16), b_main.astype(jnp.float32),
            w_out.astype(jnp.bfloat16), b_out[:, None].astype(jnp.float32))


# ----------------------------- wrapper (glue) ------------------------------ #

def head_forward_pallas(x_nchw, layers, mean3, cfg):
    N, Cin, H, W = x_nchw.shape
    hc = cfg["head_channels"]
    HW = H * W

    # Large, lane-aligned pixel tile; pad HW if not divisible.
    TP = min(1024, _round_up(HW, 128))
    HWp = _round_up(HW, TP)
    n_tiles = HWp // TP

    x3 = x_nchw.reshape(N, Cin, HW).astype(jnp.float32)   # free reshape (NCHW-contiguous)
    if HWp != HW:
        x3 = jnp.pad(x3, ((0, 0), (0, 0), (0, HWp - HW)))

    w_in, b_in, w_main, b_main, w_out, b_out = _pack_params(layers, hc, cfg["use_skip"])
    mean_col = mean3.reshape(3, 1).astype(jnp.float32)

    kernel = _make_head_kernel(
        num_head_blocks=cfg["num_head_blocks"], head_channels=hc,
        use_skip=cfg["use_skip"], use_homogeneous=cfg["use_homogeneous"],
        h_beta=cfg["h_beta"], max_inv_scale=cfg["max_inv_scale"],
        min_inv_scale=cfg["min_inv_scale"])

    const2 = lambda b, i: (0, 0)
    const3 = lambda b, i: (0, 0, 0)
    in_specs = [
        pl.BlockSpec((None, Cin, TP), lambda b, i: (b, 0, i)),   # input pixel tile
        pl.BlockSpec(w_in.shape, const2),                        # resident weights
        pl.BlockSpec(b_in.shape, const2),
        pl.BlockSpec(w_main.shape, const3),
        pl.BlockSpec(b_main.shape, const3),
        pl.BlockSpec(w_out.shape, const2),
        pl.BlockSpec(b_out.shape, const2),
        pl.BlockSpec(mean_col.shape, const2),
    ]

    out = pl.pallas_call(
        kernel,
        out_shape=jax.ShapeDtypeStruct((N, 3, HWp), jnp.float32),
        grid=(N, n_tiles),
        in_specs=in_specs,
        out_specs=pl.BlockSpec((None, 3, TP), lambda b, i: (b, 0, i)),
        compiler_params=pltpu.CompilerParams(
            dimension_semantics=("parallel", "parallel")),
    )(x3, w_in, b_in, w_main, b_main, w_out, b_out, mean_col)

    if HWp != HW:
        out = out[:, :, :HW]
    return out.reshape(N, 3, H, W)


# --------------------------- pure-JAX reference ----------------------------- #

def head_forward_ref(x, layers, mean3, cfg):
    def conv1x1(h, w, b):   # h: (N,C,H,W), w: (Cout,Cin), b: (Cout,)
        return jnp.einsum('oc,nchw->nohw', w, h) + b.reshape(1, -1, 1, 1)

    idx = 0
    if cfg["use_skip"]:
        w_s, b_s = layers[0]
        idx = 1

    def conv(i, h, relu):
        w, b = layers[i]
        y = conv1x1(h, w, b)
        return jnp.maximum(y, 0.0) if relu else y

    h = conv(idx, x, True)
    h = conv(idx + 1, h, True)
    h = conv(idx + 2, h, True)
    skip = conv1x1(x, w_s, b_s) if cfg["use_skip"] else x
    res = skip + h
    j = idx + 3
    for _ in range(cfg["num_head_blocks"]):
        h = conv(j, res, True)
        h = conv(j + 1, h, True)
        h = conv(j + 2, h, True)
        res = res + h
        j += 3
    sc = conv(j, res, True)
    sc = conv(j + 1, sc, True)
    sc = conv(j + 2, sc, False)
    if cfg["use_homogeneous"]:
        beta = cfg["h_beta"]
        hr = sc[:, 3:4]
        sp = jnp.where(beta * hr > 20.0, hr,
                       jnp.log1p(jnp.exp(jnp.minimum(beta * hr, 20.0))) / beta)
        h_slice = jnp.minimum(sp + cfg["max_inv_scale"], cfg["min_inv_scale"])
        sc = sc[:, :3] / h_slice
    return sc + mean3.reshape(1, 3, 1, 1)


# --------------------------------- main ------------------------------------ #

if __name__ == "__main__":
    # Small-shape config consistent with the module (scaled-down channels).
    in_channels = 64
    head_channels = 128
    num_head_blocks = 1
    use_homogeneous = True
    homogeneous_min_scale = 0.01
    homogeneous_max_scale = 4.0

    max_inv_scale = 1.0 / homogeneous_max_scale
    min_inv_scale = 1.0 / homogeneous_min_scale
    h_beta = math.log(2.0) / (1.0 - max_inv_scale)
    use_skip = (in_channels != head_channels)

    cfg = dict(num_head_blocks=num_head_blocks, head_channels=head_channels,
               use_skip=use_skip, use_homogeneous=use_homogeneous, h_beta=h_beta,
               max_inv_scale=max_inv_scale, min_inv_scale=min_inv_scale)

    key = jax.random.PRNGKey(0)

    # Conv2d(cin, cout, 1) -> weight (cout, cin), bias (cout,); He-like scaling.
    def make_conv(k, cin, cout):
        kw, kb = jax.random.split(k)
        w = jax.random.normal(kw, (cout, cin), jnp.float32) * (0.8 * math.sqrt(2.0 / cin))
        b = jax.random.normal(kb, (cout,), jnp.float32) * 0.05
        return w, b

    conv_shapes = []
    if use_skip:
        conv_shapes.append((in_channels, head_channels))             # head_skip
    conv_shapes.append((in_channels, head_channels))                 # res3_conv1
    conv_shapes.append((head_channels, head_channels))               # res3_conv2
    conv_shapes.append((head_channels, head_channels))               # res3_conv3
    for _ in range(num_head_blocks):                                 # res blocks
        conv_shapes += [(head_channels, head_channels)] * 3
    conv_shapes.append((head_channels, head_channels))               # fc1
    conv_shapes.append((head_channels, head_channels))               # fc2
    conv_shapes.append((head_channels, 4 if use_homogeneous else 3))  # fc3

    keys = jax.random.split(key, len(conv_shapes) + 1)
    layers = []
    for k, (cin, cout) in zip(keys[:-1], conv_shapes):
        layers.append(make_conv(k, cin, cout))

    mean3 = jnp.array([1.0, -2.0, 0.5], jnp.float32)                 # the `mean` buffer

    # Input: NCHW, batch=2, channels=in_channels, spatial=16x16.
    x = jax.random.normal(keys[-1], (2, in_channels, 16, 16), jnp.float32)

    out = head_forward_pallas(x, layers, mean3, cfg)
    out = jax.block_until_ready(out)

    ref = head_forward_ref(x, layers, mean3, cfg)
    assert out.shape == (2, 3, 16, 16)
    # bf16 MXU matmuls across a ~12-layer chain -> looser tolerance vs f32 reference.
    assert jnp.allclose(out, ref, rtol=5e-2, atol=5e-2), "mismatch vs reference"

    print("KERNEL_OK")
</pallas_src>

<mosaic_0001>
module attributes {stable_mosaic.version = 11 : i64} {
  func.func @kernel(%arg0: i32, %arg1: i32, %arg2: memref<1x64x256xf32, #tpu.memory_space<vmem>>, %arg3: memref<256x64xbf16, #tpu.memory_space<vmem>>, %arg4: memref<256x1xf32, #tpu.memory_space<vmem>>, %arg5: memref<7x128x128xbf16, #tpu.memory_space<vmem>>, %arg6: memref<7x128x1xf32, #tpu.memory_space<vmem>>, %arg7: memref<8x128xbf16, #tpu.memory_space<vmem>>, %arg8: memref<8x1xf32, #tpu.memory_space<vmem>>, %arg9: memref<3x1xf32, #tpu.memory_space<vmem>>, %arg10: memref<1x3x256xf32, #tpu.memory_space<vmem>>) attributes {dimension_semantics = [#tpu.dimension_semantics<parallel>, #tpu.dimension_semantics<parallel>], iteration_bounds = array<i64: 2, 1>, scalar_prefetch = 0 : i64, scratch_operands = 0 : i64, tpu.core_type = #tpu.core_type<tc>, window_params = [{transform_indices = @transform_0, window_bounds = array<i64: 1, 64, 256>}, {pipeline_mode = #tpu.pipeline_mode<synchronous>, transform_indices = @transform_1, window_bounds = array<i64: 256, 64>}, {pipeline_mode = #tpu.pipeline_mode<synchronous>, transform_indices = @transform_2, window_bounds = array<i64: 256, 1>}, {pipeline_mode = #tpu.pipeline_mode<synchronous>, transform_indices = @transform_3, window_bounds = array<i64: 7, 128, 128>}, {pipeline_mode = #tpu.pipeline_mode<synchronous>, transform_indices = @transform_4, window_bounds = array<i64: 7, 128, 1>}, {pipeline_mode = #tpu.pipeline_mode<synchronous>, transform_indices = @transform_5, window_bounds = array<i64: 8, 128>}, {pipeline_mode = #tpu.pipeline_mode<synchronous>, transform_indices = @transform_6, window_bounds = array<i64: 8, 1>}, {pipeline_mode = #tpu.pipeline_mode<synchronous>, transform_indices = @transform_7, window_bounds = array<i64: 3, 1>}, {transform_indices = @transform_8, window_bounds = array<i64: 1, 3, 256>}]} {
    %c0 = arith.constant 0 : index
    %c0_0 = arith.constant 0 : index
    %c0_1 = arith.constant 0 : index
    %0 = vector.load %arg2[%c0, %c0_0, %c0_1] : memref<1x64x256xf32, #tpu.memory_space<vmem>>, vector<1x64x256xf32>
    %1 = vector.shape_cast %0 : vector<1x64x256xf32> to vector<64x256xf32>
    %c0_2 = arith.constant 0 : index
    %c0_3 = arith.constant 0 : index
    %2 = vector.load %arg3[%c0_2, %c0_3] : memref<256x64xbf16, #tpu.memory_space<vmem>>, vector<256x64xbf16>
    %3 = arith.truncf %1 : vector<64x256xf32> to vector<64x256xbf16>
    %cst = arith.constant dense<0.000000e+00> : vector<256x256xf32>
    %4 = tpu.matmul %2, %3, %cst {dimension_numbers = #tpu.dot_dimension_numbers<[1], [0], [0], [1], [0, 0, 1, 1], [], []>} : vector<256x64xbf16>, vector<64x256xbf16>, vector<256x256xf32> -> vector<256x256xf32>
    %c0_4 = arith.constant 0 : index
    %c0_5 = arith.constant 0 : index
    %5 = vector.load %arg4[%c0_4, %c0_5] : memref<256x1xf32, #tpu.memory_space<vmem>>, vector<256x1xf32>
    %6 = vector.broadcast %5 : vector<256x1xf32> to vector<256x256xf32>
    %7 = arith.addf %4, %6 : vector<256x256xf32>
    %8 = vector.extract_strided_slice %7 {offsets = [0, 0], sizes = [128, 256], strides = [1, 1]} : vector<256x256xf32> to vector<128x256xf32>
    %9 = vector.extract_strided_slice %7 {offsets = [128, 0], sizes = [128, 256], strides = [1, 1]} : vector<256x256xf32> to vector<128x256xf32>
    %cst_6 = arith.constant 0.000000e+00 : f32
    %10 = vector.broadcast %cst_6 : f32 to vector<128x256xf32>
    %11 = arith.maximumf %9, %10 : vector<128x256xf32>
    %c0_7 = arith.constant 0 : index
    %c0_8 = arith.constant 0 : index
    %c0_9 = arith.constant 0 : index
    %12 = vector.load %arg5[%c0_7, %c0_8, %c0_9] : memref<7x128x128xbf16, #tpu.memory_space<vmem>>, vector<1x128x128xbf16>
    %13 = vector.shape_cast %12 : vector<1x128x128xbf16> to vector<128x128xbf16>
    %c0_10 = arith.constant 0 : index
    %c0_11 = arith.constant 0 : index
    %c0_12 = arith.constant 0 : index
    %14 = vector.load %arg6[%c0_10, %c0_11, %c0_12] : memref<7x128x1xf32, #tpu.memory_space<vmem>>, vector<1x128x1xf32>
    %15 = vector.shape_cast %14 : vector<1x128x1xf32> to vector<128x1xf32>
    %16 = arith.truncf %11 : vector<128x256xf32> to vector<128x256xbf16>
    %cst_13 = arith.constant dense<0.000000e+00> : vector<128x256xf32>
    %17 = tpu.matmul %13, %16, %cst_13 {dimension_numbers = #tpu.dot_dimension_numbers<[1], [0], [0], [1], [0, 0, 1, 1], [], []>} : vector<128x128xbf16>, vector<128x256xbf16>, vector<128x256xf32> -> vector<128x256xf32>
    %18 = vector.broadcast %15 : vector<128x1xf32> to vector<128x256xf32>
    %19 = arith.addf %17, %18 : vector<128x256xf32>
    %cst_14 = arith.constant 0.000000e+00 : f32
    %20 = vector.broadcast %cst_14 : f32 to vector<128x256xf32>
    %21 = arith.maximumf %19, %20 : vector<128x256xf32>
    %c1 = arith.constant 1 : index
    %c0_15 = arith.constant 0 : index
    %c0_16 = arith.constant 0 : index
    %22 = vector.load %arg5[%c1, %c0_15, %c0_16] : memref<7x128x128xbf16, #tpu.memory_space<vmem>>, vector<1x128x128xbf16>
    %23 = vector.shape_cast %22 : vector<1x128x128xbf16> to vector<128x128xbf16>
    %c1_17 = arith.constant 1 : index
    %c0_18 = arith.constant 0 : index
    %c0_19 = arith.constant 0 : index
    %24 = vector.load %arg6[%c1_17, %c0_18, %c0_19] : memref<7x128x1xf32, #tpu.memory_space<vmem>>, vector<1x128x1xf32>
    %25 = vector.shape_cast %24 : vector<1x128x1xf32> to vector<128x1xf32>
    %26 = arith.truncf %21 : vector<128x256xf32> to vector<128x256xbf16>
    %cst_20 = arith.constant dense<0.000000e+00> : vector<128x256xf32>
    %27 = tpu.matmul %23, %26, %cst_20 {dimension_numbers = #tpu.dot_dimension_numbers<[1], [0], [0], [1], [0, 0, 1, 1], [], []>} : vector<128x128xbf16>, vector<128x256xbf16>, vector<128x256xf32> -> vector<128x256xf32>
    %28 = vector.broadcast %25 : vector<128x1xf32> to vector<128x256xf32>
    %29 = arith.addf %27, %28 : vector<128x256xf32>
    %cst_21 = arith.constant 0.000000e+00 : f32
    %30 = vector.broadcast %cst_21 : f32 to vector<128x256xf32>
    %31 = arith.maximumf %29, %30 : vector<128x256xf32>
    %32 = arith.addf %8, %31 : vector<128x256xf32>
    %c2 = arith.constant 2 : index
    %c0_22 = arith.constant 0 : index
    %c0_23 = arith.constant 0 : index
    %33 = vector.load %arg5[%c2, %c0_22, %c0_23] : memref<7x128x128xbf16, #tpu.memory_space<vmem>>, vector<1x128x128xbf16>
    %34 = vector.shape_cast %33 : vector<1x128x128xbf16> to vector<128x128xbf16>
    %c2_24 = arith.constant 2 : index
    %c0_25 = arith.constant 0 : index
    %c0_26 = arith.constant 0 : index
    %35 = vector.load %arg6[%c2_24, %c0_25, %c0_26] : memref<7x128x1xf32, #tpu.memory_space<vmem>>, vector<1x128x1xf32>
    %36 = vector.shape_cast %35 : vector<1x128x1xf32> to vector<128x1xf32>
    %37 = arith.truncf %32 : vector<128x256xf32> to vector<128x256xbf16>
    %cst_27 = arith.constant dense<0.000000e+00> : vector<128x256xf32>
    %38 = tpu.matmul %34, %37, %cst_27 {dimension_numbers = #tpu.dot_dimension_numbers<[1], [0], [0], [1], [0, 0, 1, 1], [], []>} : vector<128x128xbf16>, vector<128x256xbf16>, vector<128x256xf32> -> vector<128x256xf32>
    %39 = vector.broadcast %36 : vector<128x1xf32> to vector<128x256xf32>
    %40 = arith.addf %38, %39 : vector<128x256xf32>
    %cst_28 = arith.constant 0.000000e+00 : f32
    %41 = vector.broadcast %cst_28 : f32 to vector<128x256xf32>
    %42 = arith.maximumf %40, %41 : vector<128x256xf32>
    %c3 = arith.constant 3 : index
    %c0_29 = arith.constant 0 : index
    %c0_30 = arith.constant 0 : index
    %43 = vector.load %arg5[%c3, %c0_29, %c0_30] : memref<7x128x128xbf16, #tpu.memory_space<vmem>>, vector<1x128x128xbf16>
    %44 = vector.shape_cast %43 : vector<1x128x128xbf16> to vector<128x128xbf16>
    %c3_31 = arith.constant 3 : index
    %c0_32 = arith.constant 0 : index
    %c0_33 = arith.constant 0 : index
    %45 = vector.load %arg6[%c3_31, %c0_32, %c0_33] : memref<7x128x1xf32, #tpu.memory_space<vmem>>, vector<1x128x1xf32>
    %46 = vector.shape_cast %45 : vector<1x128x1xf32> to vector<128x1xf32>
    %47 = arith.truncf %42 : vector<128x256xf32> to vector<128x256xbf16>
    %cst_34 = arith.constant dense<0.000000e+00> : vector<128x256xf32>
    %48 = tpu.matmul %44, %47, %cst_34 {dimension_numbers = #tpu.dot_dimension_numbers<[1], [0], [0], [1], [0, 0, 1, 1], [], []>} : vector<128x128xbf16>, vector<128x256xbf16>, vector<128x256xf32> -> vector<128x256xf32>
    %49 = vector.broadcast %46 : vector<128x1xf32> to vector<128x256xf32>
    %50 = arith.addf %48, %49 : vector<128x256xf32>
    %cst_35 = arith.constant 0.000000e+00 : f32
    %51 = vector.broadcast %cst_35 : f32 to vector<128x256xf32>
    %52 = arith.maximumf %50, %51 : vector<128x256xf32>
    %c4 = arith.constant 4 : index
    %c0_36 = arith.constant 0 : index
    %c0_37 = arith.constant 0 : index
    %53 = vector.load %arg5[%c4, %c0_36, %c0_37] : memref<7x128x128xbf16, #tpu.memory_space<vmem>>, vector<1x128x128xbf16>
    %54 = vector.shape_cast %53 : vector<1x128x128xbf16> to vector<128x128xbf16>
    %c4_38 = arith.constant 4 : index
    %c0_39 = arith.constant 0 : index
    %c0_40 = arith.constant 0 : index
    %55 = vector.load %arg6[%c4_38, %c0_39, %c0_40] : memref<7x128x1xf32, #tpu.memory_space<vmem>>, vector<1x128x1xf32>
    %56 = vector.shape_cast %55 : vector<1x128x1xf32> to vector<128x1xf32>
    %57 = arith.truncf %52 : vector<128x256xf32> to vector<128x256xbf16>
    %cst_41 = arith.constant dense<0.000000e+00> : vector<128x256xf32>
    %58 = tpu.matmul %54, %57, %cst_41 {dimension_numbers = #tpu.dot_dimension_numbers<[1], [0], [0], [1], [0, 0, 1, 1], [], []>} : vector<128x128xbf16>, vector<128x256xbf16>, vector<128x256xf32> -> vector<128x256xf32>
    %59 = vector.broadcast %56 : vector<128x1xf32> to vector<128x256xf32>
    %60 = arith.addf %58, %59 : vector<128x256xf32>
    %cst_42 = arith.constant 0.000000e+00 : f32
    %61 = vector.broadcast %cst_42 : f32 to vector<128x256xf32>
    %62 = arith.maximumf %60, %61 : vector<128x256xf32>
    %63 = arith.addf %32, %62 : vector<128x256xf32>
    %c5 = arith.constant 5 : index
    %c0_43 = arith.constant 0 : index
    %c0_44 = arith.constant 0 : index
    %64 = vector.load %arg5[%c5, %c0_43, %c0_44] : memref<7x128x128xbf16, #tpu.memory_space<vmem>>, vector<1x128x128xbf16>
    %65 = vector.shape_cast %64 : vector<1x128x128xbf16> to vector<128x128xbf16>
    %c5_45 = arith.constant 5 : index
    %c0_46 = arith.constant 0 : index
    %c0_47 = arith.constant 0 : index
    %66 = vector.load %arg6[%c5_45, %c0_46, %c0_47] : memref<7x128x1xf32, #tpu.memory_space<vmem>>, vector<1x128x1xf32>
    %67 = vector.shape_cast %66 : vector<1x128x1xf32> to vector<128x1xf32>
    %68 = arith.truncf %63 : vector<128x256xf32> to vector<128x256xbf16>
    %cst_48 = arith.constant dense<0.000000e+00> : vector<128x256xf32>
    %69 = tpu.matmul %65, %68, %cst_48 {dimension_numbers = #tpu.dot_dimension_numbers<[1], [0], [0], [1], [0, 0, 1, 1], [], []>} : vector<128x128xbf16>, vector<128x256xbf16>, vector<128x256xf32> -> vector<128x256xf32>
    %70 = vector.broadcast %67 : vector<128x1xf32> to vector<128x256xf32>
    %71 = arith.addf %69, %70 : vector<128x256xf32>
    %cst_49 = arith.constant 0.000000e+00 : f32
    %72 = vector.broadcast %cst_49 : f32 to vector<128x256xf32>
    %73 = arith.maximumf %71, %72 : vector<128x256xf32>
    %c6 = arith.constant 6 : index
    %c0_50 = arith.constant 0 : index
    %c0_51 = arith.constant 0 : index
    %74 = vector.load %arg5[%c6, %c0_50, %c0_51] : memref<7x128x128xbf16, #tpu.memory_space<vmem>>, vector<1x128x128xbf16>
    %75 = vector.shape_cast %74 : vector<1x128x128xbf16> to vector<128x128xbf16>
    %c6_52 = arith.constant 6 : index
    %c0_53 = arith.constant 0 : index
    %c0_54 = arith.constant 0 : index
    %76 = vector.load %arg6[%c6_52, %c0_53, %c0_54] : memref<7x128x1xf32, #tpu.memory_space<vmem>>, vector<1x128x1xf32>
    %77 = vector.shape_cast %76 : vector<1x128x1xf32> to vector<128x1xf32>
    %78 = arith.truncf %73 : vector<128x256xf32> to vector<128x256xbf16>
    %cst_55 = arith.constant dense<0.000000e+00> : vector<128x256xf32>
    %79 = tpu.matmul %75, %78, %cst_55 {dimension_numbers = #tpu.dot_dimension_numbers<[1], [0], [0], [1], [0, 0, 1, 1], [], []>} : vector<128x128xbf16>, vector<128x256xbf16>, vector<128x256xf32> -> vector<128x256xf32>
    %80 = vector.broadcast %77 : vector<128x1xf32> to vector<128x256xf32>
    %81 = arith.addf %79, %80 : vector<128x256xf32>
    %cst_56 = arith.constant 0.000000e+00 : f32
    %82 = vector.broadcast %cst_56 : f32 to vector<128x256xf32>
    %83 = arith.maximumf %81, %82 : vector<128x256xf32>
    %c0_57 = arith.constant 0 : index
    %c0_58 = arith.constant 0 : index
    %84 = vector.load %arg7[%c0_57, %c0_58] : memref<8x128xbf16, #tpu.memory_space<vmem>>, vector<8x128xbf16>
    %85 = arith.truncf %83 : vector<128x256xf32> to vector<128x256xbf16>
    %cst_59 = arith.constant dense<0.000000e+00> : vector<8x256xf32>
    %86 = tpu.matmul %84, %85, %cst_59 {dimension_numbers = #tpu.dot_dimension_numbers<[1], [0], [0], [1], [0, 0, 1, 1], [], []>} : vector<8x128xbf16>, vector<128x256xbf16>, vector<8x256xf32> -> vector<8x256xf32>
    %c0_60 = arith.constant 0 : index
    %c0_61 = arith.constant 0 : index
    %87 = vector.load %arg8[%c0_60, %c0_61] : memref<8x1xf32, #tpu.memory_space<vmem>>, vector<8x1xf32>
    %88 = vector.broadcast %87 : vector<8x1xf32> to vector<8x256xf32>
    %89 = arith.addf %86, %88 : vector<8x256xf32>
    %90 = vector.extract_strided_slice %89 {offsets = [3, 0], sizes = [1, 256], strides = [1, 1]} : vector<8x256xf32> to vector<1x256xf32>
    %cst_62 = arith.constant 0.924196243 : f32
    %91 = vector.broadcast %cst_62 : f32 to vector<1x256xf32>
    %92 = arith.mulf %91, %90 : vector<1x256xf32>
    %cst_63 = arith.constant 2.000000e+01 : f32
    %93 = vector.broadcast %cst_63 : f32 to vector<1x256xf32>
    %94 = arith.cmpf ogt, %92, %93 : vector<1x256xf32>
    %cst_64 = arith.constant 2.000000e+01 : f32
    %95 = vector.broadcast %cst_64 : f32 to vector<1x256xf32>
    %96 = arith.minimumf %92, %95 : vector<1x256xf32>
    %97 = math.exp %96 : vector<1x256xf32>
    %98 = math.log1p %97 : vector<1x256xf32>
    %cst_65 = arith.constant 0.924196243 : f32
    %99 = vector.broadcast %cst_65 : f32 to vector<1x256xf32>
    %100 = arith.divf %98, %99 : vector<1x256xf32>
    %101 = arith.select %94, %90, %100 : vector<1x256xi1>, vector<1x256xf32>
    %cst_66 = arith.constant 2.500000e-01 : f32
    %102 = vector.broadcast %cst_66 : f32 to vector<1x256xf32>
    %103 = arith.addf %101, %102 : vector<1x256xf32>
    %cst_67 = arith.constant 1.000000e+02 : f32
    %104 = vector.broadcast %cst_67 : f32 to vector<1x256xf32>
    %105 = arith.minimumf %103, %104 : vector<1x256xf32>
    %106 = vector.extract_strided_slice %89 {offsets = [0, 0], sizes = [3, 256], strides = [1, 1]} : vector<8x256xf32> to vector<3x256xf32>
    %107 = vector.broadcast %105 : vector<1x256xf32> to vector<3x256xf32>
    %108 = arith.divf %106, %107 : vector<3x256xf32>
    %c0_68 = arith.constant 0 : index
    %c0_69 = arith.constant 0 : index
    %109 = vector.load %arg9[%c0_68, %c0_69] : memref<3x1xf32, #tpu.memory_space<vmem>>, vector<3x1xf32>
    %110 = vector.broadcast %109 : vector<3x1xf32> to vector<3x256xf32>
    %111 = arith.addf %108, %110 : vector<3x256xf32>
    %c0_70 = arith.constant 0 : index
    %c0_71 = arith.constant 0 : index
    %c0_72 = arith.constant 0 : index
    %112 = vector.load %arg10[%c0_70, %c0_71, %c0_72] : memref<1x3x256xf32, #tpu.memory_space<vmem>>, vector<1x3x256xf32>
    %113 = vector.shape_cast %112 : vector<1x3x256xf32> to vector<3x256xf32>
    %114 = vector.shape_cast %111 : vector<3x256xf32> to vector<1x3x256xf32>
    tpu.vector_store %arg10[%c0_70, %c0_71, %c0_72], %114 {strides = array<i32>} : memref<1x3x256xf32, #tpu.memory_space<vmem>>, vector<1x3x256xf32>,
    return
  }
  func.func @transform_0(%arg0: i32, %arg1: i32) -> (i32, i32, i32) {
    %c0_i32 = arith.constant 0 : i32
    %c0_i32_0 = arith.constant 0 : i32
    return %arg0, %c0_i32, %arg1 : i32, i32, i32
  }
  func.func @transform_1(%arg0: i32, %arg1: i32) -> (i32, i32) {
    %c0_i32 = arith.constant 0 : i32
    %c0_i32_0 = arith.constant 0 : i32
    %c0_i32_1 = arith.constant 0 : i32
    return %c0_i32, %c0_i32_0 : i32, i32
  }
  func.func @transform_2(%arg0: i32, %arg1: i32) -> (i32, i32) {
    %c0_i32 = arith.constant 0 : i32
    %c0_i32_0 = arith.constant 0 : i32
    %c0_i32_1 = arith.constant 0 : i32
    return %c0_i32, %c0_i32_0 : i32, i32
  }
  func.func @transform_3(%arg0: i32, %arg1: i32) -> (i32, i32, i32) {
    %c0_i32 = arith.constant 0 : i32
    %c0_i32_0 = arith.constant 0 : i32
    %c0_i32_1 = arith.constant 0 : i32
    %c0_i32_2 = arith.constant 0 : i32
    return %c0_i32, %c0_i32_0, %c0_i32_1 : i32, i32, i32
  }
  func.func @transform_4(%arg0: i32, %arg1: i32) -> (i32, i32, i32) {
    %c0_i32 = arith.constant 0 : i32
    %c0_i32_0 = arith.constant 0 : i32
    %c0_i32_1 = arith.constant 0 : i32
    %c0_i32_2 = arith.constant 0 : i32
    return %c0_i32, %c0_i32_0, %c0_i32_1 : i32, i32, i32
  }
  func.func @transform_5(%arg0: i32, %arg1: i32) -> (i32, i32) {
    %c0_i32 = arith.constant 0 : i32
    %c0_i32_0 = arith.constant 0 : i32
    %c0_i32_1 = arith.constant 0 : i32
    return %c0_i32, %c0_i32_0 : i32, i32
  }
  func.func @transform_6(%arg0: i32, %arg1: i32) -> (i32, i32) {
    %c0_i32 = arith.constant 0 : i32
    %c0_i32_0 = arith.constant 0 : i32
    %c0_i32_1 = arith.constant 0 : i32
    return %c0_i32, %c0_i32_0 : i32, i32
  }
  func.func @transform_7(%arg0: i32, %arg1: i32) -> (i32, i32) {
    %c0_i32 = arith.constant 0 : i32
    %c0_i32_0 = arith.constant 0 : i32
    %c0_i32_1 = arith.constant 0 : i32
    return %c0_i32, %c0_i32_0 : i32, i32
  }
  func.func @transform_8(%arg0: i32, %arg1: i32) -> (i32, i32, i32) {
    %c0_i32 = arith.constant 0 : i32
    %c0_i32_0 = arith.constant 0 : i32
    return %arg0, %c0_i32, %arg1 : i32, i32, i32
  }
}

</mosaic_0001>

<bundles_post_ra>
// kernel: tpu_custom_call.1
= control target key start
LH: loop header
LB: loop body
LE: loop exit
PB: predicated region body
PF: predicated region fallthrough
CT: control target
= control target key end

     0   :  { %s3974_s27 = smov 0   ;;  %s3976_s28 = smov 0   ;;  %s5724_s0 = inlined_call_operand.vmem [shape: f32[2,64,256], index: 0, kind: input, shape index: {}]   ;;  %s5725_s1 = inlined_call_operand.vmem [shape: bf16[256,64], index: 1, kind: input, shape index: {}]   ;;  %s5726_s2 = inlined_call_operand.vmem [shape: f32[256,1], index: 2, kind: input, shape index: {}]   ;;  %s5727_s3 = inlined_call_operand.vmem [shape: bf16[7,128,128], index: 3, kind: input, shape index: {}]   ;;  %s5728_s4 = inlined_call_operand.vmem [shape: f32[7,128,1], index: 4, kind: input, shape index: {}]   ;;  %s5729_s5 = inlined_call_operand.vmem [shape: bf16[8,128], index: 5, kind: input, shape index: {}]   ;;  %s5730_s6 = inlined_call_operand.vmem [shape: f32[8,1], index: 6, kind: input, shape index: {}]   ;;  %s5731_s7 = inlined_call_operand.vmem [shape: f32[3,1], index: 7, kind: input, shape index: {}]   ;;  %s5732_s8 = inlined_call_operand.vmem [shape: f32[2,3,256], index: 8, kind: output, shape index: {}]  }
   0x1   :  { %s3978_s29 = smov 0  }
   0x2 LB: > { %s30_s30 = sadd.s32 1, %s3922_s28  ;;  %p3488_p0 = scmp.ge.s32.totalorder %s3926_s29, 1  ;;  %s3926_s29 = sphi %s3978_s29, %s18_s29   ;;  %s3922_s28 = sphi %s3976_s28, %s5998_s28   ;;  %s3918_s27 = sphi %s3974_s27, %s5997_s27  }
   0x3   : > { %p32_p1 = scmp.ge.s32.totalorder %s30_s30, 2  ;;  %p283_p2 = scmp.lt.s32.totalorder %s3926_s29, 3 }
   0x5   : > { %s6000_s30 = smov (%p32_p1, %s30_s30), 0  ;;  %p284_p3 = pnand %p3488_p0, %p283_p2 }
   0x7   : > { %287 = sbr.rel (%p284_p3) target bundleno = 2682 (0xa7a), region = 52 }
   0xc   : > { %v432_v0 = vld [vmem:[%s5726_s2 + $0xf0] sm:$0xff]  ;;  %v430_v1 = vld [vmem:[%s5726_s2 + $0xe0] sm:$0xff]  ;;  %p326_p4 = scmp.lt.s32.totalorder %s3918_s27, 1  ;;  %v5733_v2 = vmov 0   ;;  %v433_v3 = vld [vmem:[%s5726_s2 + $0xf8] sm:$0xff]  ;;  %vm674_vm0 = vcmask 523264  }
   0xd   : > { %3819 = vset.pattern.permute.xlu1 %v5733_v2  ;;  %3818 = vset.pattern.permute.xlu0 %v5733_v2  ;;  %v431_v4 = vld [vmem:[%s5726_s2 + $0xe8] sm:$0xff]  ;;  %v429_v5 = vld [vmem:[%s5726_s2 + $0xd8] sm:$0xff]  ;;  %v428_v6 = vld [vmem:[%s5726_s2 + $0xd0] sm:$0xff] }
   0xe   : > { %586 = vperm.xlu0 %3818, %v432_v0   ;;  %576 = vperm.xlu1 %3819, %v430_v1   ;;  %s6002_s27 = smov (!%p326_p4, %s3918_s27), 1  ;;  %v427_v20 = vld [vmem:[%s5726_s2 + $0xc8] sm:$0xff]  ;;  %v426_v21 = vld [vmem:[%s5726_s2 + $0xc0] sm:$0xff]  ;;  %v425_v28 = vld [vmem:[%s5726_s2 + $0xb8] sm:$0xff] }
   0xf   : > { %755 = vmatprep.mubr.bf16.mxu0 %v5733_v2  ;;  %1156 = vmatprep.mubr.bf16.mxu1 %v5733_v2  ;;  %s3775_s17 = sshll.u32 %s6002_s27, 7  ;;  %v424_v29 = vld [vmem:[%s5726_s2 + $0xb0] sm:$0xff]  ;;  %v423_v34 = vld [vmem:[%s5726_s2 + $0xa8] sm:$0xff]  ;;  %v422_v35 = vld [vmem:[%s5726_s2 + $0xa0] sm:$0xff]  ;;  %s3776_s19 = sshll.u32 %s6002_s27, 3 }
  0x10   : > { %s4014_s20 = scalar_lea.vmem %s5724_s0, %s3775_s17  ;;  %v3820_v37 = vld [vmem:[%s5725_s1] sm:$0xff]   ;;  %v421_v38 = vld [vmem:[%s5726_s2 + $0x98] sm:$0xff]  ;;  %v420_v39 = vld [vmem:[%s5726_s2 + $0x90] sm:$0xff]  ;;  %s343_s22 = scalar_lea.vmem %s5732_s8, %s3776_s19 }
  0x11   : > { %v359_v7 = vld [vmem:[%s4014_s20 + $0x68] sm:$0xff]  ;;  %v361_v8 = vld [vmem:[%s4014_s20 + $0x78] sm:$0xff]  ;;  %v358_v9 = vld [vmem:[%s4014_s20 + $0x60] sm:$0xff] }
  0x12   : > { %591 = vperm.xlu0 %3818, %v433_v3   ;;  %581 = vperm.xlu1 %3819, %v431_v4   ;;  %v401_v10 = vpack.c.bf16 %v361_v8, %v359_v7  ;;  %v360_v11 = vld [vmem:[%s4014_s20 + $0x70] sm:$0xff]  ;;  %v355_v12 = vld [vmem:[%s4014_s20 + $0x48] sm:$0xff]  ;;  %v357_v13 = vld [vmem:[%s4014_s20 + $0x58] sm:$0xff] }
  0x13   : > { %v400_v14 = vpack.c.bf16 %v360_v11, %v358_v9  ;;  %v399_v15 = vpack.c.bf16 %v357_v13, %v355_v12  ;;  %v354_v16 = vld [vmem:[%s4014_s20 + $0x40] sm:$0xff]  ;;  %v356_v17 = vld [vmem:[%s4014_s20 + $0x50] sm:$0xff]  ;;  %v351_v18 = vld [vmem:[%s4014_s20 + $0x28] sm:$0xff] }
  0x14   : > { %731 = vmatprep.subr.bf16.mxu0 %v401_v10  ;;  %v353_v19 = vld [vmem:[%s4014_s20 + $0x38] sm:$0xff]  ;;  %v398_v22 = vpack.c.bf16 %v356_v17, %v354_v16  ;;  %v350_v24 = vld [vmem:[%s4014_s20 + $0x20] sm:$0xff]  ;;  %v352_v25 = vld [vmem:[%s4014_s20 + $0x30] sm:$0xff] }
  0x15   : > { %732 = vmatpush1.bf16.msra.mxu0 %v400_v14  ;;  %v397_v23 = vpack.c.bf16 %v353_v19, %v351_v18  ;;  %v347_v26 = vld [vmem:[%s4014_s20 + $0x8] sm:$0xff]  ;;  %v349_v27 = vld [vmem:[%s4014_s20 + $0x18] sm:$0xff]  ;;  %v396_v30 = vpack.c.bf16 %v352_v25, %v350_v24  ;;  %v346_v31 = vld [vmem:[%s4014_s20] sm:$0xff] }
  0x16   : > { %571 = vperm.xlu1 %3819, %v429_v5   ;;  %566 = vperm.xlu0 %3818, %v428_v6   ;;  %v395_v32 = vpack.c.bf16 %v349_v27, %v347_v26  ;;  %v348_v33 = vld [vmem:[%s4014_s20 + $0x10] sm:$0xff]  ;;  %v419_v40 = vld [vmem:[%s5726_s2 + $0x88] sm:$0xff]  ;;  %v418_v41 = vld [vmem:[%s5726_s2 + $0x80] sm:$0xff] }
  0x17   : > { %733 = vmatprep.subr.bf16.mxu0 %v399_v15  ;;  %v394_v36 = vpack.c.bf16 %v348_v33, %v346_v31  ;;  %v3821_v42 = vld [vmem:[%s5725_s1 + $0x8] sm:$0xff]   ;;  %v979_v43 = vld [vmem:[%s5728_s4 + $0x78] sm:$0xff]  ;;  %v978_v44 = vld [vmem:[%s5728_s4 + $0x70] sm:$0xff] }
  0x18   : > { %v977_v45 = vld [vmem:[%s5728_s4 + $0x68] sm:$0xff]  ;;  %v976_v46 = vld [vmem:[%s5728_s4 + $0x60] sm:$0xff]  ;;  %v3822_v47 = vld [vmem:[%s5725_s1 + $0x10] sm:$0xff]  }
  0x19   : > { %734 = vmatpush1.bf16.msra.mxu0 %v398_v22  ;;  %v975_v48 = vld [vmem:[%s5728_s4 + $0x58] sm:$0xff]  ;;  %v974_v49 = vld [vmem:[%s5728_s4 + $0x50] sm:$0xff]  ;;  %v973_v50 = vld [vmem:[%s5728_s4 + $0x48] sm:$0xff] }
  0x1a   : > { %561 = vperm.xlu1 %3819, %v427_v20   ;;  %556 = vperm.xlu0 %3818, %v426_v21   ;;  %v972_v51 = vld [vmem:[%s5728_s4 + $0x40] sm:$0xff]  ;;  %v3823_v52 = vld [vmem:[%s5725_s1 + $0x18] sm:$0xff]   ;;  %v970_v54 = vld [vmem:[%s5728_s4 + $0x30] sm:$0xff] }
  0x1b   : > { %735 = vmatprep.subr.bf16.mxu0 %v397_v23  ;;  %v971_v53 = vld [vmem:[%s5728_s4 + $0x38] sm:$0xff]  ;;  %v969_v55 = vld [vmem:[%s5728_s4 + $0x28] sm:$0xff]  ;;  %v968_v56 = vld [vmem:[%s5728_s4 + $0x20] sm:$0xff] }
  0x1c   : > { %v3824_v57 = vld [vmem:[%s5725_s1 + $0x20] sm:$0xff]   ;;  %v967_v58 = vld [vmem:[%s5728_s4 + $0x18] sm:$0xff]  ;;  %v966_v59 = vld [vmem:[%s5728_s4 + $0x10] sm:$0xff] }
  0x1d   : > { %736 = vmatpush1.bf16.msra.mxu0 %v396_v30  ;;  %v965_v60 = vld [vmem:[%s5728_s4 + $0x8] sm:$0xff]  ;;  %v964_v61 = vld [vmem:[%s5728_s4] sm:$0xff]  ;;  %v3564_v63 = vld [vmem:[%s5728_s4 + $0xf8] sm:$0xff] }
  0x1e   : > { %551 = vperm.xlu1 %3819, %v425_v28   ;;  %546 = vperm.xlu0 %3818, %v424_v29   ;;  %v3825_v62 = vld [vmem:[%s5725_s1 + $0x28] sm:$0xff]   ;;  %v3563_v0 = vld [vmem:[%s5728_s4 + $0xf0] sm:$0xff]  ;;  %v417_v1 = vld [vmem:[%s5726_s2 + $0x78] sm:$0xff] }
  0x1f   : > { %737 = vmatprep.subr.bf16.mxu0 %v395_v32  ;;  %v416_v3 = vld [vmem:[%s5726_s2 + $0x70] sm:$0xff]  ;;  %v3562_v5 = vld [vmem:[%s5728_s4 + $0xe8] sm:$0xff]  ;;  %v3561_v6 = vld [vmem:[%s5728_s4 + $0xe0] sm:$0xff] }
  0x20   : > { %v3826_v4 = vld [vmem:[%s5725_s1 + $0x30] sm:$0xff]   ;;  %v415_v7 = vld [vmem:[%s5726_s2 + $0x68] sm:$0xff]  ;;  %v414_v8 = vld [vmem:[%s5726_s2 + $0x60] sm:$0xff] }
  0x21   : > { %738 = vmatpush1.bf16.msra.mxu0 %v394_v36  ;;  %v3827_v9 = vld [vmem:[%s5725_s1 + $0x38] sm:$0xff]   ;;  %v3559_v11 = vld [vmem:[%s5728_s4 + $0xd0] sm:$0xff]  ;;  %v3828_v14 = vld [vmem:[%s5725_s1 + $0x40] sm:$0xff]  }
  0x22   : > { %541 = vperm.xlu1 %3819, %v423_v34   ;;  %536 = vperm.xlu0 %3818, %v422_v35   ;;  %v3560_v10 = vld [vmem:[%s5728_s4 + $0xd8] sm:$0xff]  ;;  %v412_v13 = vld [vmem:[%s5726_s2 + $0x50] sm:$0xff]  ;;  %v3558_v15 = vld [vmem:[%s5728_s4 + $0xc8] sm:$0xff] }
  0x23   : > { %v413_v12 = vld [vmem:[%s5726_s2 + $0x58] sm:$0xff]  ;;  %v3557_v16 = vld [vmem:[%s5728_s4 + $0xc0] sm:$0xff]  ;;  %v411_v17 = vld [vmem:[%s5726_s2 + $0x48] sm:$0xff] }
  0x24   : > { %3509 = vmatmul.mubr.msk.bf16.vlgmr.msra.gmra.mxu0 %vm674_vm0, %v3820_v37  ;;  %v410_v18 = vld [vmem:[%s5726_s2 + $0x40] sm:$0xff]  ;;  %v3829_v19 = vld [vmem:[%s5725_s1 + $0x48] sm:$0xff]   ;;  %v3556_v20 = vld [vmem:[%s5728_s4 + $0xb8] sm:$0xff] }
  0x25   : > { %765 = vmatprep.mubr.bf16.mxu0 %v5733_v2  ;;  %v3555_v21 = vld [vmem:[%s5728_s4 + $0xb0] sm:$0xff]  ;;  %v409_v22 = vld [vmem:[%s5726_s2 + $0x38] sm:$0xff]  ;;  %v3554_v25 = vld [vmem:[%s5728_s4 + $0xa8] sm:$0xff] }
  0x26   : > { %531 = vperm.xlu1 %3819, %v421_v38   ;;  %526 = vperm.xlu0 %3818, %v420_v39   ;;  %v408_v23 = vld [vmem:[%s5726_s2 + $0x30] sm:$0xff]  ;;  %v3553_v26 = vld [vmem:[%s5728_s4 + $0xa0] sm:$0xff]  ;;  %v407_v27 = vld [vmem:[%s5726_s2 + $0x28] sm:$0xff] }
  0x27   : > { %v3830_v24 = vld [vmem:[%s5725_s1 + $0x50] sm:$0xff]   ;;  %v406_v28 = vld [vmem:[%s5726_s2 + $0x20] sm:$0xff]  ;;  %v3831_v29 = vld [vmem:[%s5725_s1 + $0x58] sm:$0xff]  }
  0x28   : > { %v3552_v30 = vld [vmem:[%s5728_s4 + $0x98] sm:$0xff]  ;;  %v3551_v31 = vld [vmem:[%s5728_s4 + $0x90] sm:$0xff]  ;;  %v3832_v34 = vld [vmem:[%s5725_s1 + $0x60] sm:$0xff]  }
  0x29   : > { %v405_v32 = vld [vmem:[%s5726_s2 + $0x18] sm:$0xff]  ;;  %v404_v33 = vld [vmem:[%s5726_s2 + $0x10] sm:$0xff]  ;;  %v3550_v35 = vld [vmem:[%s5728_s4 + $0x88] sm:$0xff] }
  0x2a   : > { %521 = vperm.xlu1 %3819, %v419_v40   ;;  %516 = vperm.xlu0 %3818, %v418_v41   ;;  %v3549_v36 = vld [vmem:[%s5728_s4 + $0x80] sm:$0xff]  ;;  %v403_v37 = vld [vmem:[%s5726_s2 + $0x8] sm:$0xff]  ;;  %v3604_v40 = vld [vmem:[%s5728_s4 + $0x178] sm:$0xff] }
  0x2b   : > { %v402_v38 = vld [vmem:[%s5726_s2] sm:$0xff]  ;;  %v3833_v39 = vld [vmem:[%s5725_s1 + $0x68] sm:$0xff]   ;;  %v3603_v41 = vld [vmem:[%s5728_s4 + $0x170] sm:$0xff] }
  0x2c   : > { %3510 = vmatmul.mubr.msk.bf16.gmra.mxu0 %vm674_vm0, %v3821_v42  ;;  %v3602_v42 = vld [vmem:[%s5728_s4 + $0x168] sm:$0xff] }
  0x2d   : > { %775 = vmatprep.mubr.bf16.mxu0 %v5733_v2 }
  0x2e   : > { %1073 = vperm.xlu1 %3819, %v979_v43   ;;  %1068 = vperm.xlu0 %3818, %v978_v44   ;;  %v3601_v43 = vld [vmem:[%s5728_s4 + $0x160] sm:$0xff]  ;;  %v3834_v44 = vld [vmem:[%s5725_s1 + $0x70] sm:$0xff]  }
  0x32   : > { %1063 = vperm.xlu1 %3819, %v977_v45   ;;  %1058 = vperm.xlu0 %3818, %v976_v46   ;;  %v3600_v45 = vld [vmem:[%s5728_s4 + $0x158] sm:$0xff]  ;;  %v3599_v46 = vld [vmem:[%s5728_s4 + $0x150] sm:$0xff] }
  0x34   : > { %3511 = vmatmul.mubr.msk.bf16.gmra.mxu0 %vm674_vm0, %v3822_v47  ;;  %v3598_v47 = vld [vmem:[%s5728_s4 + $0x148] sm:$0xff] }
  0x35   : > { %785 = vmatprep.mubr.bf16.mxu0 %v5733_v2 }
  0x36   : > { %1053 = vperm.xlu1 %3819, %v975_v48   ;;  %1048 = vperm.xlu0 %3818, %v974_v49   ;;  %v3597_v48 = vld [vmem:[%s5728_s4 + $0x140] sm:$0xff]  ;;  %v3835_v49 = vld [vmem:[%s5725_s1 + $0x78] sm:$0xff]  }
  0x3a   : > { %1043 = vperm.xlu1 %3819, %v973_v50   ;;  %1038 = vperm.xlu0 %3818, %v972_v51   ;;  %v3596_v50 = vld [vmem:[%s5728_s4 + $0x138] sm:$0xff]  ;;  %v3595_v51 = vld [vmem:[%s5728_s4 + $0x130] sm:$0xff] }
  0x3c   : > { %3512 = vmatmul.mubr.msk.bf16.gmra.mxu0 %vm674_vm0, %v3823_v52  ;;  %v3594_v52 = vld [vmem:[%s5728_s4 + $0x128] sm:$0xff] }
  0x3d   : > { %795 = vmatprep.mubr.bf16.mxu0 %v5733_v2 }
  0x3e   : > { %1033 = vperm.xlu1 %3819, %v971_v53   ;;  %1028 = vperm.xlu0 %3818, %v970_v54   ;;  %v3593_v53 = vld [vmem:[%s5728_s4 + $0x120] sm:$0xff]  ;;  %v3592_v54 = vld [vmem:[%s5728_s4 + $0x118] sm:$0xff] }
  0x42   : > { %1023 = vperm.xlu1 %3819, %v969_v55   ;;  %1018 = vperm.xlu0 %3818, %v968_v56   ;;  %v3591_v56 = vld [vmem:[%s5728_s4 + $0x110] sm:$0xff] }
  0x44   : > { %3513 = vmatmul.mubr.msk.bf16.gmra.mxu0 %vm674_vm0, %v3824_v57 }
  0x45   : > { %805 = vmatprep.mubr.bf16.mxu0 %v5733_v2 }
  0x46   : > { %1013 = vperm.xlu1 %3819, %v967_v58   ;;  %1008 = vperm.xlu0 %3818, %v966_v59   ;;  %v3590_v58 = vld [vmem:[%s5728_s4 + $0x108] sm:$0xff]  ;;  %v3589_v59 = vld [vmem:[%s5728_s4 + $0x100] sm:$0xff] }
  0x4a   : > { %1003 = vperm.xlu1 %3819, %v965_v60   ;;  %998 = vperm.xlu0 %3818, %v964_v61  }
  0x4c   : > { %3514 = vmatmul.mubr.msk.bf16.gmra.mxu0 %vm674_vm0, %v3825_v62  ;;  %v3644_v62 = vld [vmem:[%s5728_s4 + $0x1f8] sm:$0xff] }
  0x4d   : > { %815 = vmatprep.mubr.bf16.mxu0 %v5733_v2 }
  0x4e   : > { %1396 = vperm.xlu1 %3819, %v3564_v63   ;;  %1391 = vperm.xlu0 %3818, %v3563_v0   ;;  %v3643_v63 = vld [vmem:[%s5728_s4 + $0x1f0] sm:$0xff]  ;;  %v3642_v0 = vld [vmem:[%s5728_s4 + $0x1e8] sm:$0xff] }
  0x52   : > { %511 = vperm.xlu1 %3819, %v417_v1   ;;  %506 = vperm.xlu0 %3818, %v416_v3   ;;  %v3641_v3 = vld [vmem:[%s5728_s4 + $0x1e0] sm:$0xff] }
  0x54   : > { %3515 = vmatmul.mubr.msk.bf16.gmra.mxu0 %vm674_vm0, %v3826_v4 }
  0x55   : > { %825 = vmatprep.mubr.bf16.mxu0 %v5733_v2 }
  0x56   : > { %1386 = vperm.xlu1 %3819, %v3562_v5   ;;  %1381 = vperm.xlu0 %3818, %v3561_v6   ;;  %v3640_v5 = vld [vmem:[%s5728_s4 + $0x1d8] sm:$0xff]  ;;  %v3639_v6 = vld [vmem:[%s5728_s4 + $0x1d0] sm:$0xff] }
  0x5a   : > { %501 = vperm.xlu1 %3819, %v415_v7   ;;  %496 = vperm.xlu0 %3818, %v414_v8  }
  0x5c   : > { %3516 = vmatmul.mubr.msk.bf16.gmra.mxu0 %vm674_vm0, %v3827_v9  ;;  %v3638_v9 = vld [vmem:[%s5728_s4 + $0x1c8] sm:$0xff] }
  0x5d   : > { %835 = vmatprep.mubr.bf16.mxu0 %v5733_v2 }
  0x5e   : > { %1376 = vperm.xlu1 %3819, %v3560_v10   ;;  %1371 = vperm.xlu0 %3818, %v3559_v11   ;;  %v3637_v10 = vld [vmem:[%s5728_s4 + $0x1c0] sm:$0xff]  ;;  %v3636_v11 = vld [vmem:[%s5728_s4 + $0x1b8] sm:$0xff] }
  0x62   : > { %491 = vperm.xlu1 %3819, %v413_v12   ;;  %486 = vperm.xlu0 %3818, %v412_v13   ;;  %v3635_v13 = vld [vmem:[%s5728_s4 + $0x1b0] sm:$0xff] }
  0x64   : > { %3517 = vmatmul.mubr.msk.bf16.gmra.mxu0 %vm674_vm0, %v3828_v14 }
  0x65   : > { %845 = vmatprep.mubr.bf16.mxu0 %v5733_v2 }
  0x66   : > { %1366 = vperm.xlu1 %3819, %v3558_v15   ;;  %1361 = vperm.xlu0 %3818, %v3557_v16   ;;  %v3634_v15 = vld [vmem:[%s5728_s4 + $0x1a8] sm:$0xff]  ;;  %v3633_v16 = vld [vmem:[%s5728_s4 + $0x1a0] sm:$0xff] }
  0x6a   : > { %481 = vperm.xlu1 %3819, %v411_v17   ;;  %476 = vperm.xlu0 %3818, %v410_v18  }
  0x6c   : > { %3518 = vmatmul.mubr.msk.bf16.gmra.mxu0 %vm674_vm0, %v3829_v19  ;;  %v3632_v19 = vld [vmem:[%s5728_s4 + $0x198] sm:$0xff] }
  0x6d   : > { %855 = vmatprep.mubr.bf16.mxu0 %v5733_v2 }
  0x6e   : > { %1356 = vperm.xlu1 %3819, %v3556_v20   ;;  %1351 = vperm.xlu0 %3818, %v3555_v21   ;;  %v3631_v20 = vld [vmem:[%s5728_s4 + $0x190] sm:$0xff]  ;;  %v3630_v21 = vld [vmem:[%s5728_s4 + $0x188] sm:$0xff] }
  0x72   : > { %471 = vperm.xlu1 %3819, %v409_v22   ;;  %466 = vperm.xlu0 %3818, %v408_v23   ;;  %v3629_v23 = vld [vmem:[%s5728_s4 + $0x180] sm:$0xff] }
  0x74   : > { %3519 = vmatmul.mubr.msk.bf16.gmra.mxu0 %vm674_vm0, %v3830_v24 }
  0x75   : > { %865 = vmatprep.mubr.bf16.mxu0 %v5733_v2 }
  0x76   : > { %1346 = vperm.xlu1 %3819, %v3554_v25   ;;  %1341 = vperm.xlu0 %3818, %v3553_v26   ;;  %v3684_v25 = vld [vmem:[%s5728_s4 + $0x278] sm:$0xff]  ;;  %v3683_v26 = vld [vmem:[%s5728_s4 + $0x270] sm:$0xff] }
  0x7a   : > { %461 = vperm.xlu1 %3819, %v407_v27   ;;  %456 = vperm.xlu0 %3818, %v406_v28  }
  0x7c   : > { %3520 = vmatmul.mubr.msk.bf16.gmra.mxu0 %vm674_vm0, %v3831_v29  ;;  %v3682_v29 = vld [vmem:[%s5728_s4 + $0x268] sm:$0xff] }
  0x7d   : > { %875 = vmatprep.mubr.bf16.mxu0 %v5733_v2 }
  0x7e   : > { %1336 = vperm.xlu1 %3819, %v3552_v30   ;;  %1331 = vperm.xlu0 %3818, %v3551_v31   ;;  %v3681_v30 = vld [vmem:[%s5728_s4 + $0x260] sm:$0xff]  ;;  %v3680_v31 = vld [vmem:[%s5728_s4 + $0x258] sm:$0xff] }
  0x82   : > { %451 = vperm.xlu1 %3819, %v405_v32   ;;  %446 = vperm.xlu0 %3818, %v404_v33   ;;  %v3679_v33 = vld [vmem:[%s5728_s4 + $0x250] sm:$0xff] }
  0x84   : > { %3521 = vmatmul.mubr.msk.bf16.gmra.mxu0 %vm674_vm0, %v3832_v34 }
  0x85   : > { %885 = vmatprep.mubr.bf16.mxu0 %v5733_v2 }
  0x86   : > { %1326 = vperm.xlu1 %3819, %v3550_v35   ;;  %1321 = vperm.xlu0 %3818, %v3549_v36   ;;  %v3678_v35 = vld [vmem:[%s5728_s4 + $0x248] sm:$0xff]  ;;  %v3677_v36 = vld [vmem:[%s5728_s4 + $0x240] sm:$0xff] }
  0x89   : > { %v4331_v55 = vpop.permute.xlu1 %576  ;;  %v4336_v57 = vpop.permute.xlu0 %586 }
  0x8a   : > { %441 = vperm.xlu1 %3819, %v403_v37   ;;  %436 = vperm.xlu0 %3818, %v402_v38  }
  0x8c   : > { %3522 = vmatmul.mubr.msk.bf16.gmra.mxu0 %vm674_vm0, %v3833_v39  ;;  %v3676_v39 = vld [vmem:[%s5728_s4 + $0x238] sm:$0xff] }
  0x8d   : > { %895 = vmatprep.mubr.bf16.mxu0 %v5733_v2  ;;  %v4344_v60 = vpop.permute.xlu1 %581  ;;  %v4346_v61 = vpop.permute.xlu0 %591 }
  0x8e   : > { %1751 = vperm.xlu1 %3819, %v3604_v40   ;;  %1746 = vperm.xlu0 %3818, %v3603_v41   ;;  %v3675_v40 = vld [vmem:[%s5728_s4 + $0x230] sm:$0xff]  ;;  %v3674_v41 = vld [vmem:[%s5728_s4 + $0x228] sm:$0xff] }
  0x91   : > { %v4357_v1 = vpop.permute.xlu1 %571  ;;  %v4362_v4 = vpop.permute.xlu0 %566 }
  0x92   : > { %1741 = vperm.xlu1 %3819, %v3602_v42   ;;  %1736 = vperm.xlu0 %3818, %v3601_v43   ;;  %v3673_v43 = vld [vmem:[%s5728_s4 + $0x220] sm:$0xff] }
  0x94   : > { %3523 = vmatmul.mubr.msk.bf16.gmra.mxu0 %vm674_vm0, %v3834_v44 }
  0x95   : > { %905 = vmatprep.mubr.bf16.mxu0 %v5733_v2  ;;  %v4370_v7 = vpop.permute.xlu1 %561  ;;  %v4372_v8 = vpop.permute.xlu0 %556 }
  0x96   : > { %1731 = vperm.xlu1 %3819, %v3600_v45   ;;  %1726 = vperm.xlu0 %3818, %v3599_v46   ;;  %v3672_v45 = vld [vmem:[%s5728_s4 + $0x218] sm:$0xff]  ;;  %v3671_v46 = vld [vmem:[%s5728_s4 + $0x210] sm:$0xff] }
  0x99   : > { %v4383_v12 = vpop.permute.xlu1 %551  ;;  %v4388_v14 = vpop.permute.xlu0 %546 }
  0x9a   : > { %1721 = vperm.xlu1 %3819, %v3598_v47   ;;  %1716 = vperm.xlu0 %3818, %v3597_v48  }
  0x9c   : > { %3524 = vmatmul.mubr.msk.bf16.gmra.mxu0 %vm674_vm0, %v3835_v49 }
  0x9d   : > { %1834 = vmatprep.mubr.bf16.mxu0 %v5733_v2  ;;  %v4396_v17 = vpop.permute.xlu1 %541  ;;  %v4398_v18 = vpop.permute.xlu0 %536 }
  0x9e   : > { %1711 = vperm.xlu1 %3819, %v3596_v50   ;;  %1706 = vperm.xlu0 %3818, %v3595_v51   ;;  %v3670_v50 = vld [vmem:[%s5728_s4 + $0x208] sm:$0xff] }
  0xa1   : > { %v4409_v22 = vpop.permute.xlu1 %531  ;;  %v4414_v24 = vpop.permute.xlu0 %526 }
  0xa2   : > { %1701 = vperm.xlu1 %3819, %v3594_v52   ;;  %1696 = vperm.xlu0 %3818, %v3593_v53   ;;  %v3669_v52 = vld [vmem:[%s5728_s4 + $0x200] sm:$0xff] }
  0xa5   : > { %v4422_v27 = vpop.permute.xlu1 %521  ;;  %v4424_v28 = vpop.permute.xlu0 %516 }
  0xa6   : > { %1691 = vperm.xlu1 %3819, %v3592_v54   ;;  %1686 = vperm.xlu0 %3818, %v3591_v56   ;;  %v3724_v54 = vld [vmem:[%s5728_s4 + $0x2f8] sm:$0xff] }
  0xa9   : > { %v4435_v32 = vpop.permute.xlu1 %1073  ;;  %v4440_v34 = vpop.permute.xlu0 %1068 }
  0xaa   : > { %1681 = vperm.xlu1 %3819, %v3590_v58   ;;  %1676 = vperm.xlu0 %3818, %v3589_v59   ;;  %v3723_v59 = vld [vmem:[%s5728_s4 + $0x2f0] sm:$0xff] }
  0xad   : > { %v4448_v37 = vpop.permute.xlu1 %1063  ;;  %v4450_v38 = vpop.permute.xlu0 %1058 }
  0xae   : > { %2074 = vperm.xlu1 %3819, %v3644_v62   ;;  %2069 = vperm.xlu0 %3818, %v3643_v63   ;;  %5799 = vst [vmem:[#allocation2_spill] sm:$0xff] %v4450_v38 }
  0xb1   : > { %v4461_v42 = vpop.permute.xlu1 %1053  ;;  %v4466_v44 = vpop.permute.xlu0 %1048 }
  0xb2   : > { %2064 = vperm.xlu1 %3819, %v3642_v0   ;;  %2059 = vperm.xlu0 %3818, %v3641_v3   ;;  %5800 = vst [vmem:[#allocation3_spill] sm:$0xff] %v4461_v42  ;;  %5801 = vst [vmem:[#allocation4_spill] sm:$0xff] %v4466_v44  ;;  %v3722_v0 = vld [vmem:[%s5728_s4 + $0x2e8] sm:$0xff] }
  0xb5   : > { %v4474_v47 = vpop.permute.xlu1 %1043  ;;  %v4478_v49 = vpop.permute.xlu0 %1038 }
  0xb6   : > { %2054 = vperm.xlu1 %3819, %v3640_v5   ;;  %2049 = vperm.xlu0 %3818, %v3639_v6   ;;  %5802 = vst [vmem:[#allocation5_spill] sm:$0xff] %v4474_v47  ;;  %5804 = vst [vmem:[#allocation7_spill] sm:$0xff] %v4478_v49  ;;  %v3721_v5 = vld [vmem:[%s5728_s4 + $0x2e0] sm:$0xff] }
  0xb9   : > { %v4493_v56 = vpop.permute.xlu1 %1033  ;;  %v4500_v62 = vpop.permute.xlu0 %1028 }
  0xba   : > { %2044 = vperm.xlu1 %3819, %v3638_v9   ;;  %2039 = vperm.xlu0 %3818, %v3637_v10   ;;  %5807 = vst [vmem:[#allocation10_spill] sm:$0xff] %v4493_v56  ;;  %5809 = vst [vmem:[#allocation12_spill] sm:$0xff] %v4500_v62 }
  0xbd   : > { %v4512_v6 = vpop.permute.xlu1 %1023  ;;  %v4516_v10 = vpop.permute.xlu0 %1018 }
  0xbe   : > { %2034 = vperm.xlu1 %3819, %v3636_v11   ;;  %2029 = vperm.xlu0 %3818, %v3635_v13   ;;  %5812 = vst [vmem:[#allocation15_spill] sm:$0xff] %v4512_v6  ;;  %5814 = vst [vmem:[#allocation17_spill] sm:$0xff] %v4516_v10  ;;  %v3720_v11 = vld [vmem:[%s5728_s4 + $0x2d8] sm:$0xff] }
  0xc2   : > { %2024 = vperm.xlu1 %3819, %v3634_v15   ;;  %2019 = vperm.xlu0 %3818, %v3633_v16   ;;  %v3719_v15 = vld [vmem:[%s5728_s4 + $0x2d0] sm:$0xff] }
  0xc6   : > { %2014 = vperm.xlu1 %3819, %v3632_v19   ;;  %2009 = vperm.xlu0 %3818, %v3631_v20   ;;  %v3718_v19 = vld [vmem:[%s5728_s4 + $0x2c8] sm:$0xff]  ;;  %v4531_v20 = vpop.permute.xlu1 %1013 }
  0xca   : > { %2004 = vperm.xlu1 %3819, %v3630_v21   ;;  %1999 = vperm.xlu0 %3818, %v3629_v23   ;;  %v3717_v23 = vld [vmem:[%s5728_s4 + $0x2c0] sm:$0xff] }
  0xce   : > { %2397 = vperm.xlu1 %3819, %v3684_v25   ;;  %2392 = vperm.xlu0 %3818, %v3683_v26   ;;  %v4538_v25 = vpop.permute.xlu0 %1008 }
  0xd2   : > { %2387 = vperm.xlu1 %3819, %v3682_v29   ;;  %2382 = vperm.xlu0 %3818, %v3681_v30   ;;  %v3716_v29 = vld [vmem:[%s5728_s4 + $0x2b8] sm:$0xff] }
  0xd6   : > { %2377 = vperm.xlu1 %3819, %v3680_v31   ;;  %2372 = vperm.xlu0 %3818, %v3679_v33   ;;  %v3715_v31 = vld [vmem:[%s5728_s4 + $0x2b0] sm:$0xff]  ;;  %v4550_v33 = vpop.permute.xlu1 %1003 }
  0xda   : > { %2367 = vperm.xlu1 %3819, %v3678_v35   ;;  %2362 = vperm.xlu0 %3818, %v3677_v36   ;;  %v4554_v36 = vpop.permute.xlu0 %998 }
  0xde   : > { %2357 = vperm.xlu1 %3819, %v3676_v39   ;;  %2352 = vperm.xlu0 %3818, %v3675_v40   ;;  %v3714_v39 = vld [vmem:[%s5728_s4 + $0x2a8] sm:$0xff] }
  0xe2   : > { %2347 = vperm.xlu1 %3819, %v3674_v41   ;;  %2342 = vperm.xlu0 %3818, %v3673_v43   ;;  %v3713_v41 = vld [vmem:[%s5728_s4 + $0x2a0] sm:$0xff] }
  0xe4   : > { %v4476_v48 = vpop.f32.mrf.mxu0 }
  0xe5   : > { %5803 = vst [vmem:[#allocation6_spill] sm:$0xff] %v4476_v48 }
  0xe6   : > { %2337 = vperm.xlu1 %3819, %v3672_v45   ;;  %2332 = vperm.xlu0 %3818, %v3671_v46   ;;  %v4483_v51 = vpop.f32.mrf.mxu0  ;;  %v3712_v45 = vld [vmem:[%s5728_s4 + $0x298] sm:$0xff]  ;;  %v4569_v46 = vpop.permute.xlu1 %1396 }
  0xe7   : > { %5805 = vst [vmem:[#allocation8_spill] sm:$0xff] %v4483_v51  ;;  %5823 = vst [vmem:[#allocation26_spill] sm:$0xff] %v4569_v46  ;;  %v3288_v46 = vld [vmem:[%s5730_s6] sm:$0xff] }
  0xe8   : > { %v4488_v53 = vpop.f32.mrf.mxu0 }
  0xe9   : > { %5806 = vst [vmem:[#allocation9_spill] sm:$0xff] %v4488_v53 }
  0xea   : > { %2327 = vperm.xlu1 %3819, %v3670_v50   ;;  %2322 = vperm.xlu0 %3818, %v3669_v52   ;;  %v4495_v58 = vpop.f32.mrf.mxu0  ;;  %v3711_v52 = vld [vmem:[%s5728_s4 + $0x290] sm:$0xff] }
  0xeb   : > { %5808 = vst [vmem:[#allocation11_spill] sm:$0xff] %v4495_v58 }
  0xec   : > { %v4502_v63 = vpop.f32.mrf.mxu0 }
  0xed   : > { %5810 = vst [vmem:[#allocation13_spill] sm:$0xff] %v4502_v63 }
  0xee   : > { %2752 = vperm.xlu1 %3819, %v3724_v54   ;;  %2747 = vperm.xlu0 %3818, %v3723_v59   ;;  %v4507_v3 = vpop.f32.mrf.mxu0  ;;  %v4576_v54 = vpop.permute.xlu0 %1391 }
  0xef   : > { %5811 = vst [vmem:[#allocation14_spill] sm:$0xff] %v4507_v3  ;;  %5825 = vst [vmem:[#allocation28_spill] sm:$0xff] %v4576_v54 }
  0xf0   : > { %v4514_v9 = vpop.f32.mrf.mxu0 }
  0xf1   : > { %5813 = vst [vmem:[#allocation16_spill] sm:$0xff] %v4514_v9 }
  0xf2   : > { %2742 = vperm.xlu1 %3819, %v3722_v0   ;;  %2737 = vperm.xlu0 %3818, %v3721_v5   ;;  %v4521_v13 = vpop.f32.mrf.mxu0  ;;  %v3710_v0 = vld [vmem:[%s5728_s4 + $0x288] sm:$0xff] }
  0xf3   : > { %5815 = vst [vmem:[#allocation18_spill] sm:$0xff] %v4521_v13  ;;  %v3759_v13 = vld [vmem:[%s5728_s4 + $0x350] sm:$0xff] }
  0xf4   : > { %v4526_v16 = vpop.f32.mrf.mxu0 }
  0xf5   : > { %5816 = vst [vmem:[#allocation19_spill] sm:$0xff] %v4526_v16 }
  0xf6   : > { %2732 = vperm.xlu1 %3819, %v3720_v11   ;;  %2727 = vperm.xlu0 %3818, %v3719_v15   ;;  %v4533_v21 = vpop.f32.mrf.mxu0  ;;  %v3709_v11 = vld [vmem:[%s5728_s4 + $0x280] sm:$0xff]  ;;  %v4588_v15 = vpop.permute.xlu1 %511 }
  0xf7   : > { %5817 = vst [vmem:[#allocation20_spill] sm:$0xff] %v4533_v21  ;;  %5828 = vst [vmem:[#allocation31_spill] sm:$0xff] %v4588_v15  ;;  %v3757_v21 = vld [vmem:[%s5728_s4 + $0x340] sm:$0xff] }
  0xf8   : > { %v4540_v26 = vpop.f32.mrf.mxu0 }
  0xf9   : > { %5818 = vst [vmem:[#allocation21_spill] sm:$0xff] %v4540_v26 }
  0xfa   : > { %2722 = vperm.xlu1 %3819, %v3718_v19   ;;  %2717 = vperm.xlu0 %3818, %v3717_v23   ;;  %v4545_v30 = vpop.f32.mrf.mxu0  ;;  %v4592_v23 = vpop.permute.xlu0 %506 }
  0xfb   : > { %5819 = vst [vmem:[#allocation22_spill] sm:$0xff] %v4545_v30  ;;  %5830 = vst [vmem:[#allocation33_spill] sm:$0xff] %v4592_v23  ;;  %v3749_v23 = vld [vmem:[%s5728_s4 + $0x300] sm:$0xff] }
  0xfc   : > { %v4552_v35 = vpop.f32.mrf.mxu0 }
  0xfd   : > { %5820 = vst [vmem:[#allocation23_spill] sm:$0xff] %v4552_v35 }
  0xfe   : > { %2712 = vperm.xlu1 %3819, %v3716_v29   ;;  %2707 = vperm.xlu0 %3818, %v3715_v31   ;;  %v4559_v40 = vpop.f32.mrf.mxu0  ;;  %v3764_v29 = vld [vmem:[%s5728_s4 + $0x378] sm:$0xff]  ;;  %v4614_v2 = vpop.permute.xlu0 %1381 }
  0xff   : > { %5821 = vst [vmem:[#allocation24_spill] sm:$0xff] %v4559_v40  ;;  %5835 = vst [vmem:[#allocation38_spill] sm:$0xff] %v4614_v2 }
 0x100   : > { %v4564_v43 = vpop.f32.mrf.mxu0 }
 0x101   : > { %5822 = vst [vmem:[#allocation25_spill] sm:$0xff] %v4564_v43 }
 0x102   : > { %2702 = vperm.xlu1 %3819, %v3714_v39   ;;  %2697 = vperm.xlu0 %3818, %v3713_v41   ;;  %v4571_v50 = vpop.f32.mrf.mxu0  ;;  %v3763_v39 = vld [vmem:[%s5728_s4 + $0x370] sm:$0xff]  ;;  %v4630_v30 = vpop.permute.xlu0 %496 }
 0x103   : > { %5824 = vst [vmem:[#allocation27_spill] sm:$0xff] %v4571_v50  ;;  %5840 = vst [vmem:[#allocation43_spill] sm:$0xff] %v4630_v30 }
 0x104   : > { %v4578_v59 = vpop.f32.mrf.mxu0 }
 0x105   : > { %5826 = vst [vmem:[#allocation29_spill] sm:$0xff] %v4578_v59 }
 0x106   : > { %2692 = vperm.xlu1 %3819, %v3712_v45   ;;  %2687 = vperm.xlu0 %3818, %v3711_v52   ;;  %v4583_v5 = vpop.f32.mrf.mxu0  ;;  %v3762_v45 = vld [vmem:[%s5728_s4 + $0x368] sm:$0xff]  ;;  %v4607_v52 = vpop.permute.xlu1 %1386 }
 0x107   : > { %5827 = vst [vmem:[#allocation30_spill] sm:$0xff] %v4583_v5  ;;  %5833 = vst [vmem:[#allocation36_spill] sm:$0xff] %v4607_v52 }
 0x108   : > { %v4590_v19 = vpop.f32.mrf.mxu0 }
 0x109   : > { %5829 = vst [vmem:[#allocation32_spill] sm:$0xff] %v4590_v19  ;;  %v3755_v19 = vld [vmem:[%s5728_s4 + $0x330] sm:$0xff] }
 0x10a   : > { %2682 = vperm.xlu1 %3819, %v3710_v0   ;;  %2677 = vperm.xlu0 %3818, %v3709_v11   ;;  %v4597_v31 = vpop.f32.mrf.mxu0  ;;  %v3761_v11 = vld [vmem:[%s5728_s4 + $0x360] sm:$0xff]  ;;  %v4626_v26 = vpop.permute.xlu1 %501 }
 0x10b   : > { %5831 = vst [vmem:[#allocation34_spill] sm:$0xff] %v4597_v31  ;;  %5838 = vst [vmem:[#allocation41_spill] sm:$0xff] %v4626_v26 }
 0x10c   : > { %v4602_v41 = vpop.f32.mrf.mxu0 }
 0x10d   : > { %5832 = vst [vmem:[#allocation35_spill] sm:$0xff] %v4602_v41  ;;  %v4652_v41 = vpop.permute.xlu0 %1371 }
 0x10e   : > { %3075 = vperm.xlu1 %3819, %v3764_v29   ;;  %3070 = vperm.xlu0 %3818, %v3763_v39   ;;  %v4609_v0 = vpop.f32.mrf.mxu0  ;;  %v3760_v29 = vld [vmem:[%s5728_s4 + $0x358] sm:$0xff]  ;;  %v4645_v59 = vpop.permute.xlu1 %1376  ;;  %5845 = vst [vmem:[#allocation48_spill] sm:$0xff] %v4652_v41 }
 0x10f   : > { %5834 = vst [vmem:[#allocation37_spill] sm:$0xff] %v4609_v0  ;;  %5843 = vst [vmem:[#allocation46_spill] sm:$0xff] %v4645_v59 }
 0x110   : > { %v4616_v58 = vpop.f32.mrf.mxu0 }
 0x111   : > { %5836 = vst [vmem:[#allocation39_spill] sm:$0xff] %v4616_v58  ;;  %v4668_v41 = vpop.permute.xlu0 %486 }
 0x112   : > { %3065 = vperm.xlu1 %3819, %v3762_v45   ;;  %3060 = vperm.xlu0 %3818, %v3761_v11   ;;  %v4621_v39 = vpop.f32.mrf.mxu0  ;;  %v3758_v45 = vld [vmem:[%s5728_s4 + $0x348] sm:$0xff]  ;;  %v4664_v15 = vpop.permute.xlu1 %491  ;;  %5850 = vst [vmem:[#allocation53_spill] sm:$0xff] %v4668_v41 }
 0x113   : > { %5837 = vst [vmem:[#allocation40_spill] sm:$0xff] %v4621_v39  ;;  %5848 = vst [vmem:[#allocation51_spill] sm:$0xff] %v4664_v15 }
 0x114   : > { %v4628_v35 = vpop.f32.mrf.mxu0 }
 0x115   : > { %5839 = vst [vmem:[#allocation42_spill] sm:$0xff] %v4628_v35 }
 0x116   : > { %3055 = vperm.xlu1 %3819, %v3760_v29   ;;  %3050 = vperm.xlu0 %3818, %v3759_v13   ;;  %v4635_v11 = vpop.f32.mrf.mxu0  ;;  %v3756_v29 = vld [vmem:[%s5728_s4 + $0x338] sm:$0xff] }
 0x117   : > { %5841 = vst [vmem:[#allocation44_spill] sm:$0xff] %v4635_v11 }
 0x118   : > { %v4640_v43 = vpop.f32.mrf.mxu0 }
 0x119   : > { %5842 = vst [vmem:[#allocation45_spill] sm:$0xff] %v4640_v43  ;;  %v3753_v43 = vld [vmem:[%s5728_s4 + $0x320] sm:$0xff] }
 0x11a   : > { %3045 = vperm.xlu1 %3819, %v3758_v45   ;;  %3040 = vperm.xlu0 %3818, %v3757_v21   ;;  %v4647_v13 = vpop.f32.mrf.mxu0  ;;  %v3754_v21 = vld [vmem:[%s5728_s4 + $0x328] sm:$0xff] }
 0x11b   : > { %5844 = vst [vmem:[#allocation47_spill] sm:$0xff] %v4647_v13 }
 0x11c   : > { %v4654_v58 = vpop.f32.mrf.mxu0 }
 0x11d   : > { %5846 = vst [vmem:[#allocation49_spill] sm:$0xff] %v4654_v58 }
 0x11e   : > { %3035 = vperm.xlu1 %3819, %v3756_v29   ;;  %3030 = vperm.xlu0 %3818, %v3755_v19   ;;  %v4659_v45 = vpop.f32.mrf.mxu0  ;;  %v3752_v19 = vld [vmem:[%s5728_s4 + $0x318] sm:$0xff] }
 0x11f   : > { %5847 = vst [vmem:[#allocation50_spill] sm:$0xff] %v4659_v45  ;;  %v3751_v45 = vld [vmem:[%s5728_s4 + $0x310] sm:$0xff] }
 0x120   : > { %v4666_v59 = vpop.f32.mrf.mxu0 }
 0x121   : > { %5849 = vst [vmem:[#allocation52_spill] sm:$0xff] %v4666_v59  ;;  %v4681_v59 = vpop.permute.xlu1 %1366 }
 0x122   : > { %3025 = vperm.xlu1 %3819, %v3754_v21   ;;  %3020 = vperm.xlu0 %3818, %v3753_v43   ;;  %v4673_v29 = vpop.f32.mrf.mxu0  ;;  %v3750_v21 = vld [vmem:[%s5728_s4 + $0x308] sm:$0xff]  ;;  %5852 = vst [vmem:[#allocation55_spill] sm:$0xff] %v4681_v59 }
 0x123   : > { %5851 = vst [vmem:[#allocation54_spill] sm:$0xff] %v4673_v29  ;;  %v4688_v29 = vpop.permute.xlu0 %1361 }
 0x124   : > { %v837_v58 = vpop.f32.mrf.mxu0  ;;  %5853 = vst [vmem:[#allocation56_spill] sm:$0xff] %v4688_v29 }
 0x125   : > { %v838_v13 = vadd.f32 %v837_v58, %v4424_v28  ;;  %v4700_v29 = vpop.permute.xlu1 %481 }
 0x126   : > { %3015 = vperm.xlu1 %3819, %v3752_v19   ;;  %3010 = vperm.xlu0 %3818, %v3751_v45   ;;  %v4683_v43 = vpop.f32.mrf.mxu0  ;;  %v3384_v19 = vld [vmem:[%s5731_s7] sm:$0x7]  ;;  %5854 = vst [vmem:[#allocation57_spill] sm:$0xff] %v4700_v29 }
 0x127   : > { %v916_v2 = vmax.f32 %v838_v13, 0.0 }
 0x128   : > { %v841_v26 = vpop.f32.mrf.mxu0 }
 0x129   : > { %v842_v45 = vadd.f32 %v841_v26, %v4422_v27 }
 0x12a   : > { %3005 = vperm.xlu1 %3819, %v3750_v21   ;;  %3000 = vperm.xlu0 %3818, %v3749_v23   ;;  %v4695_v59 = vpop.f32.mrf.mxu0  ;;  %v4702_v21 = vpop.permute.xlu0 %476 }
 0x12b   : > { %v918_v11 = vmax.f32 %v842_v45, 0.0  ;;  %5855 = vst [vmem:[#allocation58_spill] sm:$0xff] %v4702_v21 }
 0x12c   : > { %v847_v58 = vpop.f32.mrf.mxu0 }
 0x12d   : > { %v4704_v26 = vpack.c.bf16 %v918_v11, %v916_v2  ;;  %v848_v35 = vadd.f32 %v847_v58, %v4414_v24 }
 0x12e   : > { %3387 = vperm.xlu1 %3819, %v3384_v19   ;;  %3291 = vperm.xlu0 %3818, %v3288_v46   ;;  %v849_v23 = vpop.f32.mrf.mxu0 }
 0x12f   : > { %v850_v39 = vadd.f32 %v849_v23, %v4414_v24  ;;  %v920_v13 = vmax.f32 %v848_v35, 0.0 }
 0x130   : > { %v851_v30 = vpop.f32.mrf.mxu0 }
 0x131   : > { %v852_v15 = vadd.f32 %v851_v30, %v4409_v22  ;;  %v921_v19 = vmax.f32 %v850_v39, 0.0 }
 0x132   : > { %v853_v0 = vpop.f32.mrf.mxu0 }
 0x133   : > { %v922_v45 = vmax.f32 %v852_v15, 0.0  ;;  %v854_v41 = vadd.f32 %v853_v0, %v4409_v22 }
 0x134   : > { %v4710_v31 = vpop.f32.mrf.mxu0 }
 0x135   : > { %v4712_v29 = vpack.c.bf16 %v922_v45, %v920_v13  ;;  %v923_v2 = vmax.f32 %v854_v41, 0.0 }
 0x136   : > { %v4714_v46 = vpop.f32.mrf.mxu0 }
 0x137   : > { %v4716_v11 = vpack.c.bf16 %v923_v2, %v921_v19 }
 0x138   : > { %v4718_v58 = vpop.f32.mrf.mxu0 }
 0x13a   : > { %v4720_v24 = vpop.f32.mrf.mxu0 }
 0x13c   : > { %v4722_v30 = vpop.f32.mrf.mxu0 }
 0x13e   : > { %v869_v35 = vpop.f32.mrf.mxu0 }
 0x140   : > { %v871_v15 = vpop.f32.mrf.mxu0 }
 0x142   : > { %v873_v23 = vpop.f32.mrf.mxu0 }
 0x144   : > { %v877_v22 = vpop.f32.mrf.mxu0 }
 0x146   : > { %v879_v0 = vpop.f32.mrf.mxu0 }
 0x148   : > { %v881_v54 = vpop.f32.mrf.mxu0 }
 0x14a   : > { %v883_v39 = vpop.f32.mrf.mxu0 }
 0x14c   : > { %v887_v13 = vpop.f32.mrf.mxu0 }
 0x14e   : > { %v889_v45 = vpop.f32.mrf.mxu0 }
 0x150   : > { %v891_v41 = vpop.f32.mrf.mxu0 }
 0x152   : > { %v893_v52 = vpop.f32.mrf.mxu0 }
 0x153   : > { %v894_v56 = vadd.f32 %v893_v52, %v4357_v1  ;;  %v868_v52 = vadd.f32 %v4722_v30, %v4388_v14 }
 0x154   : > { %v897_v5 = vpop.f32.mrf.mxu0 }
 0x156   : > { %v899_v19 = vpop.f32.mrf.mxu0 }
 0x157   : > { %v900_v48 = vadd.f32 %v899_v19, %v4331_v55 }
 0x158   : > { %v901_v2 = vpop.f32.mrf.mxu0 }
 0x159   : > { %v902_v6 = vadd.f32 %v901_v2, %v4344_v60  ;;  %v941_v42 = vmax.f32 %v900_v48, 0.0  ;;  %v882_v48 = vadd.f32 %v881_v54, %v4370_v7 }
 0x15a   : > { %v903_v21 = vpop.f32.mrf.mxu0 }
 0x15b   : > { %v904_v9 = vadd.f32 %v903_v21, %v4344_v60  ;;  %v898_v21 = vadd.f32 %v897_v5, %v4331_v55  ;;  %v942_v19 = vmax.f32 %v902_v6, 0.0  ;;  %v939_v60 = vmax.f32 %v894_v56, 0.0 }
 0x15c   : > { %v907_v50 = vpop.f32.mrf.mxu0  ;;  %v880_v55 = vadd.f32 %v879_v0, %v4372_v8  ;;  %v878_v56 = vadd.f32 %v877_v22, %v4372_v8  ;;  %v860_v8 = vadd.f32 %v4714_v46, %v4398_v18  ;;  %v844_v46 = vadd.f32 %v4695_v59, %v4422_v27  ;;  %v3836_v27 = vld [vmem:[%s5727_s3] sm:$0xff]  }
 0x15d   : > { %v908_v53 = vadd.f32 %v907_v50, %v4336_v57  ;;  %v943_v49 = vmax.f32 %v904_v9, 0.0  ;;  %v892_v50 = vadd.f32 %v891_v41, %v4357_v1  ;;  %v874_v1 = vadd.f32 %v873_v23, %v4383_v12 }
 0x15e   : > { %v909_v40 = vpop.f32.mrf.mxu0  ;;  %v934_v9 = vmax.f32 %v882_v48, 0.0  ;;  %v932_v23 = vmax.f32 %v878_v56, 0.0  ;;  %v5856_v59 = vmov 0  }
 0x15f   : > { %v910_v3 = vadd.f32 %v909_v40, %v4336_v57  ;;  %v944_v40 = vmax.f32 %v908_v53, 0.0  ;;  %v931_v54 = vmax.f32 %v874_v1, 0.0 }
 0x160   : > { %v911_v16 = vpop.f32.mrf.mxu0  ;;  %v988_v22 = vpack.c.bf16 %v934_v9, %v932_v23 }
 0x161   : > { %v912_v63 = vadd.f32 %v911_v16, %v4346_v61  ;;  %v945_v47 = vmax.f32 %v910_v3, 0.0  ;;  %v890_v16 = vadd.f32 %v889_v45, %v4362_v4  ;;  %v940_v3 = vmax.f32 %v898_v21, 0.0 }
 0x162   : > { %v913_v51 = vpop.f32.mrf.mxu0  ;;  %v919_v21 = vmax.f32 %v844_v46, 0.0 }
 0x163   : > { %v914_v10 = vadd.f32 %v913_v51, %v4346_v61  ;;  %v946_v62 = vmax.f32 %v912_v63, 0.0  ;;  %v884_v61 = vadd.f32 %v883_v39, %v4370_v7  ;;  %v993_v51 = vpack.c.bf16 %v943_v49, %v941_v42 }
 0x164   : > { %v888_v63 = vadd.f32 %v887_v13, %v4362_v4  ;;  %v937_v53 = vmax.f32 %v890_v16, 0.0  ;;  %v870_v4 = vadd.f32 %v869_v35, %v4388_v14  ;;  %v933_v49 = vmax.f32 %v880_v55, 0.0  ;;  %v3843_v16 = vld [vmem:[%s5727_s3 + $0x38] sm:$0xff]  }
 0x165   : > { %v947_v44 = vmax.f32 %v914_v10, 0.0  ;;  %v994_v38 = vpack.c.bf16 %v946_v62, %v944_v40  ;;  %v935_v62 = vmax.f32 %v884_v61, 0.0  ;;  %v864_v7 = vadd.f32 %v4720_v24, %v4396_v17  ;;  %v3842_v40 = vld [vmem:[%s5727_s3 + $0x30] sm:$0xff]  }
 0x166   : > { %v991_v6 = vpack.c.bf16 %v939_v60, %v937_v53  ;;  %v936_v42 = vmax.f32 %v888_v63, 0.0  ;;  %v929_v35 = vmax.f32 %v870_v4, 0.0  ;;  %v858_v24 = vadd.f32 %v4710_v31, %v4398_v18 }
 0x167   : > { %v995_v57 = vpack.c.bf16 %v947_v44, %v945_v47  ;;  %v938_v44 = vmax.f32 %v892_v50, 0.0  ;;  %v992_v47 = vpack.c.bf16 %v942_v19, %v940_v3  ;;  %v989_v5 = vpack.c.bf16 %v935_v62, %v933_v49 }
 0x168   : > { %v927_v0 = vmax.f32 %v864_v7, 0.0  ;;  %v987_v39 = vpack.c.bf16 %v931_v54, %v929_v35  ;;  %v928_v13 = vmax.f32 %v868_v52, 0.0  ;;  %v925_v14 = vmax.f32 %v860_v8, 0.0 }
 0x169   : > { %1124 = vmatprep.subr.bf16.mxu1 %v995_v57  ;;  %v990_v10 = vpack.c.bf16 %v938_v44, %v936_v42  ;;  %v924_v2 = vmax.f32 %v858_v24, 0.0 }
 0x16a   : > { %1125 = vmatpush1.bf16.msra.mxu1 %v994_v38  ;;  %v872_v38 = vadd.f32 %v871_v15, %v4383_v12  ;;  %v862_v12 = vadd.f32 %v4718_v58, %v4396_v17  ;;  %v985_v41 = vpack.c.bf16 %v927_v0, %v925_v14  ;;  %v840_v17 = vadd.f32 %v4683_v43, %v4424_v28  ;;  %v3837_v28 = vld [vmem:[%s5727_s3 + $0x8] sm:$0xff]   ;;  %v3839_v43 = vld [vmem:[%s5727_s3 + $0x18] sm:$0xff]  }
 0x16b   : > { %1126 = vmatprep.subr.bf16.mxu1 %v993_v51 }
 0x16c   : > { %v930_v15 = vmax.f32 %v872_v38, 0.0  ;;  %v926_v30 = vmax.f32 %v862_v12, 0.0  ;;  %v917_v18 = vmax.f32 %v840_v17, 0.0 }
 0x16e   : > { %1127 = vmatpush1.bf16.msra.mxu1 %v992_v47  ;;  %v986_v45 = vpack.c.bf16 %v930_v15, %v928_v13  ;;  %v984_v58 = vpack.c.bf16 %v926_v30, %v924_v2  ;;  %v981_v31 = vpack.c.bf16 %v919_v21, %v917_v18  ;;  %v5857_v18 = vld [vmem:[#allocation2_spill] sm:$0xff] }
 0x16f   : > { %1128 = vmatprep.subr.bf16.mxu1 %v991_v6 }
 0x172   : > { %1129 = vmatpush1.bf16.msra.mxu1 %v990_v10 }
 0x173   : > { %1130 = vmatprep.subr.bf16.mxu1 %v989_v5 }
 0x176   : > { %1131 = vmatpush1.bf16.msra.mxu1 %v988_v22 }
 0x177   : > { %1132 = vmatprep.subr.bf16.mxu1 %v987_v39 }
 0x17a   : > { %1133 = vmatpush1.bf16.msra.mxu1 %v986_v45 }
 0x17b   : > { %1134 = vmatprep.subr.bf16.mxu1 %v985_v41 }
 0x17e   : > { %1135 = vmatpush1.bf16.msra.mxu1 %v984_v58 }
 0x17f   : > { %1136 = vmatprep.subr.bf16.mxu1 %v4716_v11  ;;  %v3841_v11 = vld [vmem:[%s5727_s3 + $0x28] sm:$0xff]  }
 0x182   : > { %1137 = vmatpush1.bf16.msra.mxu1 %v4712_v29  ;;  %v3838_v29 = vld [vmem:[%s5727_s3 + $0x10] sm:$0xff]  }
 0x183   : > { %1138 = vmatprep.subr.bf16.mxu1 %v981_v31 }
 0x186   : > { %1139 = vmatpush1.bf16.msra.mxu1 %v4704_v26  ;;  %v3840_v26 = vld [vmem:[%s5727_s3 + $0x20] sm:$0xff]  }
 0x189   : > { %1157 = vmatmul.mubr.bf16.vlgmr.msra.gmra.mxu1 %v3836_v27 }
 0x18a   : > { %1166 = vmatprep.mubr.bf16.mxu1 %v5856_v59 }
 0x191   : > { %1167 = vmatmul.mubr.bf16.gmra.mxu1 %v3837_v28 }
 0x192   : > { %1176 = vmatprep.mubr.bf16.mxu1 %v5856_v59 }
 0x199   : > { %1177 = vmatmul.mubr.bf16.gmra.mxu1 %v3838_v29 }
 0x19a   : > { %1186 = vmatprep.mubr.bf16.mxu1 %v5856_v59 }
 0x1a1   : > { %1187 = vmatmul.mubr.bf16.gmra.mxu1 %v3839_v43  ;;  %v5858_v43 = vld [vmem:[#allocation3_spill] sm:$0xff] }
 0x1a2   : > { %1196 = vmatprep.mubr.bf16.mxu1 %v5856_v59 }
 0x1a9   : > { %1197 = vmatmul.mubr.bf16.gmra.mxu1 %v3840_v26 }
 0x1aa   : > { %1206 = vmatprep.mubr.bf16.mxu1 %v5856_v59 }
 0x1b1   : > { %1207 = vmatmul.mubr.bf16.gmra.mxu1 %v3841_v11 }
 0x1b2   : > { %1216 = vmatprep.mubr.bf16.mxu1 %v5856_v59 }
 0x1b9   : > { %1217 = vmatmul.mubr.bf16.gmra.mxu1 %v3842_v40 }
 0x1ba   : > { %1226 = vmatprep.mubr.bf16.mxu1 %v5856_v59 }
 0x1c1   : > { %1227 = vmatmul.mubr.bf16.gmra.mxu1 %v3843_v16 }
 0x1c2   : > { %1479 = vmatprep.mubr.bf16.mxu1 %v5856_v59 }
 0x249   : > { %v1158_v57 = vpop.f32.mrf.mxu1 }
 0x24a   : > { %v1159_v19 = vadd.f32 %v1158_v57, %v4554_v36 }
 0x24b   : > { %v4792_v50 = vpop.f32.mrf.mxu1 }
 0x24c   : > { %v1237_v63 = vmax.f32 %v1159_v19, 0.0 }
 0x24d   : > { %v1162_v61 = vpop.f32.mrf.mxu1 }
 0x24e   : > { %v1163_v60 = vadd.f32 %v1162_v61, %v4550_v33  ;;  %v5859_v61 = vld [vmem:[#allocation4_spill] sm:$0xff] }
 0x24f   : > { %v4796_v51 = vpop.f32.mrf.mxu1 }
 0x250   : > { %v1239_v3 = vmax.f32 %v1163_v60, 0.0 }
 0x251   : > { %v1168_v55 = vpop.f32.mrf.mxu1 }
 0x252   : > { %v4798_v53 = vpack.c.bf16 %v1239_v3, %v1237_v63  ;;  %v1169_v44 = vadd.f32 %v1168_v55, %v4538_v25 }
 0x253   : > { %v4800_v48 = vpop.f32.mrf.mxu1 }
 0x254   : > { %v1241_v6 = vmax.f32 %v1169_v44, 0.0 }
 0x255   : > { %v1172_v47 = vpop.f32.mrf.mxu1 }
 0x256   : > { %v1173_v1 = vadd.f32 %v1172_v47, %v4531_v20 }
 0x257   : > { %v4804_v62 = vpop.f32.mrf.mxu1 }
 0x258   : > { %v1243_v56 = vmax.f32 %v1173_v1, 0.0 }
 0x259   : > { %v4806_v42 = vpop.f32.mrf.mxu1 }
 0x25a   : > { %v4808_v4 = vpack.c.bf16 %v1243_v56, %v1241_v6 }
 0x25b   : > { %v4810_v49 = vpop.f32.mrf.mxu1 }
 0x25d   : > { %v4812_v38 = vpop.f32.mrf.mxu1 }
 0x25f   : > { %v4814_v9 = vpop.f32.mrf.mxu1 }
 0x261   : > { %v4816_v10 = vpop.f32.mrf.mxu1 }
 0x263   : > { %v1190_v7 = vpop.f32.mrf.mxu1 }
 0x265   : > { %v1192_v54 = vpop.f32.mrf.mxu1 }
 0x267   : > { %v1194_v5 = vpop.f32.mrf.mxu1 }
 0x269   : > { %v1198_v52 = vpop.f32.mrf.mxu1 }
 0x26b   : > { %v1200_v23 = vpop.f32.mrf.mxu1 }
 0x26d   : > { %v1202_v8 = vpop.f32.mrf.mxu1 }
 0x26f   : > { %v1204_v35 = vpop.f32.mrf.mxu1 }
 0x271   : > { %v1208_v12 = vpop.f32.mrf.mxu1 }
 0x272   : > { %v1209_v6 = vadd.f32 %v1208_v12, %v5859_v61 }
 0x273   : > { %v1210_v15 = vpop.f32.mrf.mxu1 }
 0x274   : > { %v1211_v60 = vadd.f32 %v1210_v15, %v5859_v61 }
 0x275   : > { %v1212_v22 = vpop.f32.mrf.mxu1 }
 0x276   : > { %v1213_v3 = vadd.f32 %v1212_v22, %v5858_v43  ;;  %v5862_v22 = vld [vmem:[#allocation10_spill] sm:$0xff] }
 0x277   : > { %v1214_v0 = vpop.f32.mrf.mxu1 }
 0x278   : > { %v1215_v26 = vadd.f32 %v1214_v0, %v5858_v43  ;;  %v5861_v0 = vld [vmem:[#allocation7_spill] sm:$0xff] }
 0x279   : > { %v1218_v39 = vpop.f32.mrf.mxu1 }
 0x27a   : > { %v1219_v57 = vadd.f32 %v1218_v39, %v5857_v18  ;;  %v1201_v39 = vadd.f32 %v1200_v23, %v5861_v0  ;;  %v1193_v23 = vadd.f32 %v1192_v54, %v5862_v22 }
 0x27b   : > { %v1220_v24 = vpop.f32.mrf.mxu1 }
 0x27c   : > { %v1221_v31 = vadd.f32 %v1220_v24, %v5857_v18  ;;  %v1261_v56 = vmax.f32 %v1219_v57, 0.0  ;;  %v1258_v24 = vmax.f32 %v1211_v60, 0.0  ;;  %v5864_v18 = vld [vmem:[#allocation15_spill] sm:$0xff]  ;;  %v1251_v43 = vmax.f32 %v1193_v23, 0.0 }
 0x27d   : > { %v1222_v13 = vpop.f32.mrf.mxu1  ;;  %v1183_v54 = vadd.f32 %v4812_v38, %v5864_v18  ;;  %v1165_v38 = vadd.f32 %v4796_v51, %v4550_v33  ;;  %v3844_v33 = vld [vmem:[%s5727_s3 + $0x40] sm:$0xff]   ;;  %v3847_v51 = vld [vmem:[%s5727_s3 + $0x58] sm:$0xff]  }
 0x27e   : > { %v1223_v28 = vadd.f32 %v1222_v13, %v4448_v37  ;;  %v1262_v63 = vmax.f32 %v1221_v31, 0.0  ;;  %v1259_v13 = vmax.f32 %v1213_v3, 0.0 }
 0x27f   : > { %v1224_v14 = vpop.f32.mrf.mxu1  ;;  %v1240_v3 = vmax.f32 %v1165_v38, 0.0 }
 0x280   : > { %v1225_v41 = vadd.f32 %v1224_v14, %v4448_v37  ;;  %v1263_v55 = vmax.f32 %v1223_v28, 0.0  ;;  %v1260_v37 = vmax.f32 %v1215_v26, 0.0 }
 0x281   : > { %v1228_v30 = vpop.f32.mrf.mxu1 }
 0x282   : > { %v1229_v58 = vadd.f32 %v1228_v30, %v4440_v34  ;;  %v1264_v11 = vmax.f32 %v1225_v41, 0.0  ;;  %v1315_v14 = vpack.c.bf16 %v1263_v55, %v1261_v56  ;;  %v1195_v30 = vadd.f32 %v1194_v5, %v5862_v22 }
 0x283   : > { %v1230_v45 = vpop.f32.mrf.mxu1  ;;  %v1257_v41 = vmax.f32 %v1209_v6, 0.0 }
 0x284   : > { %v1231_v2 = vadd.f32 %v1230_v45, %v4440_v34  ;;  %v1265_v19 = vmax.f32 %v1229_v58, 0.0  ;;  %v1316_v1 = vpack.c.bf16 %v1264_v11, %v1262_v63  ;;  %v1252_v31 = vmax.f32 %v1195_v30, 0.0 }
 0x285   : > { %v1232_v46 = vpop.f32.mrf.mxu1 }
 0x286   : > { %v1233_v17 = vadd.f32 %v1232_v46, %v4435_v32  ;;  %v1266_v40 = vmax.f32 %v1231_v2, 0.0  ;;  %v1314_v46 = vpack.c.bf16 %v1260_v37, %v1258_v24  ;;  %v5863_v2 = vld [vmem:[#allocation12_spill] sm:$0xff]  ;;  %v4891_v37 = vpop.permute.xlu1 %1356 }
 0x287   : > { %v1234_v21 = vpop.f32.mrf.mxu1  ;;  %v1191_v12 = vadd.f32 %v1190_v7, %v5863_v2  ;;  %v1189_v5 = vadd.f32 %v4816_v10, %v5863_v2 }
 0x288   : > { %v1235_v27 = vadd.f32 %v1234_v21, %v4435_v32  ;;  %v1267_v29 = vmax.f32 %v1233_v17, 0.0  ;;  %v5860_v32 = vld [vmem:[#allocation5_spill] sm:$0xff]  ;;  %v1254_v17 = vmax.f32 %v1201_v39, 0.0  ;;  %v1313_v21 = vpack.c.bf16 %v1259_v13, %v1257_v41 }
 0x289   : > { %v1205_v47 = vadd.f32 %v1204_v35, %v5860_v32  ;;  %v1203_v15 = vadd.f32 %v1202_v8, %v5860_v32  ;;  %v1199_v35 = vadd.f32 %v1198_v52, %v5861_v0  ;;  %v1185_v8 = vadd.f32 %v4814_v9, %v5864_v18  ;;  %v5865_v52 = vld [vmem:[#allocation17_spill] sm:$0xff] }
 0x28a   : > { %v1268_v16 = vmax.f32 %v1235_v27, 0.0  ;;  %v1317_v44 = vpack.c.bf16 %v1267_v29, %v1265_v19  ;;  %v1181_v29 = vadd.f32 %v4810_v49, %v5865_v52  ;;  %v1250_v7 = vmax.f32 %v1191_v12, 0.0  ;;  %v3851_v32 = vld [vmem:[%s5727_s3 + $0x78] sm:$0xff]   ;;  %v4895_v6 = vpop.permute.xlu1 %471  ;;  %v5872_v12 = vld [vmem:[#allocation6_spill] sm:$0xff] }
 0x28b   : > { %v1256_v45 = vmax.f32 %v1205_v47, 0.0  ;;  %v1255_v58 = vmax.f32 %v1203_v15, 0.0  ;;  %v1253_v28 = vmax.f32 %v1199_v35, 0.0  ;;  %v1175_v9 = vadd.f32 %v4804_v62, %v4531_v20  ;;  %v4889_v47 = vpop.permute.xlu0 %1351  ;;  %5867 = vst [vmem:[#allocation3_spill] sm:$0xff] %v4895_v6 }
 0x28c   : > { %v1318_v34 = vpack.c.bf16 %v1268_v16, %v1266_v40  ;;  %v1248_v11 = vmax.f32 %v1185_v8, 0.0  ;;  %v1310_v40 = vpack.c.bf16 %v1252_v31, %v1250_v7  ;;  %v1179_v10 = vadd.f32 %v4806_v42, %v5865_v52  ;;  %v5874_v8 = vld [vmem:[#allocation8_spill] sm:$0xff] }
 0x28d   : > { %v1312_v27 = vpack.c.bf16 %v1256_v45, %v1254_v17  ;;  %v1311_v26 = vpack.c.bf16 %v1255_v58, %v1253_v28  ;;  %v1249_v16 = vmax.f32 %v1189_v5, 0.0  ;;  %v1171_v49 = vadd.f32 %v4800_v48, %v4538_v25 }
 0x28e   : > { %1447 = vmatprep.subr.bf16.mxu1 %v1318_v34  ;;  %v1246_v57 = vmax.f32 %v1181_v29, 0.0  ;;  %v1247_v19 = vmax.f32 %v1183_v54, 0.0  ;;  %v1244_v60 = vmax.f32 %v1175_v9, 0.0  ;;  %v1245_v20 = vmax.f32 %v1179_v10, 0.0  ;;  %v4899_v0 = vpop.permute.xlu1 %1346  ;;  %v5877_v29 = vld [vmem:[#allocation9_spill] sm:$0xff] }
 0x28f   : > { %1448 = vmatpush1.bf16.msra.mxu1 %v1317_v44  ;;  %v1309_v61 = vpack.c.bf16 %v1251_v43, %v1249_v16  ;;  %v1161_v62 = vadd.f32 %v4792_v50, %v4554_v36  ;;  %v1242_v42 = vmax.f32 %v1171_v49, 0.0  ;;  %v3845_v36 = vld [vmem:[%s5727_s3 + $0x48] sm:$0xff]   ;;  %v3846_v50 = vld [vmem:[%s5727_s3 + $0x50] sm:$0xff]   ;;  %v5880_v10 = vld [vmem:[#allocation13_spill] sm:$0xff] }
 0x290   : > { %1449 = vmatprep.subr.bf16.mxu1 %v1316_v1  ;;  %v1308_v63 = vpack.c.bf16 %v1248_v11, %v1246_v57  ;;  %v1307_v34 = vpack.c.bf16 %v1247_v19, %v1245_v20  ;;  %v3850_v44 = vld [vmem:[%s5727_s3 + $0x70] sm:$0xff]   ;;  %v4893_v1 = vpop.permute.xlu0 %466 }
 0x291   : > { %v1306_v55 = vpack.c.bf16 %v1244_v60, %v1242_v42  ;;  %v1238_v25 = vmax.f32 %v1161_v62, 0.0  ;;  %5866 = vst [vmem:[#allocation2_spill] sm:$0xff] %v4893_v1  ;;  %v5883_v42 = vld [vmem:[#allocation16_spill] sm:$0xff] }
 0x292   : > { %v4903_v24 = vpop.permute.xlu1 %461 }
 0x293   : > { %1450 = vmatpush1.bf16.msra.mxu1 %v1315_v14  ;;  %v1304_v48 = vpack.c.bf16 %v1240_v3, %v1238_v25  ;;  %5869 = vst [vmem:[#allocation5_spill] sm:$0xff] %v4903_v24 }
 0x294   : > { %1451 = vmatprep.subr.bf16.mxu1 %v1314_v46  ;;  %v4897_v56 = vpop.permute.xlu0 %1341 }
 0x296   : > { %v4905_v13 = vpop.permute.xlu1 %1336 }
 0x297   : > { %1452 = vmatpush1.bf16.msra.mxu1 %v1313_v21 }
 0x298   : > { %1453 = vmatprep.subr.bf16.mxu1 %v1312_v27  ;;  %v4901_v39 = vpop.permute.xlu0 %456 }
 0x299   : > { %5868 = vst [vmem:[#allocation4_spill] sm:$0xff] %v4901_v39 }
 0x29a   : > { %v4907_v22 = vpop.permute.xlu1 %451 }
 0x29b   : > { %1454 = vmatpush1.bf16.msra.mxu1 %v1311_v26  ;;  %5870 = vst [vmem:[#allocation7_spill] sm:$0xff] %v4907_v22 }
 0x29c   : > { %1455 = vmatprep.subr.bf16.mxu1 %v1310_v40  ;;  %v1332_v15 = vpop.permute.xlu0 %1331 }
 0x29e   : > { %v4909_v45 = vpop.permute.xlu1 %1326 }
 0x29f   : > { %1456 = vmatpush1.bf16.msra.mxu1 %v1309_v61  ;;  %5871 = vst [vmem:[#allocation10_spill] sm:$0xff] %v4909_v45  ;;  %v5881_v61 = vld [vmem:[#allocation14_spill] sm:$0xff] }
 0x2a0   : > { %1457 = vmatprep.subr.bf16.mxu1 %v1308_v63  ;;  %v447_v14 = vpop.permute.xlu0 %446 }
 0x2a1   : > { %v768_v16 = vadd.f32 %v5880_v10, %v447_v14  ;;  %v770_v38 = vadd.f32 %v5881_v61, %v447_v14  ;;  %v5891_v10 = vld [vmem:[#allocation58_spill] sm:$0xff]  ;;  %v5894_v61 = vld [vmem:[#allocation28_spill] sm:$0xff] }
 0x2a2   : > { %v4912_v21 = vpop.permute.xlu1 %441 }
 0x2a3   : > { %1458 = vmatpush1.bf16.msra.mxu1 %v1307_v34  ;;  %5873 = vst [vmem:[#allocation12_spill] sm:$0xff] %v4912_v21  ;;  %v762_v7 = vadd.f32 %v5877_v29, %v4912_v21  ;;  %v772_v34 = vadd.f32 %v5883_v42, %v4907_v22 }
 0x2a4   : > { %1459 = vmatprep.subr.bf16.mxu1 %v1306_v55  ;;  %v1322_v30 = vpop.permute.xlu0 %1321 }
 0x2a7   : > { %1460 = vmatpush1.bf16.msra.mxu1 %v4808_v4  ;;  %v3849_v4 = vld [vmem:[%s5727_s3 + $0x68] sm:$0xff]  }
 0x2a8   : > { %1461 = vmatprep.subr.bf16.mxu1 %v1304_v48  ;;  %v437_v46 = vpop.permute.xlu0 %436 }
 0x2a9   : > { %v758_v17 = vadd.f32 %v5872_v12, %v437_v46  ;;  %v760_v31 = vadd.f32 %v5874_v8, %v437_v46 }
 0x2ab   : > { %1462 = vmatpush1.bf16.msra.mxu1 %v4798_v53  ;;  %v3848_v53 = vld [vmem:[%s5727_s3 + $0x60] sm:$0xff]  }
 0x2ae   : > { %1480 = vmatmul.mubr.bf16.vlgmr.msra.gmra.mxu1 %v3844_v33 }
 0x2af   : > { %1489 = vmatprep.mubr.bf16.mxu1 %v5856_v59 }
 0x2b6   : > { %1490 = vmatmul.mubr.bf16.gmra.mxu1 %v3845_v36 }
 0x2b7   : > { %1499 = vmatprep.mubr.bf16.mxu1 %v5856_v59 }
 0x2be   : > { %1500 = vmatmul.mubr.bf16.gmra.mxu1 %v3846_v50  ;;  %v5886_v50 = vld [vmem:[#allocation19_spill] sm:$0xff] }
 0x2bf   : > { %1509 = vmatprep.mubr.bf16.mxu1 %v5856_v59 }
 0x2c6   : > { %1510 = vmatmul.mubr.bf16.gmra.mxu1 %v3847_v51  ;;  %v778_v51 = vadd.f32 %v5886_v50, %v4901_v39  ;;  %v5900_v50 = vld [vmem:[#allocation40_spill] sm:$0xff] }
 0x2c7   : > { %1519 = vmatprep.mubr.bf16.mxu1 %v5856_v59  ;;  %v5915_v39 = vld [vmem:[#allocation48_spill] sm:$0xff] }
 0x2ce   : > { %1520 = vmatmul.mubr.bf16.gmra.mxu1 %v3848_v53 }
 0x2cf   : > { %1529 = vmatprep.mubr.bf16.mxu1 %v5856_v59 }
 0x2d6   : > { %1530 = vmatmul.mubr.bf16.gmra.mxu1 %v3849_v4 }
 0x2d7   : > { %1539 = vmatprep.mubr.bf16.mxu1 %v5856_v59 }
 0x2de   : > { %1540 = vmatmul.mubr.bf16.gmra.mxu1 %v3850_v44 }
 0x2df   : > { %1549 = vmatprep.mubr.bf16.mxu1 %v5856_v59 }
 0x2e6   : > { %1550 = vmatmul.mubr.bf16.gmra.mxu1 %v3851_v32 }
 0x2e7   : > { %1874 = vmatprep.mubr.bf16.mxu1 %v5856_v59 }
 0x36e   : > { %v1481_v35 = vpop.f32.mrf.mxu1 }
 0x36f   : > { %v1482_v41 = vadd.f32 %v1481_v35, %v1322_v30 }
 0x370   : > { %v1483_v2 = vpop.f32.mrf.mxu1 }
 0x371   : > { %v1560_v23 = vmax.f32 %v1482_v41, 0.0  ;;  %v1484_v58 = vadd.f32 %v1483_v2, %v1322_v30 }
 0x372   : > { %v1485_v18 = vpop.f32.mrf.mxu1 }
 0x373   : > { %v4915_v27 = vadd.f32 %v1560_v23, %v758_v17  ;;  %v1561_v5 = vmax.f32 %v1484_v58, 0.0  ;;  %v1486_v28 = vadd.f32 %v1485_v18, %v4909_v45 }
 0x374   : > { %v4918_v52 = vpop.f32.mrf.mxu1 }
 0x375   : > { %5875 = vst [vmem:[#allocation15_spill] sm:$0xff] %v4915_v27  ;;  %5876 = vst [vmem:[#allocation17_spill] sm:$0xff] %v4918_v52  ;;  %v4922_v54 = vadd.f32 %v1561_v5, %v760_v31  ;;  %v1562_v43 = vmax.f32 %v1486_v28, 0.0 }
 0x376   : > { %v1491_v26 = vpop.f32.mrf.mxu1 }
 0x377   : > { %5878 = vst [vmem:[#allocation6_spill] sm:$0xff] %v4922_v54  ;;  %v4924_v9 = vadd.f32 %v1562_v43, %v762_v7  ;;  %v1492_v11 = vadd.f32 %v1491_v26, %v1332_v15  ;;  %v5888_v7 = vld [vmem:[#allocation24_spill] sm:$0xff]  ;;  %v5905_v54 = vld [vmem:[#allocation26_spill] sm:$0xff] }
 0x378   : > { %v1493_v40 = vpop.f32.mrf.mxu1  ;;  %v4962_v43 = vadd.f32 %v5888_v7, %v4893_v1  ;;  %v5913_v1 = vld [vmem:[#allocation52_spill] sm:$0xff] }
 0x379   : > { %5879 = vst [vmem:[#allocation8_spill] sm:$0xff] %v4924_v9  ;;  %v1564_v49 = vmax.f32 %v1492_v11, 0.0  ;;  %v1494_v57 = vadd.f32 %v1493_v40, %v1332_v15  ;;  %v5890_v11 = vld [vmem:[#allocation27_spill] sm:$0xff] }
 0x37a   : > { %v1495_v19 = vpop.f32.mrf.mxu1  ;;  %5889 = vst [vmem:[#allocation19_spill] sm:$0xff] %v4962_v43  ;;  %v4966_v40 = vadd.f32 %v5890_v11, %v4895_v6  ;;  %v5901_v11 = vld [vmem:[#allocation43_spill] sm:$0xff] }
 0x37b   : > { %v4928_v60 = vadd.f32 %v1564_v49, %v768_v16  ;;  %v1565_v63 = vmax.f32 %v1494_v57, 0.0  ;;  %v1496_v20 = vadd.f32 %v1495_v19, %v4905_v13  ;;  %v5892_v16 = vld [vmem:[#allocation30_spill] sm:$0xff]  ;;  %v5893_v57 = vld [vmem:[#allocation36_spill] sm:$0xff] }
 0x37c   : > { %v4931_v62 = vpop.f32.mrf.mxu1  ;;  %v4970_v49 = vadd.f32 %v5892_v16, %v5891_v10  ;;  %v5902_v16 = vld [vmem:[#allocation42_spill] sm:$0xff] }
 0x37d   : > { %5882 = vst [vmem:[#allocation9_spill] sm:$0xff] %v4928_v60  ;;  %v4935_v3 = vadd.f32 %v1565_v63, %v770_v38  ;;  %v1566_v55 = vmax.f32 %v1496_v20, 0.0  ;;  %v5895_v63 = vld [vmem:[#allocation57_spill] sm:$0xff]  ;;  %v5896_v20 = vld [vmem:[#allocation34_spill] sm:$0xff]  ;;  %v818_v59 = vadd.f32 %v5902_v16, %v5901_v11  ;;  %v5907_v60 = vld [vmem:[#allocation47_spill] sm:$0xff] }
 0x37e   : > { %v1501_v25 = vpop.f32.mrf.mxu1  ;;  %v4976_v42 = vadd.f32 %v5896_v20, %v5895_v63 }
 0x37f   : > { %5884 = vst [vmem:[#allocation13_spill] sm:$0xff] %v4935_v3  ;;  %v4937_v48 = vadd.f32 %v1566_v55, %v772_v34  ;;  %v1502_v33 = vadd.f32 %v1501_v25, %v4897_v56  ;;  %v5897_v34 = vld [vmem:[#allocation53_spill] sm:$0xff] }
 0x380   : > { %v4940_v36 = vpop.f32.mrf.mxu1  ;;  %v5898_v55 = vld [vmem:[#allocation37_spill] sm:$0xff] }
 0x381   : > { %5885 = vst [vmem:[#allocation14_spill] sm:$0xff] %v4937_v48  ;;  %v1568_v53 = vmax.f32 %v1502_v33, 0.0  ;;  %v810_v25 = vadd.f32 %v5898_v55, %v5897_v34  ;;  %v5899_v33 = vld [vmem:[#allocation51_spill] sm:$0xff]  ;;  %v5906_v48 = vld [vmem:[#allocation41_spill] sm:$0xff] }
 0x382   : > { %v4944_v4 = vpop.f32.mrf.mxu1  ;;  %v824_v3 = vadd.f32 %v5907_v60, %v5906_v48  ;;  %v5908_v55 = vld [vmem:[#allocation33_spill] sm:$0xff] }
 0x383   : > { %v4946_v44 = vadd.f32 %v1568_v53, %v778_v51  ;;  %v814_v51 = vadd.f32 %v5900_v50, %v5899_v33  ;;  %v5910_v50 = vld [vmem:[#allocation46_spill] sm:$0xff] }
 0x384   : > { %v4948_v32 = vpop.f32.mrf.mxu1 }
 0x385   : > { %5887 = vst [vmem:[#allocation16_spill] sm:$0xff] %v4946_v44  ;;  %v5909_v44 = vld [vmem:[#allocation49_spill] sm:$0xff] }
 0x386   : > { %v4950_v15 = vpop.f32.mrf.mxu1  ;;  %v828_v21 = vadd.f32 %v5909_v44, %v5908_v55  ;;  %v5914_v44 = vld [vmem:[#allocation54_spill] sm:$0xff] }
 0x388   : > { %v4952_v14 = vpop.f32.mrf.mxu1 }
 0x38a   : > { %v4954_v30 = vpop.f32.mrf.mxu1 }
 0x38c   : > { %v4956_v46 = vpop.f32.mrf.mxu1 }
 0x38e   : > { %v4958_v35 = vpop.f32.mrf.mxu1 }
 0x390   : > { %v1523_v41 = vpop.f32.mrf.mxu1 }
 0x392   : > { %v1525_v2 = vpop.f32.mrf.mxu1 }
 0x394   : > { %v1527_v12 = vpop.f32.mrf.mxu1 }
 0x396   : > { %v1531_v17 = vpop.f32.mrf.mxu1 }
 0x398   : > { %v1533_v23 = vpop.f32.mrf.mxu1 }
 0x39a   : > { %v1535_v58 = vpop.f32.mrf.mxu1 }
 0x39c   : > { %v1537_v18 = vpop.f32.mrf.mxu1 }
 0x39d   : > { %v1538_v22 = vadd.f32 %v1537_v18, %v5910_v50 }
 0x39e   : > { %v1541_v8 = vpop.f32.mrf.mxu1 }
 0x3a0   : > { %v1543_v31 = vpop.f32.mrf.mxu1 }
 0x3a2   : > { %v1545_v5 = vpop.f32.mrf.mxu1 }
 0x3a4   : > { %v1547_v28 = vpop.f32.mrf.mxu1 }
 0x3a5   : > { %v1548_v19 = vadd.f32 %v1547_v28, %v5893_v57  ;;  %v5903_v28 = vld [vmem:[#allocation44_spill] sm:$0xff] }
 0x3a6   : > { %v1551_v29 = vpop.f32.mrf.mxu1  ;;  %v820_v9 = vadd.f32 %v5903_v28, %v5901_v11 }
 0x3a7   : > { %v1552_v53 = vadd.f32 %v1551_v29, %v5894_v61  ;;  %v1546_v29 = vadd.f32 %v1545_v5, %v5893_v57  ;;  %v1587_v52 = vmax.f32 %v1548_v19, 0.0  ;;  %v1534_v5 = vadd.f32 %v1533_v23, %v5915_v39 }
 0x3a8   : > { %v1553_v26 = vpop.f32.mrf.mxu1 }
 0x3a9   : > { %v1554_v38 = vadd.f32 %v1553_v26, %v5894_v61  ;;  %v5904_v26 = vld [vmem:[#allocation38_spill] sm:$0xff]  ;;  %v1588_v24 = vmax.f32 %v1552_v53, 0.0  ;;  %v5921_v53 = vld [vmem:[#allocation45_spill] sm:$0xff] }
 0x3aa   : > { %v1555_v7 = vpop.f32.mrf.mxu1  ;;  %v1544_v27 = vadd.f32 %v1543_v31, %v5904_v26  ;;  %v5911_v31 = vld [vmem:[#allocation50_spill] sm:$0xff]  ;;  %v1542_v60 = vadd.f32 %v1541_v8, %v5904_v26  ;;  %v822_v26 = vadd.f32 %v5921_v53, %v5906_v48  ;;  %v5940_v53 = vld [vmem:[#allocation25_spill] sm:$0xff] }
 0x3ab   : > { %v1556_v20 = vadd.f32 %v1555_v7, %v5905_v54  ;;  %v1589_v16 = vmax.f32 %v1554_v38, 0.0  ;;  %v830_v28 = vadd.f32 %v5911_v31, %v5908_v55  ;;  %v5912_v7 = vld [vmem:[#allocation31_spill] sm:$0xff]  ;;  %v1583_v55 = vmax.f32 %v1538_v22, 0.0 }
 0x3ac   : > { %v1557_v61 = vpop.f32.mrf.mxu1  ;;  %v832_v43 = vadd.f32 %v5913_v1, %v5912_v7  ;;  %v834_v18 = vadd.f32 %v5914_v44, %v5912_v7  ;;  %v1585_v57 = vmax.f32 %v1544_v27, 0.0  ;;  %v5916_v38 = vld [vmem:[#allocation55_spill] sm:$0xff]  ;;  %v5008_v31 = vadd.f32 %v1587_v52, %v824_v3 }
 0x3ad   : > { %v1590_v45 = vmax.f32 %v1556_v20, 0.0  ;;  %v1558_v11 = vadd.f32 %v1557_v61, %v5905_v54  ;;  %v1528_v20 = vadd.f32 %v1527_v12, %v5916_v38  ;;  %v1536_v54 = vadd.f32 %v1535_v58, %v5910_v50  ;;  %v5923_v12 = vld [vmem:[#allocation56_spill] sm:$0xff] }
 0x3ae   : > { %v1586_v61 = vmax.f32 %v1546_v29, 0.0  ;;  %5918 = vst [vmem:[#allocation27_spill] sm:$0xff] %v5008_v31  ;;  %v5010_v1 = vadd.f32 %v1589_v16, %v830_v28  ;;  %v1532_v27 = vadd.f32 %v1531_v17, %v5915_v39  ;;  %v1584_v23 = vmax.f32 %v1542_v60, 0.0 }
 0x3af   : > { %v1591_v19 = vmax.f32 %v1558_v11, 0.0  ;;  %v5006_v6 = vadd.f32 %v1590_v45, %v832_v43  ;;  %v5017_v11 = vadd.f32 %v1588_v24, %v828_v21  ;;  %v1524_v58 = vadd.f32 %v1523_v41, %v5923_v12  ;;  %v5927_v41 = vld [vmem:[#allocation39_spill] sm:$0xff] }
 0x3b0   : > { %5919 = vst [vmem:[#allocation58_spill] sm:$0xff] %v5010_v1  ;;  %v1581_v50 = vmax.f32 %v1534_v5, 0.0  ;;  %v5020_v45 = vadd.f32 %v1585_v57, %v820_v9  ;;  %v1526_v52 = vadd.f32 %v1525_v2, %v5916_v38  ;;  %v1582_v3 = vmax.f32 %v1536_v54, 0.0  ;;  %v5933_v5 = vld [vmem:[#allocation32_spill] sm:$0xff] }
 0x3b1   : > { %5917 = vst [vmem:[#allocation24_spill] sm:$0xff] %v5006_v6  ;;  %v5012_v8 = vadd.f32 %v1591_v19, %v834_v18  ;;  %5922 = vst [vmem:[#allocation36_spill] sm:$0xff] %v5017_v11  ;;  %v5025_v43 = vadd.f32 %v1586_v61, %v822_v26  ;;  %v1672_v48 = vpack.c.bf16 %v5006_v6, %v5017_v11  ;;  %v1579_v24 = vmax.f32 %v1528_v20, 0.0 }
 0x3b2   : > { %5924 = vst [vmem:[#allocation28_spill] sm:$0xff] %v5020_v45  ;;  %v1518_v39 = vadd.f32 %v4956_v46, %v4891_v37  ;;  %v5031_v21 = vadd.f32 %v1583_v55, %v814_v51  ;;  %v1671_v9 = vpack.c.bf16 %v5008_v31, %v5020_v45  ;;  %v812_v2 = vadd.f32 %v5927_v41, %v5899_v33  ;;  %v5929_v46 = vld [vmem:[#allocation35_spill] sm:$0xff]  ;;  %v5951_v41 = vld [vmem:[#allocation10_spill] sm:$0xff] }
 0x3b3   : > { %5920 = vst [vmem:[#allocation30_spill] sm:$0xff] %v5012_v8  ;;  %v1673_v22 = vpack.c.bf16 %v5012_v8, %v5010_v1  ;;  %5925 = vst [vmem:[#allocation57_spill] sm:$0xff] %v5025_v43  ;;  %v1522_v17 = vadd.f32 %v4958_v35, %v5923_v12  ;;  %v1580_v29 = vmax.f32 %v1532_v27, 0.0  ;;  %v5039_v16 = vadd.f32 %v1584_v23, %v818_v59  ;;  %v5942_v27 = vld [vmem:[#allocation4_spill] sm:$0xff] }
 0x3b4   : > { %5926 = vst [vmem:[#allocation34_spill] sm:$0xff] %v5031_v21  ;;  %v808_v51 = vadd.f32 %v5929_v46, %v5897_v34  ;;  %v1514_v28 = vadd.f32 %v4952_v14, %v4889_v47  ;;  %v1577_v7 = vmax.f32 %v1524_v58, 0.0  ;;  %v5045_v60 = vadd.f32 %v1581_v50, %v810_v25  ;;  %v5943_v23 = vld [vmem:[#allocation20_spill] sm:$0xff]  ;;  %v5944_v58 = vld [vmem:[#allocation5_spill] sm:$0xff] }
 0x3b5   : > { %1802 = vmatprep.subr.bf16.mxu0 %v1673_v22  ;;  %3777 = vmatprep.subr.bf16.mxu1 %v1673_v22  ;;  %5928 = vst [vmem:[#allocation53_spill] sm:$0xff] %v5039_v16  ;;  %v1516_v33 = vadd.f32 %v4954_v30, %v4891_v37  ;;  %v1578_v35 = vmax.f32 %v1526_v52, 0.0  ;;  %v5049_v44 = vadd.f32 %v1582_v3, %v812_v2  ;;  %v1575_v18 = vmax.f32 %v1518_v39, 0.0  ;;  %v5948_v52 = vld [vmem:[#allocation2_spill] sm:$0xff]  ;;  %v5949_v3 = vld [vmem:[#allocation23_spill] sm:$0xff]  ;;  %v5952_v2 = vld [vmem:[#allocation17_spill] sm:$0xff] }
 0x3b6   : > { %1803 = vmatpush1.bf16.msra.mxu0 %v1672_v48  ;;  %3785 = vmatpush1.bf16.msra.mxu1 %v1672_v48  ;;  %5930 = vst [vmem:[#allocation37_spill] sm:$0xff] %v5045_v60  ;;  %v1670_v59 = vpack.c.bf16 %v5025_v43, %v5039_v16  ;;  %v1508_v34 = vadd.f32 %v4948_v32, %v4899_v0  ;;  %v1576_v30 = vmax.f32 %v1522_v17, 0.0  ;;  %v5935_v32 = vld [vmem:[#allocation29_spill] sm:$0xff]  ;;  %v1573_v20 = vmax.f32 %v1514_v28, 0.0 }
 0x3b7   : > { %1804 = vmatprep.subr.bf16.mxu0 %v1671_v9  ;;  %3778 = vmatprep.subr.bf16.mxu1 %v1671_v9  ;;  %5931 = vst [vmem:[#allocation51_spill] sm:$0xff] %v5049_v44  ;;  %v5056_v14 = vadd.f32 %v1579_v24, %v4976_v42  ;;  %v1669_v25 = vpack.c.bf16 %v5031_v21, %v5045_v60  ;;  %v5954_v28 = vld [vmem:[#allocation21_spill] sm:$0xff] }
 0x3b8   : > { %v802_v57 = vadd.f32 %v5933_v5, %v5895_v63  ;;  %v1512_v37 = vadd.f32 %v4950_v15, %v4889_v47  ;;  %v5064_v19 = vadd.f32 %v1580_v29, %v808_v51  ;;  %v798_v38 = vadd.f32 %v5935_v32, %v5891_v10  ;;  %v5961_v32 = vld [vmem:[#allocation12_spill] sm:$0xff] }
 0x3b9   : > { %5932 = vst [vmem:[#allocation40_spill] sm:$0xff] %v5056_v14  ;;  %v1504_v42 = vadd.f32 %v4940_v36, %v4897_v56  ;;  %v5071_v54 = vadd.f32 %v1577_v7, %v4970_v49  ;;  %v1506_v47 = vadd.f32 %v4944_v4, %v4899_v0  ;;  %v1574_v15 = vmax.f32 %v1516_v33, 0.0  ;;  %v5939_v49 = vld [vmem:[#allocation3_spill] sm:$0xff] }
 0x3ba   : > { %5934 = vst [vmem:[#allocation43_spill] sm:$0xff] %v5064_v19  ;;  %1805 = vmatpush1.bf16.msra.mxu0 %v1670_v59  ;;  %3786 = vmatpush1.bf16.msra.mxu1 %v1670_v59  ;;  %v5075_v63 = vadd.f32 %v1578_v35, %v802_v57  ;;  %v1668_v61 = vpack.c.bf16 %v5049_v44, %v5064_v19  ;;  %v1571_v55 = vmax.f32 %v1508_v34, 0.0  ;;  %v1572_v0 = vmax.f32 %v1512_v37, 0.0  ;;  %v5956_v35 = vld [vmem:[#allocation7_spill] sm:$0xff]  ;;  %v5957_v59 = vld [vmem:[#allocation18_spill] sm:$0xff] }
 0x3bb   : > { %5936 = vst [vmem:[#allocation42_spill] sm:$0xff] %v5071_v54  ;;  %1806 = vmatprep.subr.bf16.mxu0 %v1669_v25  ;;  %3779 = vmatprep.subr.bf16.mxu1 %v1669_v25  ;;  %v1498_v10 = vadd.f32 %v4931_v62, %v4905_v13  ;;  %v5082_v56 = vadd.f32 %v1575_v18, %v4966_v40  ;;  %v5945_v13 = vld [vmem:[#allocation22_spill] sm:$0xff]  ;;  %v1569_v50 = vmax.f32 %v1504_v42, 0.0  ;;  %v5946_v40 = vld [vmem:[#allocation19_spill] sm:$0xff]  ;;  %v1570_v39 = vmax.f32 %v1506_v47, 0.0 }
 0x3bc   : > { %5937 = vst [vmem:[#allocation44_spill] sm:$0xff] %v5075_v63  ;;  %v1667_v36 = vpack.c.bf16 %v5056_v14, %v5071_v54  ;;  %v792_v26 = vadd.f32 %v5940_v53, %v5939_v49  ;;  %v5088_v4 = vadd.f32 %v1576_v30, %v798_v38  ;;  %v780_v12 = vadd.f32 %v5943_v23, %v5942_v27  ;;  %v5962_v38 = vld [vmem:[#allocation11_spill] sm:$0xff]  ;;  %v5967_v53 = vld [vmem:[#allocation6_spill] sm:$0xff]  ;;  %v5969_v27 = vld [vmem:[#allocation8_spill] sm:$0xff] }
 0x3bd   : > { %5938 = vst [vmem:[#allocation38_spill] sm:$0xff] %v5082_v56  ;;  %v784_v62 = vadd.f32 %v5945_v13, %v5944_v58  ;;  %v5095_v22 = vadd.f32 %v1573_v20, %v5946_v40  ;;  %v788_v48 = vadd.f32 %v5949_v3, %v5948_v52  ;;  %v1488_v17 = vadd.f32 %v5952_v2, %v5951_v41  ;;  %v5963_v20 = vld [vmem:[#allocation16_spill] sm:$0xff]  ;;  %v3858_v3 = vld [vmem:[%s5727_s3 + $0x98] sm:$0xff]  }
 0x3be   : > { %5941 = vst [vmem:[#allocation26_spill] sm:$0xff] %v5088_v4  ;;  %1807 = vmatpush1.bf16.msra.mxu0 %v1668_v61  ;;  %3787 = vmatpush1.bf16.msra.mxu1 %v1668_v61  ;;  %v5099_v24 = vadd.f32 %v1574_v15, %v792_v26  ;;  %v1666_v9 = vpack.c.bf16 %v5075_v63, %v5088_v4  ;;  %v1567_v29 = vmax.f32 %v1498_v10, 0.0  ;;  %v5964_v61 = vld [vmem:[#allocation13_spill] sm:$0xff]  ;;  %v5970_v13 = vmov 0   ;;  %v3856_v40 = vld [vmem:[%s5727_s3 + $0x90] sm:$0xff]  }
 0x3bf   : > { %5947 = vst [vmem:[#allocation41_spill] sm:$0xff] %v5095_v22  ;;  %1808 = vmatprep.subr.bf16.mxu0 %v1667_v36  ;;  %3780 = vmatprep.subr.bf16.mxu1 %v1667_v36  ;;  %v5105_v46 = vadd.f32 %v1571_v55, %v784_v62  ;;  %v1665_v51 = vpack.c.bf16 %v5082_v56, %v5095_v22  ;;  %v1563_v57 = vmax.f32 %v1488_v17, 0.0  ;;  %v5965_v55 = vld [vmem:[#allocation9_spill] sm:$0xff]  ;;  %v5966_v36 = vld [vmem:[#allocation14_spill] sm:$0xff]  ;;  %v3854_v62 = vld [vmem:[%s5727_s3 + $0x88] sm:$0xff]  }
 0x3c0   : > { %5950 = vst [vmem:[#allocation47_spill] sm:$0xff] %v5099_v24  ;;  %v782_v7 = vadd.f32 %v5954_v28, %v5944_v58  ;;  %v5111_v33 = vadd.f32 %v1572_v0, %v788_v48  ;;  %v774_v34 = vadd.f32 %v5957_v59, %v5956_v35  ;;  %v5115_v18 = vadd.f32 %v1569_v50, %v780_v12  ;;  %v5968_v0 = vld [vmem:[#allocation15_spill] sm:$0xff]  ;;  %v3852_v12 = vld [vmem:[%s5727_s3 + $0x80] sm:$0xff]   ;;  %v3857_v52 = vld [vmem:[%s5727_s3 + $0xb0] sm:$0xff]   ;;  %v1752_v59 = vpop.permute.xlu1 %1751 }
 0x3c1   : > { %5953 = vst [vmem:[#allocation33_spill] sm:$0xff] %v5105_v46  ;;  %v764_v42 = vadd.f32 %v5962_v38, %v5961_v32  ;;  %v1660_v49 = vpack.c.bf16 %v5966_v36, %v5965_v55  ;;  %v1658_v23 = vpack.c.bf16 %v5969_v27, %v5968_v0  ;;  %v3853_v58 = vld [vmem:[%s5727_s3 + $0xa0] sm:$0xff]   ;;  %v3855_v50 = vld [vmem:[%s5727_s3 + $0xa8] sm:$0xff]   ;;  %v3859_v48 = vld [vmem:[%s5727_s3 + $0xb8] sm:$0xff]  }
 0x3c2   : > { %5955 = vst [vmem:[#allocation49_spill] sm:$0xff] %v5111_v33  ;;  %1809 = vmatpush1.bf16.msra.mxu0 %v1666_v9  ;;  %3788 = vmatpush1.bf16.msra.mxu1 %v1666_v9  ;;  %5958 = vst [vmem:[#allocation46_spill] sm:$0xff] %v5115_v18  ;;  %v5117_v25 = vadd.f32 %v1570_v39, %v782_v7  ;;  %v1664_v5 = vpack.c.bf16 %v5099_v24, %v5111_v33 }
 0x3c3   : > { %1810 = vmatprep.subr.bf16.mxu0 %v1665_v51  ;;  %3781 = vmatprep.subr.bf16.mxu1 %v1665_v51  ;;  %v5121_v37 = vadd.f32 %v1567_v29, %v774_v34  ;;  %v1663_v30 = vpack.c.bf16 %v5105_v46, %v5115_v18  ;;  %v5129_v15 = vadd.f32 %v1563_v57, %v764_v42  ;;  %v1747_v57 = vpop.permute.xlu0 %1746 }
 0x3c4   : > { %5959 = vst [vmem:[#allocation50_spill] sm:$0xff] %v5117_v25  ;;  %v1662_v47 = vpack.c.bf16 %v5117_v25, %v5963_v20 }
 0x3c5   : > { %5960 = vst [vmem:[#allocation31_spill] sm:$0xff] %v5121_v37  ;;  %v1661_v10 = vpack.c.bf16 %v5121_v37, %v5964_v61  ;;  %v1659_v26 = vpack.c.bf16 %v5129_v15, %v5967_v53 }
 0x3c6   : > { %1811 = vmatpush1.bf16.msra.mxu0 %v1664_v5  ;;  %3789 = vmatpush1.bf16.msra.mxu1 %v1664_v5 }
 0x3c7   : > { %1812 = vmatprep.subr.bf16.mxu0 %v1663_v30  ;;  %3782 = vmatprep.subr.bf16.mxu1 %v1663_v30 }
 0x3ca   : > { %1813 = vmatpush1.bf16.msra.mxu0 %v1662_v47  ;;  %3790 = vmatpush1.bf16.msra.mxu1 %v1662_v47  ;;  %v1742_v47 = vpop.permute.xlu1 %1741 }
 0x3cb   : > { %1814 = vmatprep.subr.bf16.mxu0 %v1661_v10  ;;  %3783 = vmatprep.subr.bf16.mxu1 %v1661_v10 }
 0x3ce   : > { %1815 = vmatpush1.bf16.msra.mxu0 %v1660_v49  ;;  %3791 = vmatpush1.bf16.msra.mxu1 %v1660_v49 }
 0x3cf   : > { %1816 = vmatprep.subr.bf16.mxu0 %v1659_v26  ;;  %3784 = vmatprep.subr.bf16.mxu1 %v1659_v26  ;;  %v1737_v26 = vpop.permute.xlu0 %1736 }
 0x3d2   : > { %1817 = vmatpush1.bf16.msra.mxu0 %v1658_v23  ;;  %3792 = vmatpush1.bf16.msra.mxu1 %v1658_v23 }
 0x3d5   : > { %1835 = vmatmul.mubr.bf16.vlgmr.msra.gmra.mxu0 %v3852_v12  ;;  %1875 = vmatmul.mubr.bf16.vlgmr.msra.gmra.mxu1 %v3853_v58 }
 0x3d6   : > { %1844 = vmatprep.mubr.bf16.mxu0 %v5970_v13  ;;  %1884 = vmatprep.mubr.bf16.mxu1 %v5970_v13 }
 0x3dd   : > { %1845 = vmatmul.mubr.bf16.gmra.mxu0 %v3854_v62  ;;  %1885 = vmatmul.mubr.bf16.gmra.mxu1 %v3855_v50  ;;  %v1732_v50 = vpop.permute.xlu1 %1731 }
 0x3de   : > { %1854 = vmatprep.mubr.bf16.mxu0 %v5970_v13  ;;  %1894 = vmatprep.mubr.bf16.mxu1 %v5970_v13 }
 0x3e1   : > { %v1722_v18 = vpop.permute.xlu1 %1721 }
 0x3e5   : > { %1855 = vmatmul.mubr.bf16.gmra.mxu0 %v3856_v40  ;;  %1895 = vmatmul.mubr.bf16.gmra.mxu1 %v3857_v52  ;;  %v1712_v11 = vpop.permute.xlu1 %1711 }
 0x3e6   : > { %1864 = vmatprep.mubr.bf16.mxu0 %v5970_v13  ;;  %1904 = vmatprep.mubr.bf16.mxu1 %v5970_v13 }
 0x3ed   : > { %1865 = vmatmul.mubr.bf16.gmra.mxu0 %v3858_v3  ;;  %1905 = vmatmul.mubr.bf16.gmra.mxu1 %v3859_v48  ;;  %v1727_v3 = vpop.permute.xlu0 %1726 }
 0x3ee   : > { %2157 = vmatprep.mubr.bf16.mxu1 %v5970_v13  ;;  %2480 = vmatprep.mubr.bf16.mxu0 %v5970_v13 }
 0x3f1   : > { %v1717_v46 = vpop.permute.xlu0 %1716 }
 0x495   : > { %v5171_v39 = vpop.f32.mrf.mxu0  ;;  %v5173_v9 = vpop.f32.mrf.mxu1 }
 0x497   : > { %v5175_v41 = vpop.f32.mrf.mxu0  ;;  %v5177_v2 = vpop.f32.mrf.mxu1 }
 0x499   : > { %v5179_v17 = vpop.f32.mrf.mxu0  ;;  %v5181_v29 = vpop.f32.mrf.mxu1 }
 0x49b   : > { %v5183_v51 = vpop.f32.mrf.mxu0  ;;  %v1882_v28 = vpop.f32.mrf.mxu1 }
 0x49c   : > { %v1883_v61 = vadd.f32 %v1882_v28, %v1722_v18 }
 0x49d   : > { %v5185_v7 = vpop.f32.mrf.mxu0  ;;  %v1886_v35 = vpop.f32.mrf.mxu1 }
 0x49f   : > { %v5187_v34 = vpop.f32.mrf.mxu0  ;;  %v1888_v5 = vpop.f32.mrf.mxu1 }
 0x4a0   : > { %v1889_v6 = vadd.f32 %v1888_v5, %v1727_v3  ;;  %v1934_v5 = vmax.f32 %v1883_v61, 0.0 }
 0x4a1   : > { %v5189_v30 = vpop.f32.mrf.mxu0  ;;  %v1890_v32 = vpop.f32.mrf.mxu1 }
 0x4a3   : > { %v5191_v38 = vpop.f32.mrf.mxu0  ;;  %v1892_v42 = vpop.f32.mrf.mxu1 }
 0x4a4   : > { %v1893_v16 = vadd.f32 %v1892_v42, %v1732_v50 }
 0x4a5   : > { %v5193_v10 = vpop.f32.mrf.mxu0  ;;  %v1896_v49 = vpop.f32.mrf.mxu1 }
 0x4a6   : > { %v1897_v8 = vadd.f32 %v1896_v49, %v1737_v26 }
 0x4a7   : > { %v5195_v23 = vpop.f32.mrf.mxu0  ;;  %v1898_v12 = vpop.f32.mrf.mxu1 }
 0x4a8   : > { %v1899_v19 = vadd.f32 %v1898_v12, %v1737_v26  ;;  %v1938_v12 = vmax.f32 %v1893_v16, 0.0 }
 0x4a9   : > { %v5197_v58 = vpop.f32.mrf.mxu0  ;;  %v1900_v62 = vpop.f32.mrf.mxu1 }
 0x4aa   : > { %v1901_v44 = vadd.f32 %v1900_v62, %v1742_v47  ;;  %v1940_v37 = vmax.f32 %v1899_v19, 0.0  ;;  %v1881_v19 = vadd.f32 %v5181_v29, %v1722_v18 }
 0x4ab   : > { %v5199_v40 = vpop.f32.mrf.mxu0  ;;  %v1902_v52 = vpop.f32.mrf.mxu1 }
 0x4ac   : > { %v1903_v24 = vadd.f32 %v1902_v52, %v1742_v47  ;;  %v1933_v28 = vmax.f32 %v1881_v19, 0.0 }
 0x4ad   : > { %v1906_v48 = vpop.f32.mrf.mxu1  ;;  %v5201_v20 = vpop.f32.mrf.mxu0 }
 0x4ae   : > { %v1907_v56 = vadd.f32 %v1906_v48, %v1747_v57  ;;  %v1942_v21 = vmax.f32 %v1903_v24, 0.0 }
 0x4af   : > { %v1908_v25 = vpop.f32.mrf.mxu1  ;;  %v1868_v63 = vpop.f32.mrf.mxu0 }
 0x4b0   : > { %v1909_v22 = vadd.f32 %v1908_v25, %v1747_v57  ;;  %v1943_v1 = vmax.f32 %v1907_v56, 0.0  ;;  %v1707_v25 = vpop.permute.xlu0 %1706  ;;  %v1941_v57 = vmax.f32 %v1901_v44, 0.0  ;;  %v1702_v56 = vpop.permute.xlu1 %1701 }
 0x4b1   : > { %v1910_v33 = vpop.f32.mrf.mxu1  ;;  %v1870_v31 = vpop.f32.mrf.mxu0  ;;  %v1867_v61 = vadd.f32 %v5201_v20, %v1707_v25 }
 0x4b2   : > { %v1911_v4 = vadd.f32 %v1910_v33, %v1752_v59  ;;  %v1944_v43 = vmax.f32 %v1909_v22, 0.0  ;;  %v1891_v33 = vadd.f32 %v1890_v32, %v1732_v50  ;;  %v1936_v22 = vmax.f32 %v1889_v6, 0.0 }
 0x4b3   : > { %v1912_v54 = vpop.f32.mrf.mxu1  ;;  %v1872_v24 = vpop.f32.mrf.mxu0  ;;  %v1871_v6 = vadd.f32 %v1870_v31, %v1712_v11  ;;  %v1863_v32 = vadd.f32 %v5199_v40, %v1702_v56  ;;  %v1927_v40 = vmax.f32 %v1867_v61, 0.0 }
 0x4b4   : > { %v1913_v14 = vadd.f32 %v1912_v54, %v1752_v59  ;;  %v1945_v60 = vmax.f32 %v1911_v4, 0.0  ;;  %v1994_v54 = vpack.c.bf16 %v1942_v21, %v1940_v37  ;;  %v1887_v4 = vadd.f32 %v1886_v35, %v1727_v3  ;;  %v1692_v29 = vpop.permute.xlu1 %1691 }
 0x4b5   : > { %v1939_v59 = vmax.f32 %v1897_v8, 0.0  ;;  %v1992_v44 = vpack.c.bf16 %v1938_v12, %v1936_v22  ;;  %v1877_v21 = vadd.f32 %v5173_v9, %v1717_v46  ;;  %v1869_v37 = vadd.f32 %v1868_v63, %v1707_v25 }
 0x4b6   : > { %v1946_v45 = vmax.f32 %v1913_v14, 0.0  ;;  %v1995_v48 = vpack.c.bf16 %v1945_v60, %v1943_v1  ;;  %v1879_v14 = vadd.f32 %v5177_v2, %v1717_v46  ;;  %v1873_v1 = vadd.f32 %v1872_v24, %v1712_v11  ;;  %v1697_v60 = vpop.permute.xlu0 %1696 }
 0x4b7   : > { %v1935_v16 = vmax.f32 %v1887_v4, 0.0  ;;  %v1931_v42 = vmax.f32 %v1877_v21, 0.0  ;;  %v1859_v47 = vadd.f32 %v5195_v23, %v1697_v60  ;;  %v1928_v46 = vmax.f32 %v1869_v37, 0.0  ;;  %v3866_v21 = vld [vmem:[%s5727_s3 + $0xf0] sm:$0xff]  }
 0x4b8   : > { %v1996_v52 = vpack.c.bf16 %v1946_v45, %v1944_v43  ;;  %v1937_v45 = vmax.f32 %v1891_v33, 0.0  ;;  %v1993_v43 = vpack.c.bf16 %v1941_v57, %v1939_v59  ;;  %v1932_v8 = vmax.f32 %v1879_v14, 0.0  ;;  %v1682_v23 = vpop.permute.xlu1 %1681 }
 0x4b9   : > { %v1930_v18 = vmax.f32 %v1873_v1, 0.0  ;;  %v1989_v49 = vpack.c.bf16 %v1933_v28, %v1931_v42  ;;  %v1861_v63 = vadd.f32 %v5197_v58, %v1702_v56  ;;  %v1929_v26 = vmax.f32 %v1871_v6, 0.0  ;;  %v3864_v1 = vld [vmem:[%s5727_s3 + $0xe0] sm:$0xff]  }
 0x4ba   : > { %2125 = vmatprep.subr.bf16.mxu1 %v1996_v52  ;;  %v1991_v2 = vpack.c.bf16 %v1937_v45, %v1935_v16  ;;  %v1990_v35 = vpack.c.bf16 %v1934_v5, %v1932_v8  ;;  %v1687_v9 = vpop.permute.xlu0 %1686  ;;  %v1853_v31 = vadd.f32 %v5191_v38, %v1692_v29  ;;  %v1926_v11 = vmax.f32 %v1863_v32, 0.0  ;;  %v3862_v5 = vld [vmem:[%s5727_s3 + $0xd0] sm:$0xff]   ;;  %v3867_v16 = vld [vmem:[%s5727_s3 + $0xf8] sm:$0xff]  }
 0x4bb   : > { %2126 = vmatpush1.bf16.msra.mxu1 %v1995_v48  ;;  %v1988_v62 = vpack.c.bf16 %v1930_v18, %v1928_v46  ;;  %v1857_v50 = vadd.f32 %v5193_v10, %v1697_v60  ;;  %v1849_v20 = vadd.f32 %v5187_v34, %v1687_v9  ;;  %v1924_v3 = vmax.f32 %v1859_v47, 0.0  ;;  %v3865_v60 = vld [vmem:[%s5727_s3 + $0xe8] sm:$0xff]  }
 0x4bc   : > { %2127 = vmatprep.subr.bf16.mxu1 %v1994_v54  ;;  %v1851_v52 = vadd.f32 %v5189_v30, %v1692_v29  ;;  %v1925_v25 = vmax.f32 %v1861_v63, 0.0  ;;  %v1987_v33 = vpack.c.bf16 %v1929_v26, %v1927_v40  ;;  %v1843_v58 = vadd.f32 %v5183_v51, %v1682_v23  ;;  %v5253_v37 = vpop.permute.xlu1 %2074 }
 0x4bd   : > { %v1922_v57 = vmax.f32 %v1853_v31, 0.0  ;;  %v1986_v48 = vpack.c.bf16 %v1926_v11, %v1924_v3  ;;  %v1847_v12 = vadd.f32 %v5185_v7, %v1687_v9  ;;  %v1923_v54 = vmax.f32 %v1857_v50, 0.0 }
 0x4be   : > { %v1677_v38 = vpop.permute.xlu0 %1676  ;;  %v1920_v4 = vmax.f32 %v1849_v20, 0.0  ;;  %v1841_v34 = vadd.f32 %v5179_v17, %v1682_v23  ;;  %v1921_v59 = vmax.f32 %v1851_v52, 0.0  ;;  %v1918_v30 = vmax.f32 %v1843_v58, 0.0  ;;  %v3860_v17 = vld [vmem:[%s5727_s3 + $0xc0] sm:$0xff]  }
 0x4bf   : > { %2128 = vmatpush1.bf16.msra.mxu1 %v1993_v43  ;;  %v1839_v10 = vadd.f32 %v5175_v41, %v1677_v38  ;;  %v1985_v24 = vpack.c.bf16 %v1925_v25, %v1923_v54  ;;  %v1837_v22 = vadd.f32 %v5171_v39, %v1677_v38  ;;  %v1919_v51 = vmax.f32 %v1847_v12, 0.0  ;;  %v3861_v39 = vld [vmem:[%s5727_s3 + $0xc8] sm:$0xff]  }
 0x4c0   : > { %2129 = vmatprep.subr.bf16.mxu1 %v1992_v44  ;;  %v1984_v14 = vpack.c.bf16 %v1922_v57, %v1920_v4  ;;  %v1917_v19 = vmax.f32 %v1841_v34, 0.0  ;;  %v3863_v44 = vld [vmem:[%s5727_s3 + $0xd8] sm:$0xff]  }
 0x4c1   : > { %v1916_v56 = vmax.f32 %v1839_v10, 0.0  ;;  %v1983_v7 = vpack.c.bf16 %v1921_v59, %v1919_v51  ;;  %v1915_v43 = vmax.f32 %v1837_v22, 0.0 }
 0x4c2   : > { %v5251_v8 = vpop.permute.xlu0 %2069 }
 0x4c3   : > { %2130 = vmatpush1.bf16.msra.mxu1 %v1991_v2  ;;  %v1982_v45 = vpack.c.bf16 %v1918_v30, %v1916_v56  ;;  %v1981_v41 = vpack.c.bf16 %v1917_v19, %v1915_v43  ;;  %v5257_v2 = vpop.permute.xlu1 %2064 }
 0x4c4   : > { %2131 = vmatprep.subr.bf16.mxu1 %v1990_v35 }
 0x4c6   : > { %v5255_v28 = vpop.permute.xlu0 %2059 }
 0x4c7   : > { %2132 = vmatpush1.bf16.msra.mxu1 %v1989_v49  ;;  %v5261_v35 = vpop.permute.xlu1 %2054 }
 0x4c8   : > { %2133 = vmatprep.subr.bf16.mxu1 %v1988_v62 }
 0x4ca   : > { %v5259_v6 = vpop.permute.xlu0 %2049 }
 0x4cb   : > { %2134 = vmatpush1.bf16.msra.mxu1 %v1987_v33  ;;  %v5265_v18 = vpop.permute.xlu1 %2044 }
 0x4cc   : > { %2135 = vmatprep.subr.bf16.mxu1 %v1986_v48 }
 0x4ce   : > { %v5263_v32 = vpop.permute.xlu0 %2039 }
 0x4cf   : > { %2136 = vmatpush1.bf16.msra.mxu1 %v1985_v24  ;;  %v5269_v42 = vpop.permute.xlu1 %2034 }
 0x4d0   : > { %2137 = vmatprep.subr.bf16.mxu1 %v1984_v14 }
 0x4d2   : > { %v5267_v29 = vpop.permute.xlu0 %2029 }
 0x4d3   : > { %2138 = vmatpush1.bf16.msra.mxu1 %v1983_v7  ;;  %v5273_v47 = vpop.permute.xlu1 %2024 }
 0x4d4   : > { %2139 = vmatprep.subr.bf16.mxu1 %v1982_v45 }
 0x4d6   : > { %v5271_v61 = vpop.permute.xlu0 %2019 }
 0x4d7   : > { %2140 = vmatpush1.bf16.msra.mxu1 %v1981_v41  ;;  %v2015_v9 = vpop.permute.xlu1 %2014 }
 0x4da   : > { %2158 = vmatmul.mubr.bf16.vlgmr.msra.gmra.mxu1 %v3860_v17  ;;  %v2010_v46 = vpop.permute.xlu0 %2009 }
 0x4db   : > { %2167 = vmatprep.mubr.bf16.mxu1 %v5970_v13  ;;  %v2005_v11 = vpop.permute.xlu1 %2004 }
 0x4de   : > { %v2000_v63 = vpop.permute.xlu0 %1999 }
 0x4e2   : > { %2168 = vmatmul.mubr.bf16.gmra.mxu1 %v3861_v39 }
 0x4e3   : > { %2177 = vmatprep.mubr.bf16.mxu1 %v5970_v13 }
 0x4ea   : > { %2178 = vmatmul.mubr.bf16.gmra.mxu1 %v3862_v5 }
 0x4eb   : > { %2187 = vmatprep.mubr.bf16.mxu1 %v5970_v13 }
 0x4f2   : > { %2188 = vmatmul.mubr.bf16.gmra.mxu1 %v3863_v44 }
 0x4f3   : > { %2197 = vmatprep.mubr.bf16.mxu1 %v5970_v13 }
 0x4fa   : > { %2198 = vmatmul.mubr.bf16.gmra.mxu1 %v3864_v1 }
 0x4fb   : > { %2207 = vmatprep.mubr.bf16.mxu1 %v5970_v13 }
 0x502   : > { %2208 = vmatmul.mubr.bf16.gmra.mxu1 %v3865_v60 }
 0x503   : > { %2217 = vmatprep.mubr.bf16.mxu1 %v5970_v13 }
 0x50a   : > { %2218 = vmatmul.mubr.bf16.gmra.mxu1 %v3866_v21 }
 0x50b   : > { %2227 = vmatprep.mubr.bf16.mxu1 %v5970_v13 }
 0x512   : > { %2228 = vmatmul.mubr.bf16.gmra.mxu1 %v3867_v16 }
 0x513   : > { %2835 = vmatprep.mubr.bf16.mxu1 %v5970_v13 }
 0x59a   : > { %v2159_v49 = vpop.f32.mrf.mxu1 }
 0x59b   : > { %v2160_v31 = vadd.f32 %v2159_v49, %v2000_v63 }
 0x59c   : > { %v2161_v26 = vpop.f32.mrf.mxu1 }
 0x59d   : > { %v2162_v50 = vadd.f32 %v2161_v26, %v2000_v63  ;;  %v2238_v3 = vmax.f32 %v2160_v31, 0.0 }
 0x59e   : > { %v2163_v62 = vpop.f32.mrf.mxu1 }
 0x59f   : > { %v2164_v40 = vadd.f32 %v2163_v62, %v2005_v11  ;;  %v2239_v33 = vmax.f32 %v2162_v50, 0.0 }
 0x5a0   : > { %v2165_v20 = vpop.f32.mrf.mxu1 }
 0x5a1   : > { %v2240_v23 = vmax.f32 %v2164_v40, 0.0  ;;  %v2166_v52 = vadd.f32 %v2165_v20, %v2005_v11 }
 0x5a2   : > { %v2169_v25 = vpop.f32.mrf.mxu1 }
 0x5a3   : > { %v5275_v58 = vpack.c.bf16 %v2240_v23, %v2238_v3  ;;  %v2241_v57 = vmax.f32 %v2166_v52, 0.0  ;;  %v2170_v12 = vadd.f32 %v2169_v25, %v2010_v46 }
 0x5a4   : > { %v2171_v48 = vpop.f32.mrf.mxu1 }
 0x5a5   : > { %v5277_v38 = vpack.c.bf16 %v2241_v57, %v2239_v33  ;;  %v2172_v10 = vadd.f32 %v2171_v48, %v2010_v46  ;;  %v2242_v59 = vmax.f32 %v2170_v12, 0.0 }
 0x5a6   : > { %v2173_v54 = vpop.f32.mrf.mxu1 }
 0x5a7   : > { %v2174_v4 = vadd.f32 %v2173_v54, %v2015_v9  ;;  %v2243_v22 = vmax.f32 %v2172_v10, 0.0 }
 0x5a8   : > { %v2175_v34 = vpop.f32.mrf.mxu1 }
 0x5a9   : > { %v2244_v24 = vmax.f32 %v2174_v4, 0.0  ;;  %v2176_v30 = vadd.f32 %v2175_v34, %v2015_v9 }
 0x5aa   : > { %v5279_v14 = vpop.f32.mrf.mxu1 }
 0x5ab   : > { %v5281_v51 = vpack.c.bf16 %v2244_v24, %v2242_v59  ;;  %v2245_v56 = vmax.f32 %v2176_v30, 0.0 }
 0x5ac   : > { %v5283_v19 = vpop.f32.mrf.mxu1 }
 0x5ad   : > { %v5285_v7 = vpack.c.bf16 %v2245_v56, %v2243_v22 }
 0x5ae   : > { %v5287_v45 = vpop.f32.mrf.mxu1 }
 0x5b0   : > { %v5289_v43 = vpop.f32.mrf.mxu1 }
 0x5b2   : > { %v5291_v41 = vpop.f32.mrf.mxu1 }
 0x5b4   : > { %v2191_v17 = vpop.f32.mrf.mxu1 }
 0x5b6   : > { %v2193_v39 = vpop.f32.mrf.mxu1 }
 0x5b8   : > { %v2195_v5 = vpop.f32.mrf.mxu1 }
 0x5ba   : > { %v2199_v44 = vpop.f32.mrf.mxu1 }
 0x5bc   : > { %v2201_v1 = vpop.f32.mrf.mxu1 }
 0x5be   : > { %v2203_v60 = vpop.f32.mrf.mxu1 }
 0x5c0   : > { %v2205_v21 = vpop.f32.mrf.mxu1 }
 0x5c2   : > { %v2209_v16 = vpop.f32.mrf.mxu1 }
 0x5c4   : > { %v2211_v46 = vpop.f32.mrf.mxu1 }
 0x5c5   : > { %v2212_v30 = vadd.f32 %v2211_v46, %v5259_v6  ;;  %v2204_v46 = vadd.f32 %v2203_v60, %v5265_v18 }
 0x5c6   : > { %v2213_v9 = vpop.f32.mrf.mxu1 }
 0x5c7   : > { %v2214_v56 = vadd.f32 %v2213_v9, %v5261_v35 }
 0x5c8   : > { %v2215_v49 = vpop.f32.mrf.mxu1 }
 0x5c9   : > { %v2216_v54 = vadd.f32 %v2215_v49, %v5261_v35  ;;  %v2210_v49 = vadd.f32 %v2209_v16, %v5259_v6  ;;  %v2196_v35 = vadd.f32 %v2195_v5, %v5269_v42  ;;  %v2192_v6 = vadd.f32 %v2191_v17, %v5267_v29 }
 0x5ca   : > { %v2219_v63 = vpop.f32.mrf.mxu1  ;;  %v2190_v5 = vadd.f32 %v5291_v41, %v5267_v29 }
 0x5cb   : > { %v2220_v59 = vadd.f32 %v2219_v63, %v5255_v28  ;;  %v2259_v63 = vmax.f32 %v2212_v30, 0.0  ;;  %v2253_v60 = vmax.f32 %v2196_v35, 0.0  ;;  %v2251_v17 = vmax.f32 %v2192_v6, 0.0 }
 0x5cc   : > { %v2221_v26 = vpop.f32.mrf.mxu1 }
 0x5cd   : > { %v2222_v33 = vadd.f32 %v2221_v26, %v5255_v28  ;;  %v2202_v28 = vadd.f32 %v2201_v1, %v5263_v32  ;;  %v2194_v1 = vadd.f32 %v2193_v39, %v5269_v42  ;;  %v2184_v42 = vadd.f32 %v5287_v45, %v5273_v47  ;;  %v3875_v45 = vld [vmem:[%s5727_s3 + $0x138] sm:$0xff]  }
 0x5ce   : > { %v2223_v31 = vpop.f32.mrf.mxu1 }
 0x5cf   : > { %v2224_v48 = vadd.f32 %v2223_v31, %v5257_v2  ;;  %v2263_v22 = vmax.f32 %v2222_v33, 0.0  ;;  %v2255_v16 = vmax.f32 %v2202_v28, 0.0  ;;  %v2252_v39 = vmax.f32 %v2194_v1, 0.0 }
 0x5d0   : > { %v2225_v11 = vpop.f32.mrf.mxu1  ;;  %v2248_v41 = vmax.f32 %v2184_v42, 0.0 }
 0x5d1   : > { %v2226_v20 = vadd.f32 %v2225_v11, %v5257_v2  ;;  %v2264_v26 = vmax.f32 %v2224_v48, 0.0  ;;  %v2261_v2 = vmax.f32 %v2216_v54, 0.0  ;;  %v2311_v48 = vpack.c.bf16 %v2253_v60, %v2251_v17 }
 0x5d2   : > { %v2229_v62 = vpop.f32.mrf.mxu1 }
 0x5d3   : > { %v2230_v52 = vadd.f32 %v2229_v62, %v5251_v8  ;;  %v2265_v10 = vmax.f32 %v2226_v20, 0.0  ;;  %v2262_v62 = vmax.f32 %v2220_v59, 0.0  ;;  %v2315_v20 = vpack.c.bf16 %v2261_v2, %v2259_v63  ;;  %v5360_v59 = vpop.permute.xlu1 %2397 }
 0x5d4   : > { %v2231_v50 = vpop.f32.mrf.mxu1 }
 0x5d5   : > { %v2232_v3 = vadd.f32 %v2231_v50, %v5251_v8  ;;  %v2266_v24 = vmax.f32 %v2230_v52, 0.0  ;;  %v2317_v31 = vpack.c.bf16 %v2265_v10, %v2263_v22  ;;  %v2260_v50 = vmax.f32 %v2214_v56, 0.0 }
 0x5d6   : > { %v2233_v40 = vpop.f32.mrf.mxu1 }
 0x5d7   : > { %v2234_v23 = vadd.f32 %v2233_v40, %v5253_v37  ;;  %v2267_v4 = vmax.f32 %v2232_v3, 0.0  ;;  %v2316_v40 = vpack.c.bf16 %v2264_v26, %v2262_v62  ;;  %v2258_v3 = vmax.f32 %v2210_v49, 0.0  ;;  %v5364_v30 = vpop.permute.xlu1 %2387 }
 0x5d8   : > { %v2235_v25 = vpop.f32.mrf.mxu1 }
 0x5d9   : > { %v2236_v57 = vadd.f32 %v2235_v25, %v5253_v37  ;;  %v2268_v12 = vmax.f32 %v2234_v23, 0.0  ;;  %v2206_v37 = vadd.f32 %v2205_v21, %v5265_v18  ;;  %v2200_v21 = vadd.f32 %v2199_v44, %v5263_v32 }
 0x5da   : > { %v2256_v23 = vmax.f32 %v2204_v46, 0.0  ;;  %v2314_v52 = vpack.c.bf16 %v2260_v50, %v2258_v3  ;;  %v2186_v18 = vadd.f32 %v5289_v43, %v5273_v47  ;;  %v2182_v32 = vadd.f32 %v5283_v19, %v5271_v61  ;;  %v3869_v47 = vld [vmem:[%s5727_s3 + $0x108] sm:$0xff]  }
 0x5db   : > { %v2269_v34 = vmax.f32 %v2236_v57, 0.0  ;;  %v2318_v11 = vpack.c.bf16 %v2268_v12, %v2266_v24  ;;  %v2257_v9 = vmax.f32 %v2206_v37, 0.0  ;;  %v2254_v33 = vmax.f32 %v2200_v21, 0.0 }
 0x5dc   : > { %v2249_v57 = vmax.f32 %v2186_v18, 0.0  ;;  %v2180_v43 = vadd.f32 %v5279_v14, %v5271_v61  ;;  %v2250_v12 = vmax.f32 %v2190_v5, 0.0  ;;  %v2247_v29 = vmax.f32 %v2182_v32, 0.0  ;;  %v3868_v61 = vld [vmem:[%s5727_s3 + $0x100] sm:$0xff]  }
 0x5dd   : > { %v2319_v8 = vpack.c.bf16 %v2269_v34, %v2267_v4  ;;  %v2313_v25 = vpack.c.bf16 %v2257_v9, %v2255_v16  ;;  %v2312_v44 = vpack.c.bf16 %v2256_v23, %v2254_v33  ;;  %v3872_v14 = vld [vmem:[%s5727_s3 + $0x120] sm:$0xff]   ;;  %v5358_v34 = vpop.permute.xlu0 %2392 }
 0x5de   : > { %v2310_v54 = vpack.c.bf16 %v2252_v39, %v2250_v12  ;;  %v2309_v10 = vpack.c.bf16 %v2249_v57, %v2247_v29  ;;  %v2246_v19 = vmax.f32 %v2180_v43, 0.0 }
 0x5df   : > { %2448 = vmatprep.subr.bf16.mxu0 %v2319_v8  ;;  %v5368_v8 = vpop.permute.xlu1 %2377 }
 0x5e0   : > { %2449 = vmatpush1.bf16.msra.mxu0 %v2318_v11  ;;  %v2308_v4 = vpack.c.bf16 %v2248_v41, %v2246_v19 }
 0x5e1   : > { %2450 = vmatprep.subr.bf16.mxu0 %v2317_v31  ;;  %v5362_v24 = vpop.permute.xlu0 %2382 }
 0x5e3   : > { %v5372_v26 = vpop.permute.xlu1 %2367 }
 0x5e4   : > { %2451 = vmatpush1.bf16.msra.mxu0 %v2316_v40 }
 0x5e5   : > { %2452 = vmatprep.subr.bf16.mxu0 %v2315_v20  ;;  %v5366_v22 = vpop.permute.xlu0 %2372 }
 0x5e7   : > { %v5376_v37 = vpop.permute.xlu1 %2357 }
 0x5e8   : > { %2453 = vmatpush1.bf16.msra.mxu0 %v2314_v52 }
 0x5e9   : > { %2454 = vmatprep.subr.bf16.mxu0 %v2313_v25  ;;  %v5370_v56 = vpop.permute.xlu0 %2362 }
 0x5eb   : > { %v5380_v31 = vpop.permute.xlu1 %2347 }
 0x5ec   : > { %2455 = vmatpush1.bf16.msra.mxu0 %v2312_v44 }
 0x5ed   : > { %2456 = vmatprep.subr.bf16.mxu0 %v2311_v48  ;;  %v5374_v11 = vpop.permute.xlu0 %2352 }
 0x5ef   : > { %v2338_v62 = vpop.permute.xlu1 %2337 }
 0x5f0   : > { %2457 = vmatpush1.bf16.msra.mxu0 %v2310_v54 }
 0x5f1   : > { %2458 = vmatprep.subr.bf16.mxu0 %v2309_v10  ;;  %v5378_v2 = vpop.permute.xlu0 %2342  ;;  %v5971_v10 = vld [vmem:[#allocation13_spill] sm:$0xff] }
 0x5f3   : > { %v2328_v35 = vpop.permute.xlu1 %2327 }
 0x5f4   : > { %2459 = vmatpush1.bf16.msra.mxu0 %v2308_v4 }
 0x5f5   : > { %2460 = vmatprep.subr.bf16.mxu0 %v5285_v7  ;;  %v3874_v7 = vld [vmem:[%s5727_s3 + $0x130] sm:$0xff]   ;;  %v2333_v49 = vpop.permute.xlu0 %2332 }
 0x5f8   : > { %2461 = vmatpush1.bf16.msra.mxu0 %v5281_v51  ;;  %v3873_v51 = vld [vmem:[%s5727_s3 + $0x128] sm:$0xff]  }
 0x5f9   : > { %2462 = vmatprep.subr.bf16.mxu0 %v5277_v38  ;;  %v3870_v38 = vld [vmem:[%s5727_s3 + $0x110] sm:$0xff]   ;;  %v2323_v28 = vpop.permute.xlu0 %2322 }
 0x5fc   : > { %2463 = vmatpush1.bf16.msra.mxu0 %v5275_v58  ;;  %v3871_v58 = vld [vmem:[%s5727_s3 + $0x118] sm:$0xff]  }
 0x5ff   : > { %2481 = vmatmul.mubr.bf16.vlgmr.msra.gmra.mxu0 %v3868_v61  ;;  %v5972_v61 = vld [vmem:[#allocation31_spill] sm:$0xff] }
 0x600   : > { %2490 = vmatprep.mubr.bf16.mxu0 %v5970_v13 }
 0x607   : > { %2491 = vmatmul.mubr.bf16.gmra.mxu0 %v3869_v47 }
 0x608   : > { %2500 = vmatprep.mubr.bf16.mxu0 %v5970_v13 }
 0x60f   : > { %2501 = vmatmul.mubr.bf16.gmra.mxu0 %v3870_v38 }
 0x610   : > { %2510 = vmatprep.mubr.bf16.mxu0 %v5970_v13 }
 0x617   : > { %2511 = vmatmul.mubr.bf16.gmra.mxu0 %v3871_v58 }
 0x618   : > { %2520 = vmatprep.mubr.bf16.mxu0 %v5970_v13 }
 0x61f   : > { %2521 = vmatmul.mubr.bf16.gmra.mxu0 %v3872_v14 }
 0x620   : > { %2530 = vmatprep.mubr.bf16.mxu0 %v5970_v13 }
 0x627   : > { %2531 = vmatmul.mubr.bf16.gmra.mxu0 %v3873_v51 }
 0x628   : > { %2540 = vmatprep.mubr.bf16.mxu0 %v5970_v13 }
 0x62f   : > { %2541 = vmatmul.mubr.bf16.gmra.mxu0 %v3874_v7 }
 0x630   : > { %2550 = vmatprep.mubr.bf16.mxu0 %v5970_v13 }
 0x637   : > { %2551 = vmatmul.mubr.bf16.gmra.mxu0 %v3875_v45 }
 0x638   : > { %3158 = vmatprep.mubr.bf16.mxu0 %v5970_v13 }
 0x6bf   : > { %v2482_v63 = vpop.f32.mrf.mxu0 }
 0x6c0   : > { %v2483_v46 = vadd.f32 %v2482_v63, %v2323_v28 }
 0x6c1   : > { %v2484_v50 = vpop.f32.mrf.mxu0 }
 0x6c2   : > { %v2485_v40 = vadd.f32 %v2484_v50, %v2323_v28  ;;  %v2561_v20 = vmax.f32 %v2483_v46, 0.0 }
 0x6c3   : > { %v2486_v9 = vpop.f32.mrf.mxu0 }
 0x6c4   : > { %v2487_v21 = vadd.f32 %v2486_v9, %v2328_v35  ;;  %v2562_v6 = vmax.f32 %v2485_v40, 0.0  ;;  %v5383_v52 = vadd.f32 %v2561_v20, %v5968_v0 }
 0x6c5   : > { %v2488_v3 = vpop.f32.mrf.mxu0 }
 0x6c6   : > { %v2563_v16 = vmax.f32 %v2487_v21, 0.0  ;;  %v2489_v1 = vadd.f32 %v2488_v3, %v2328_v35  ;;  %v5389_v33 = vadd.f32 %v2562_v6, %v5967_v53 }
 0x6c7   : > { %v2492_v23 = vpop.f32.mrf.mxu0 }
 0x6c8   : > { %v5386_v18 = vadd.f32 %v2563_v16, %v5969_v27  ;;  %v2564_v60 = vmax.f32 %v2489_v1, 0.0  ;;  %v2493_v25 = vadd.f32 %v2492_v23, %v2333_v49 }
 0x6c9   : > { %v2494_v5 = vpop.f32.mrf.mxu0 }
 0x6ca   : > { %v2659_v32 = vpack.c.bf16 %v5386_v18, %v5383_v52  ;;  %v5394_v17 = vadd.f32 %v2564_v60, %v5129_v15  ;;  %v2495_v42 = vadd.f32 %v2494_v5, %v2333_v49  ;;  %v2565_v44 = vmax.f32 %v2493_v25, 0.0  ;;  %v3879_v52 = vld [vmem:[%s5727_s3 + $0x158] sm:$0xff]   ;;  %v3880_v18 = vld [vmem:[%s5727_s3 + $0x160] sm:$0xff]  }
 0x6cb   : > { %v2496_v39 = vpop.f32.mrf.mxu0 }
 0x6cc   : > { %v2497_v0 = vadd.f32 %v2496_v39, %v2338_v62  ;;  %v2660_v27 = vpack.c.bf16 %v5394_v17, %v5389_v33  ;;  %v2566_v48 = vmax.f32 %v2495_v42, 0.0  ;;  %v5401_v53 = vadd.f32 %v2565_v44, %v5965_v55  ;;  %v3878_v33 = vld [vmem:[%s5727_s3 + $0x150] sm:$0xff]  }
 0x6cd   : > { %v2498_v57 = vpop.f32.mrf.mxu0  ;;  %v3882_v17 = vld [vmem:[%s5727_s3 + $0x170] sm:$0xff]  }
 0x6ce   : > { %v2567_v43 = vmax.f32 %v2497_v0, 0.0  ;;  %v2499_v12 = vadd.f32 %v2498_v57, %v2338_v62  ;;  %v5409_v19 = vadd.f32 %v2566_v48, %v5971_v10 }
 0x6cf   : > { %v5398_v29 = vpop.f32.mrf.mxu0 }
 0x6d0   : > { %v5404_v41 = vadd.f32 %v2567_v43, %v5966_v36  ;;  %v2568_v15 = vmax.f32 %v2499_v12, 0.0 }
 0x6d1   : > { %v5406_v54 = vpop.f32.mrf.mxu0 }
 0x6d2   : > { %v2661_v4 = vpack.c.bf16 %v5404_v41, %v5401_v53  ;;  %v5414_v47 = vadd.f32 %v2568_v15, %v5972_v61  ;;  %v3877_v53 = vld [vmem:[%s5727_s3 + $0x148] sm:$0xff]   ;;  %v5526_v41 = vpop.permute.xlu0 %2747 }
 0x6d3   : > { %v5416_v38 = vpop.f32.mrf.mxu0 }
 0x6d4   : > { %v2662_v55 = vpack.c.bf16 %v5414_v47, %v5409_v19  ;;  %v5528_v19 = vpop.permute.xlu1 %2752 }
 0x6d5   : > { %v5420_v58 = vpop.f32.mrf.mxu0 }
 0x6d7   : > { %v5422_v36 = vpop.f32.mrf.mxu0 }
 0x6d8   : > { %v5532_v47 = vpop.permute.xlu1 %2742 }
 0x6d9   : > { %v5424_v14 = vpop.f32.mrf.mxu0 }
 0x6db   : > { %v5426_v51 = vpop.f32.mrf.mxu0 }
 0x6dd   : > { %v2518_v7 = vpop.f32.mrf.mxu0 }
 0x6df   : > { %v2522_v45 = vpop.f32.mrf.mxu0 }
 0x6e1   : > { %v2524_v49 = vpop.f32.mrf.mxu0 }
 0x6e3   : > { %v2526_v62 = vpop.f32.mrf.mxu0 }
 0x6e5   : > { %v2528_v28 = vpop.f32.mrf.mxu0 }
 0x6e7   : > { %v2532_v63 = vpop.f32.mrf.mxu0 }
 0x6e9   : > { %v2534_v46 = vpop.f32.mrf.mxu0 }
 0x6eb   : > { %v2536_v50 = vpop.f32.mrf.mxu0 }
 0x6ed   : > { %v2538_v40 = vpop.f32.mrf.mxu0 }
 0x6ee   : > { %v2539_v42 = vadd.f32 %v2538_v40, %v5368_v8 }
 0x6ef   : > { %v2542_v35 = vpop.f32.mrf.mxu0 }
 0x6f0   : > { %v2543_v12 = vadd.f32 %v2542_v35, %v5362_v24 }
 0x6f1   : > { %v2544_v9 = vpop.f32.mrf.mxu0 }
 0x6f2   : > { %v2545_v25 = vadd.f32 %v2544_v9, %v5362_v24  ;;  %v2529_v9 = vadd.f32 %v2528_v28, %v5372_v26  ;;  %v2533_v24 = vadd.f32 %v2532_v63, %v5366_v22  ;;  %v2585_v35 = vmax.f32 %v2543_v12, 0.0 }
 0x6f3   : > { %v2546_v20 = vpop.f32.mrf.mxu0  ;;  %v2523_v12 = vadd.f32 %v2522_v45, %v5370_v56 }
 0x6f4   : > { %v2547_v39 = vadd.f32 %v2546_v20, %v5364_v30  ;;  %v2586_v10 = vmax.f32 %v2545_v25, 0.0  ;;  %v2584_v20 = vmax.f32 %v2539_v42, 0.0  ;;  %v2525_v25 = vadd.f32 %v2524_v49, %v5370_v56 }
 0x6f5   : > { %v2548_v21 = vpop.f32.mrf.mxu0  ;;  %v2581_v49 = vmax.f32 %v2533_v24, 0.0  ;;  %v2509_v56 = vadd.f32 %v5420_v58, %v5380_v31  ;;  %v5986_v24 = vld [vmem:[#allocation42_spill] sm:$0xff]  ;;  %v2507_v58 = vadd.f32 %v5416_v38, %v5380_v31  ;;  %v5991_v38 = vld [vmem:[#allocation47_spill] sm:$0xff] }
 0x6f6   : > { %v2549_v16 = vadd.f32 %v2548_v21, %v5364_v30  ;;  %v2537_v21 = vadd.f32 %v2536_v50, %v5368_v8  ;;  %v2587_v40 = vmax.f32 %v2547_v39, 0.0  ;;  %v2527_v39 = vadd.f32 %v2526_v62, %v5372_v26 }
 0x6f7   : > { %v2552_v3 = vpop.f32.mrf.mxu0  ;;  %v2515_v26 = vadd.f32 %v5424_v14, %v5374_v11  ;;  %v2578_v62 = vmax.f32 %v2525_v25, 0.0  ;;  %v2513_v14 = vadd.f32 %v5422_v36, %v5374_v11  ;;  %v5988_v11 = vld [vmem:[#allocation38_spill] sm:$0xff]  ;;  %v2571_v31 = vmax.f32 %v2507_v58, 0.0 }
 0x6f8   : > { %v2553_v23 = vadd.f32 %v2552_v3, %v5358_v34  ;;  %v2588_v0 = vmax.f32 %v2549_v16, 0.0  ;;  %v5973_v3 = vld [vmem:[#allocation24_spill] sm:$0xff]  ;;  %v2583_v42 = vmax.f32 %v2537_v21, 0.0 }
 0x6f9   : > { %v2554_v6 = vpop.f32.mrf.mxu0 }
 0x6fa   : > { %v2555_v1 = vadd.f32 %v2554_v6, %v5358_v34  ;;  %v2589_v15 = vmax.f32 %v2553_v23, 0.0  ;;  %v2535_v34 = vadd.f32 %v2534_v46, %v5366_v22  ;;  %v5974_v6 = vld [vmem:[#allocation27_spill] sm:$0xff]  ;;  %v5977_v46 = vld [vmem:[#allocation36_spill] sm:$0xff] }
 0x6fb   : > { %v2556_v60 = vpop.f32.mrf.mxu0  ;;  %v2620_v16 = vadd.f32 %v2588_v0, %v5974_v6  ;;  %v5984_v6 = vld [vmem:[#allocation40_spill] sm:$0xff] }
 0x6fc   : > { %v2557_v5 = vadd.f32 %v2556_v60, %v5360_v59  ;;  %v2590_v57 = vmax.f32 %v2555_v1, 0.0  ;;  %v5975_v1 = vld [vmem:[#allocation58_spill] sm:$0xff]  ;;  %v2621_v23 = vadd.f32 %v2589_v15, %v5977_v46  ;;  %v2582_v28 = vmax.f32 %v2535_v34, 0.0  ;;  %v5981_v15 = vld [vmem:[#allocation53_spill] sm:$0xff] }
 0x6fd   : > { %v2558_v44 = vpop.f32.mrf.mxu0  ;;  %v2617_v34 = vadd.f32 %v2585_v35, %v5981_v15  ;;  %v2610_v35 = vadd.f32 %v2578_v62, %v5986_v24 }
 0x6fe   : > { %v2591_v48 = vmax.f32 %v2557_v5, 0.0  ;;  %v2559_v43 = vadd.f32 %v2558_v44, %v5360_v59  ;;  %v2622_v60 = vadd.f32 %v2590_v57, %v5975_v1  ;;  %v5976_v59 = vld [vmem:[#allocation30_spill] sm:$0xff]  ;;  %v5978_v44 = vld [vmem:[#allocation28_spill] sm:$0xff]  ;;  %v2519_v57 = vadd.f32 %v2518_v7, %v5376_v37 }
 0x6ff   : > { %v2618_v8 = vadd.f32 %v2586_v10, %v5978_v44  ;;  %v5982_v10 = vld [vmem:[#allocation37_spill] sm:$0xff]  ;;  %v2517_v7 = vadd.f32 %v5426_v51, %v5376_v37  ;;  %v2505_v37 = vadd.f32 %v5406_v54, %v5378_v2  ;;  %v2574_v51 = vmax.f32 %v2515_v26, 0.0  ;;  %v5989_v54 = vld [vmem:[#allocation26_spill] sm:$0xff] }
 0x700   : > { %v2592_v61 = vmax.f32 %v2559_v43, 0.0  ;;  %v2623_v30 = vadd.f32 %v2591_v48, %v5973_v3  ;;  %v5979_v48 = vld [vmem:[#allocation57_spill] sm:$0xff]  ;;  %v5980_v3 = vld [vmem:[#allocation34_spill] sm:$0xff]  ;;  %v2614_v21 = vadd.f32 %v2582_v28, %v5982_v10  ;;  %v2576_v45 = vmax.f32 %v2519_v57, 0.0 }
 0x701   : > { %v2619_v0 = vadd.f32 %v2587_v40, %v5979_v48  ;;  %v2616_v22 = vadd.f32 %v2584_v20, %v5980_v3  ;;  %v2672_v63 = vpack.c.bf16 %v2620_v16, %v2618_v8  ;;  %v5983_v40 = vld [vmem:[#allocation51_spill] sm:$0xff]  ;;  %v2575_v46 = vmax.f32 %v2517_v7, 0.0  ;;  %v5992_v3 = vld [vmem:[#allocation33_spill] sm:$0xff] }
 0x702   : > { %v2624_v5 = vadd.f32 %v2592_v61, %v5976_v59  ;;  %v2673_v43 = vpack.c.bf16 %v2623_v30, %v2621_v23  ;;  %v2580_v61 = vmax.f32 %v2529_v9, 0.0  ;;  %v2579_v9 = vmax.f32 %v2527_v39, 0.0  ;;  %v5985_v59 = vld [vmem:[#allocation43_spill] sm:$0xff]  ;;  %v5987_v23 = vld [vmem:[#allocation44_spill] sm:$0xff] }
 0x703   : > { %v2615_v30 = vadd.f32 %v2583_v42, %v5983_v40  ;;  %v2671_v20 = vpack.c.bf16 %v2619_v0, %v2617_v34  ;;  %v2670_v1 = vpack.c.bf16 %v2616_v22, %v2614_v21  ;;  %v2572_v44 = vmax.f32 %v2509_v56, 0.0  ;;  %v5990_v0 = vld [vmem:[#allocation41_spill] sm:$0xff]  ;;  %v5995_v34 = vld [vmem:[#allocation50_spill] sm:$0xff]  ;;  %v5996_v21 = vld [vmem:[#allocation16_spill] sm:$0xff] }
 0x704   : > { %v2674_v50 = vpack.c.bf16 %v2624_v5, %v2622_v60  ;;  %v2612_v16 = vadd.f32 %v2580_v61, %v5984_v6  ;;  %v2577_v60 = vmax.f32 %v2523_v12, 0.0  ;;  %v2613_v5 = vadd.f32 %v2581_v49, %v5985_v59  ;;  %v5993_v49 = vld [vmem:[#allocation49_spill] sm:$0xff]  ;;  %v3876_v40 = vld [vmem:[%s5727_s3 + $0x140] sm:$0xff]  }
 0x705   : > { %v2611_v25 = vadd.f32 %v2579_v9, %v5987_v23  ;;  %v2608_v36 = vadd.f32 %v2576_v45, %v5988_v11  ;;  %v2573_v39 = vmax.f32 %v2513_v14, 0.0  ;;  %v2570_v48 = vmax.f32 %v2505_v37, 0.0 }
 0x706   : > { %2803 = vmatprep.subr.bf16.mxu1 %v2674_v50  ;;  %v2669_v28 = vpack.c.bf16 %v2615_v30, %v2613_v5  ;;  %v2668_v8 = vpack.c.bf16 %v2612_v16, %v2610_v35  ;;  %v2503_v50 = vadd.f32 %v5398_v29, %v5378_v2  ;;  %v2609_v42 = vadd.f32 %v2577_v60, %v5989_v54  ;;  %v5994_v2 = vld [vmem:[#allocation46_spill] sm:$0xff]  ;;  %v5536_v30 = vpop.permute.xlu1 %2732 }
 0x707   : > { %2804 = vmatpush1.bf16.msra.mxu1 %v2673_v43  ;;  %v2606_v43 = vadd.f32 %v2574_v51, %v5990_v0  ;;  %v2607_v57 = vadd.f32 %v2575_v46, %v5991_v38  ;;  %v2604_v22 = vadd.f32 %v2572_v44, %v5992_v3  ;;  %v2605_v15 = vadd.f32 %v2573_v39, %v5993_v49 }
 0x708   : > { %2805 = vmatprep.subr.bf16.mxu1 %v2672_v63  ;;  %v2667_v61 = vpack.c.bf16 %v2611_v25, %v2609_v42  ;;  %v2569_v12 = vmax.f32 %v2503_v50, 0.0  ;;  %v2602_v29 = vadd.f32 %v2570_v48, %v5994_v2  ;;  %v2603_v26 = vadd.f32 %v2571_v31, %v5995_v34 }
 0x709   : > { %v2666_v63 = vpack.c.bf16 %v2608_v36, %v2606_v43  ;;  %v2665_v62 = vpack.c.bf16 %v2607_v57, %v2605_v15 }
 0x70a   : > { %v2664_v10 = vpack.c.bf16 %v2604_v22, %v2602_v29  ;;  %v2601_v7 = vadd.f32 %v2569_v12, %v5996_v21  ;;  %v5540_v56 = vpop.permute.xlu1 %2722 }
 0x70b   : > { %2806 = vmatpush1.bf16.msra.mxu1 %v2671_v20 }
 0x70c   : > { %2807 = vmatprep.subr.bf16.mxu1 %v2670_v1  ;;  %v2663_v9 = vpack.c.bf16 %v2603_v26, %v2601_v7 }
 0x70e   : > { %v5544_v6 = vpop.permute.xlu1 %2712 }
 0x70f   : > { %2808 = vmatpush1.bf16.msra.mxu1 %v2669_v28 }
 0x710   : > { %2809 = vmatprep.subr.bf16.mxu1 %v2668_v8 }
 0x712   : > { %v5548_v1 = vpop.permute.xlu1 %2702 }
 0x713   : > { %2810 = vmatpush1.bf16.msra.mxu1 %v2667_v61 }
 0x714   : > { %2811 = vmatprep.subr.bf16.mxu1 %v2666_v63 }
 0x716   : > { %v2693_v60 = vpop.permute.xlu1 %2692 }
 0x717   : > { %2812 = vmatpush1.bf16.msra.mxu1 %v2665_v62 }
 0x718   : > { %2813 = vmatprep.subr.bf16.mxu1 %v2664_v10 }
 0x71a   : > { %v2683_v24 = vpop.permute.xlu1 %2682 }
 0x71b   : > { %2814 = vmatpush1.bf16.msra.mxu1 %v2663_v9 }
 0x71c   : > { %2815 = vmatprep.subr.bf16.mxu1 %v2662_v55 }
 0x71f   : > { %2816 = vmatpush1.bf16.msra.mxu1 %v2661_v4  ;;  %v5530_v4 = vpop.permute.xlu0 %2737 }
 0x720   : > { %2817 = vmatprep.subr.bf16.mxu1 %v2660_v27  ;;  %v3883_v27 = vld [vmem:[%s5727_s3 + $0x178] sm:$0xff]  }
 0x723   : > { %2818 = vmatpush1.bf16.msra.mxu1 %v2659_v32  ;;  %v3881_v32 = vld [vmem:[%s5727_s3 + $0x168] sm:$0xff]   ;;  %v5534_v55 = vpop.permute.xlu0 %2727 }
 0x726   : > { %2836 = vmatmul.mubr.bf16.vlgmr.msra.gmra.mxu1 %v3876_v40 }
 0x727   : > { %2845 = vmatprep.mubr.bf16.mxu1 %v5970_v13  ;;  %v5538_v20 = vpop.permute.xlu0 %2717 }
 0x72b   : > { %v5542_v45 = vpop.permute.xlu0 %2707 }
 0x72e   : > { %2846 = vmatmul.mubr.bf16.gmra.mxu1 %v3877_v53 }
 0x72f   : > { %2855 = vmatprep.mubr.bf16.mxu1 %v5970_v13  ;;  %v5546_v16 = vpop.permute.xlu0 %2697 }
 0x733   : > { %v2688_v14 = vpop.permute.xlu0 %2687 }
 0x736   : > { %2856 = vmatmul.mubr.bf16.gmra.mxu1 %v3878_v33 }
 0x737   : > { %2865 = vmatprep.mubr.bf16.mxu1 %v5970_v13  ;;  %v2678_v5 = vpop.permute.xlu0 %2677 }
 0x73e   : > { %2866 = vmatmul.mubr.bf16.gmra.mxu1 %v3879_v52 }
 0x73f   : > { %2875 = vmatprep.mubr.bf16.mxu1 %v5970_v13 }
 0x746   : > { %2876 = vmatmul.mubr.bf16.gmra.mxu1 %v3880_v18 }
 0x747   : > { %2885 = vmatprep.mubr.bf16.mxu1 %v5970_v13 }
 0x74e   : > { %2886 = vmatmul.mubr.bf16.gmra.mxu1 %v3881_v32 }
 0x74f   : > { %2895 = vmatprep.mubr.bf16.mxu1 %v5970_v13 }
 0x756   : > { %2896 = vmatmul.mubr.bf16.gmra.mxu1 %v3882_v17 }
 0x757   : > { %2905 = vmatprep.mubr.bf16.mxu1 %v5970_v13 }
 0x75e   : > { %2906 = vmatmul.mubr.bf16.gmra.mxu1 %v3883_v27 }
 0x7e6   : > { %v2837_v59 = vpop.f32.mrf.mxu1 }
 0x7e7   : > { %v2838_v51 = vadd.f32 %v2837_v59, %v2678_v5 }
 0x7e8   : > { %v2839_v37 = vpop.f32.mrf.mxu1 }
 0x7e9   : > { %v2840_v58 = vadd.f32 %v2839_v37, %v2678_v5  ;;  %v2916_v25 = vmax.f32 %v2838_v51, 0.0 }
 0x7ea   : > { %v2841_v35 = vpop.f32.mrf.mxu1 }
 0x7eb   : > { %v2842_v46 = vadd.f32 %v2841_v35, %v2683_v24  ;;  %v2917_v36 = vmax.f32 %v2840_v58, 0.0 }
 0x7ec   : > { %v2843_v23 = vpop.f32.mrf.mxu1 }
 0x7ed   : > { %v2918_v28 = vmax.f32 %v2842_v46, 0.0  ;;  %v2844_v44 = vadd.f32 %v2843_v23, %v2683_v24 }
 0x7ee   : > { %v2847_v11 = vpop.f32.mrf.mxu1 }
 0x7ef   : > { %v5550_v8 = vpack.c.bf16 %v2918_v28, %v2916_v25  ;;  %v2919_v50 = vmax.f32 %v2844_v44, 0.0  ;;  %v2848_v42 = vadd.f32 %v2847_v11, %v2688_v14 }
 0x7f0   : > { %v2849_v39 = vpop.f32.mrf.mxu1 }
 0x7f1   : > { %v5552_v54 = vpack.c.bf16 %v2919_v50, %v2917_v36  ;;  %v2850_v0 = vadd.f32 %v2849_v39, %v2688_v14  ;;  %v2920_v38 = vmax.f32 %v2848_v42, 0.0 }
 0x7f2   : > { %v2851_v48 = vpop.f32.mrf.mxu1 }
 0x7f3   : > { %v2852_v43 = vadd.f32 %v2851_v48, %v2693_v60  ;;  %v2921_v22 = vmax.f32 %v2850_v0, 0.0 }
 0x7f4   : > { %v2853_v31 = vpop.f32.mrf.mxu1 }
 0x7f5   : > { %v2922_v57 = vmax.f32 %v2852_v43, 0.0  ;;  %v2854_v61 = vadd.f32 %v2853_v31, %v2693_v60 }
 0x7f6   : > { %v5554_v3 = vpop.f32.mrf.mxu1 }
 0x7f7   : > { %v5556_v63 = vpack.c.bf16 %v2922_v57, %v2920_v38  ;;  %v2923_v12 = vmax.f32 %v2854_v61, 0.0 }
 0x7f8   : > { %v5558_v49 = vpop.f32.mrf.mxu1 }
 0x7f9   : > { %v5560_v15 = vpack.c.bf16 %v2923_v12, %v2921_v22 }
 0x7fa   : > { %v5562_v2 = vpop.f32.mrf.mxu1 }
 0x7fc   : > { %v5564_v29 = vpop.f32.mrf.mxu1 }
 0x7fe   : > { %v5566_v34 = vpop.f32.mrf.mxu1 }
 0x800   : > { %v2869_v26 = vpop.f32.mrf.mxu1 }
 0x802   : > { %v2871_v62 = vpop.f32.mrf.mxu1 }
 0x804   : > { %v2873_v10 = vpop.f32.mrf.mxu1 }
 0x806   : > { %v2877_v21 = vpop.f32.mrf.mxu1 }
 0x808   : > { %v2879_v7 = vpop.f32.mrf.mxu1 }
 0x80a   : > { %v2881_v9 = vpop.f32.mrf.mxu1 }
 0x80c   : > { %v2883_v40 = vpop.f32.mrf.mxu1 }
 0x80e   : > { %v2887_v53 = vpop.f32.mrf.mxu1 }
 0x80f   : > { %v2888_v61 = vadd.f32 %v2887_v53, %v5534_v55 }
 0x810   : > { %v2889_v33 = vpop.f32.mrf.mxu1 }
 0x811   : > { %v2890_v48 = vadd.f32 %v2889_v33, %v5534_v55  ;;  %v2882_v33 = vadd.f32 %v2881_v9, %v5540_v56  ;;  %v2870_v55 = vadd.f32 %v2869_v26, %v5542_v45 }
 0x812   : > { %v2891_v52 = vpop.f32.mrf.mxu1 }
 0x813   : > { %v2892_v43 = vadd.f32 %v2891_v52, %v5536_v30  ;;  %v2937_v12 = vmax.f32 %v2890_v48, 0.0  ;;  %v2929_v26 = vmax.f32 %v2870_v55, 0.0 }
 0x814   : > { %v2893_v18 = vpop.f32.mrf.mxu1 }
 0x815   : > { %v2894_v44 = vadd.f32 %v2893_v18, %v5536_v30  ;;  %v2938_v18 = vmax.f32 %v2892_v43, 0.0  ;;  %v2874_v30 = vadd.f32 %v2873_v10, %v5544_v6  ;;  %v2868_v10 = vadd.f32 %v5566_v34, %v5542_v45 }
 0x816   : > { %v2897_v32 = vpop.f32.mrf.mxu1 }
 0x817   : > { %v2898_v39 = vadd.f32 %v2897_v32, %v5530_v4  ;;  %v2931_v9 = vmax.f32 %v2874_v30, 0.0 }
 0x818   : > { %v2899_v17 = vpop.f32.mrf.mxu1 }
 0x819   : > { %v2900_v46 = vadd.f32 %v2899_v17, %v5530_v4  ;;  %v2940_v22 = vmax.f32 %v2898_v39, 0.0  ;;  %v2880_v4 = vadd.f32 %v2879_v7, %v5538_v20  ;;  %v2872_v7 = vadd.f32 %v2871_v62, %v5544_v6 }
 0x81a   : > { %v2901_v27 = vpop.f32.mrf.mxu1  ;;  %v2862_v6 = vadd.f32 %v5562_v2, %v5548_v1  ;;  %v3891_v2 = vld [vmem:[%s5727_s3 + $0x1b8] sm:$0xff]  }
 0x81b   : > { %v2902_v25 = vadd.f32 %v2901_v27, %v5532_v47  ;;  %v2941_v0 = vmax.f32 %v2900_v46, 0.0  ;;  %v2936_v27 = vmax.f32 %v2888_v61, 0.0  ;;  %v2933_v53 = vmax.f32 %v2880_v4, 0.0 }
 0x81c   : > { %v2903_v14 = vpop.f32.mrf.mxu1  ;;  %v2930_v62 = vmax.f32 %v2872_v7, 0.0  ;;  %v2926_v34 = vmax.f32 %v2862_v6, 0.0 }
 0x81d   : > { %v2904_v37 = vadd.f32 %v2903_v14, %v5532_v47  ;;  %v2942_v31 = vmax.f32 %v2902_v25, 0.0  ;;  %v2939_v47 = vmax.f32 %v2894_v44, 0.0  ;;  %v2934_v14 = vmax.f32 %v2882_v33, 0.0  ;;  %v5635_v25 = vpop.permute.xlu1 %3075 }
 0x81e   : > { %v2907_v60 = vpop.f32.mrf.mxu1 }
 0x81f   : > { %v2908_v35 = vadd.f32 %v2907_v60, %v5526_v41  ;;  %v2943_v11 = vmax.f32 %v2904_v37, 0.0  ;;  %v2994_v32 = vpack.c.bf16 %v2942_v31, %v2940_v22  ;;  %v2993_v17 = vpack.c.bf16 %v2939_v47, %v2937_v12 }
 0x820   : > { %v2909_v59 = vpop.f32.mrf.mxu1  ;;  %v2992_v60 = vpack.c.bf16 %v2938_v18, %v2936_v27 }
 0x821   : > { %v2910_v51 = vadd.f32 %v2909_v59, %v5526_v41  ;;  %v2944_v42 = vmax.f32 %v2908_v35, 0.0  ;;  %v2995_v57 = vpack.c.bf16 %v2943_v11, %v2941_v0  ;;  %v5639_v44 = vpop.permute.xlu1 %3065 }
 0x822   : > { %v2911_v5 = vpop.f32.mrf.mxu1 }
 0x823   : > { %v2912_v24 = vadd.f32 %v2911_v5, %v5528_v19  ;;  %v2945_v36 = vmax.f32 %v2910_v51, 0.0  ;;  %v2989_v51 = vpack.c.bf16 %v2931_v9, %v2929_v26 }
 0x824   : > { %v2913_v58 = vpop.f32.mrf.mxu1 }
 0x825   : > { %v2914_v23 = vadd.f32 %v2913_v58, %v5528_v19  ;;  %v2946_v28 = vmax.f32 %v2912_v24, 0.0  ;;  %v2884_v19 = vadd.f32 %v2883_v40, %v5540_v56  ;;  %v2878_v40 = vadd.f32 %v2877_v21, %v5538_v20 }
 0x826   : > { %v2864_v56 = vadd.f32 %v5564_v29, %v5548_v1  ;;  %v2860_v20 = vadd.f32 %v5558_v49, %v5546_v16  ;;  %v2858_v29 = vadd.f32 %v5554_v3, %v5546_v16  ;;  %v2928_v24 = vmax.f32 %v2868_v10, 0.0  ;;  %v3884_v16 = vld [vmem:[%s5727_s3 + $0x180] sm:$0xff]   ;;  %v3885_v1 = vld [vmem:[%s5727_s3 + $0x188] sm:$0xff]  }
 0x827   : > { %v2947_v50 = vmax.f32 %v2914_v23, 0.0  ;;  %v2996_v38 = vpack.c.bf16 %v2946_v28, %v2944_v42  ;;  %v2935_v52 = vmax.f32 %v2884_v19, 0.0  ;;  %v2932_v5 = vmax.f32 %v2878_v40, 0.0  ;;  %v3888_v3 = vld [vmem:[%s5727_s3 + $0x1a0] sm:$0xff]   ;;  %v5633_v23 = vpop.permute.xlu0 %3070 }
 0x828   : > { %v2927_v37 = vmax.f32 %v2864_v56, 0.0  ;;  %v2925_v45 = vmax.f32 %v2860_v20, 0.0  ;;  %v2988_v35 = vpack.c.bf16 %v2930_v62, %v2928_v24  ;;  %v2924_v49 = vmax.f32 %v2858_v29, 0.0 }
 0x829   : > { %v2997_v41 = vpack.c.bf16 %v2947_v50, %v2945_v36  ;;  %v2991_v59 = vpack.c.bf16 %v2935_v52, %v2933_v53  ;;  %v2990_v21 = vpack.c.bf16 %v2934_v14, %v2932_v5  ;;  %v5643_v36 = vpop.permute.xlu1 %3055 }
 0x82a   : > { %v2987_v58 = vpack.c.bf16 %v2927_v37, %v2925_v45  ;;  %v2986_v46 = vpack.c.bf16 %v2926_v34, %v2924_v49 }
 0x82b   : > { %3126 = vmatprep.subr.bf16.mxu0 %v2997_v41  ;;  %v5637_v28 = vpop.permute.xlu0 %3060 }
 0x82c   : > { %3127 = vmatpush1.bf16.msra.mxu0 %v2996_v38 }
 0x82d   : > { %3128 = vmatprep.subr.bf16.mxu0 %v2995_v57  ;;  %v5647_v39 = vpop.permute.xlu1 %3045 }
 0x82f   : > { %v5641_v11 = vpop.permute.xlu0 %3050 }
 0x830   : > { %3129 = vmatpush1.bf16.msra.mxu0 %v2994_v32 }
 0x831   : > { %3130 = vmatprep.subr.bf16.mxu0 %v2993_v17  ;;  %v5651_v48 = vpop.permute.xlu1 %3035 }
 0x833   : > { %v5645_v50 = vpop.permute.xlu0 %3040 }
 0x834   : > { %3131 = vmatpush1.bf16.msra.mxu0 %v2992_v60 }
 0x835   : > { %3132 = vmatprep.subr.bf16.mxu0 %v2991_v59  ;;  %v5655_v0 = vpop.permute.xlu1 %3025 }
 0x837   : > { %v5649_v42 = vpop.permute.xlu0 %3030 }
 0x838   : > { %3133 = vmatpush1.bf16.msra.mxu0 %v2990_v21 }
 0x839   : > { %3134 = vmatprep.subr.bf16.mxu0 %v2989_v51  ;;  %v3016_v43 = vpop.permute.xlu1 %3015 }
 0x83c   : > { %3135 = vmatpush1.bf16.msra.mxu0 %v2988_v35 }
 0x83d   : > { %3136 = vmatprep.subr.bf16.mxu0 %v2987_v58  ;;  %v3006_v57 = vpop.permute.xlu1 %3005 }
 0x840   : > { %3137 = vmatpush1.bf16.msra.mxu0 %v2986_v46 }
 0x841   : > { %3138 = vmatprep.subr.bf16.mxu0 %v5560_v15  ;;  %v3890_v15 = vld [vmem:[%s5727_s3 + $0x1b0] sm:$0xff]  }
 0x844   : > { %3139 = vmatpush1.bf16.msra.mxu0 %v5556_v63  ;;  %v3889_v63 = vld [vmem:[%s5727_s3 + $0x1a8] sm:$0xff]  }
 0x845   : > { %3140 = vmatprep.subr.bf16.mxu0 %v5552_v54  ;;  %v3886_v54 = vld [vmem:[%s5727_s3 + $0x190] sm:$0xff]  }
 0x848   : > { %3141 = vmatpush1.bf16.msra.mxu0 %v5550_v8  ;;  %v3887_v8 = vld [vmem:[%s5727_s3 + $0x198] sm:$0xff]  }
 0x84b   : > { %3159 = vmatmul.mubr.bf16.vlgmr.msra.gmra.mxu0 %v3884_v16 }
 0x84c   : > { %3168 = vmatprep.mubr.bf16.mxu0 %v5970_v13 }
 0x853   : > { %3169 = vmatmul.mubr.bf16.gmra.mxu0 %v3885_v1 }
 0x854   : > { %3178 = vmatprep.mubr.bf16.mxu0 %v5970_v13 }
 0x85b   : > { %3179 = vmatmul.mubr.bf16.gmra.mxu0 %v3886_v54 }
 0x85c   : > { %3188 = vmatprep.mubr.bf16.mxu0 %v5970_v13 }
 0x863   : > { %3189 = vmatmul.mubr.bf16.gmra.mxu0 %v3887_v8 }
 0x864   : > { %3198 = vmatprep.mubr.bf16.mxu0 %v5970_v13 }
 0x86b   : > { %3199 = vmatmul.mubr.bf16.gmra.mxu0 %v3888_v3 }
 0x86c   : > { %3208 = vmatprep.mubr.bf16.mxu0 %v5970_v13 }
 0x873   : > { %3209 = vmatmul.mubr.bf16.gmra.mxu0 %v3889_v63 }
 0x874   : > { %3218 = vmatprep.mubr.bf16.mxu0 %v5970_v13 }
 0x87b   : > { %3219 = vmatmul.mubr.bf16.gmra.mxu0 %v3890_v15 }
 0x87c   : > { %3228 = vmatprep.mubr.bf16.mxu0 %v5970_v13 }
 0x883   : > { %3229 = vmatmul.mubr.bf16.gmra.mxu0 %v3891_v2 }
 0x884   : > { %3326 = vmatprep.mubr.bf16.mxu0 %v5970_v13  ;;  %v5653_v13 = vpop.permute.xlu0 %3020 }
 0x888   : > { %v3011_v41 = vpop.permute.xlu0 %3010 }
 0x88c   : > { %v3001_v38 = vpop.permute.xlu0 %3000 }
 0x90b   : > { %v3160_v31 = vpop.f32.mrf.mxu0 }
 0x90c   : > { %v3161_v47 = vadd.f32 %v3160_v31, %v3001_v38 }
 0x90d   : > { %v3162_v19 = vpop.f32.mrf.mxu0 }
 0x90e   : > { %v3163_v22 = vadd.f32 %v3162_v19, %v3001_v38  ;;  %v3239_v33 = vmax.f32 %v3161_v47, 0.0 }
 0x90f   : > { %v3164_v61 = vpop.f32.mrf.mxu0 }
 0x910   : > { %v3165_v4 = vadd.f32 %v3164_v61, %v3006_v57  ;;  %v3240_v52 = vmax.f32 %v3163_v22, 0.0 }
 0x911   : > { %v3166_v12 = vpop.f32.mrf.mxu0 }
 0x912   : > { %v3241_v18 = vmax.f32 %v3165_v4, 0.0  ;;  %v3167_v32 = vadd.f32 %v3166_v12, %v3006_v57 }
 0x913   : > { %v3170_v30 = vpop.f32.mrf.mxu0 }
 0x914   : > { %v5657_v17 = vpack.c.bf16 %v3241_v18, %v3239_v33  ;;  %v3242_v40 = vmax.f32 %v3167_v32, 0.0  ;;  %v3171_v53 = vadd.f32 %v3170_v30, %v3011_v41 }
 0x915   : > { %v3172_v27 = vpop.f32.mrf.mxu0 }
 0x916   : > { %v5659_v55 = vpack.c.bf16 %v3242_v40, %v3240_v52  ;;  %v3173_v14 = vadd.f32 %v3172_v27, %v3011_v41  ;;  %v3243_v9 = vmax.f32 %v3171_v53, 0.0 }
 0x917   : > { %v3174_v7 = vpop.f32.mrf.mxu0 }
 0x918   : > { %v3175_v60 = vadd.f32 %v3174_v7, %v3016_v43  ;;  %v3244_v20 = vmax.f32 %v3173_v14, 0.0 }
 0x919   : > { %v3176_v56 = vpop.f32.mrf.mxu0 }
 0x91a   : > { %v3245_v59 = vmax.f32 %v3175_v60, 0.0  ;;  %v3177_v10 = vadd.f32 %v3176_v56, %v3016_v43 }
 0x91b   : > { %v5661_v5 = vpop.f32.mrf.mxu0 }
 0x91c   : > { %v5663_v26 = vpack.c.bf16 %v3245_v59, %v3243_v9  ;;  %v3246_v6 = vmax.f32 %v3177_v10, 0.0 }
 0x91d   : > { %v5665_v62 = vpop.f32.mrf.mxu0 }
 0x91e   : > { %v5667_v21 = vpack.c.bf16 %v3246_v6, %v3244_v20 }
 0x91f   : > { %v5669_v37 = vpop.f32.mrf.mxu0 }
 0x921   : > { %v5671_v51 = vpop.f32.mrf.mxu0 }
 0x923   : > { %v5673_v29 = vpop.f32.mrf.mxu0 }
 0x925   : > { %v3192_v24 = vpop.f32.mrf.mxu0 }
 0x927   : > { %v3194_v45 = vpop.f32.mrf.mxu0 }
 0x929   : > { %v3196_v34 = vpop.f32.mrf.mxu0 }
 0x92b   : > { %v3200_v35 = vpop.f32.mrf.mxu0 }
 0x92d   : > { %v3202_v58 = vpop.f32.mrf.mxu0 }
 0x92f   : > { %v3204_v49 = vpop.f32.mrf.mxu0 }
 0x930   : > { %v3205_v6 = vadd.f32 %v3204_v49, %v5647_v39 }
 0x931   : > { %v3206_v46 = vpop.f32.mrf.mxu0 }
 0x933   : > { %v3210_v16 = vpop.f32.mrf.mxu0 }
 0x934   : > { %v3211_v59 = vadd.f32 %v3210_v16, %v5641_v11 }
 0x935   : > { %v3212_v1 = vpop.f32.mrf.mxu0 }
 0x936   : > { %v3213_v53 = vadd.f32 %v3212_v1, %v5641_v11  ;;  %v3193_v11 = vadd.f32 %v3192_v24, %v5649_v42 }
 0x937   : > { %v3214_v54 = vpop.f32.mrf.mxu0 }
 0x938   : > { %v3215_v14 = vadd.f32 %v3214_v54, %v5643_v36  ;;  %v3260_v20 = vmax.f32 %v3213_v53, 0.0  ;;  %v3252_v24 = vmax.f32 %v3193_v11, 0.0 }
 0x939   : > { %v3216_v8 = vpop.f32.mrf.mxu0 }
 0x93a   : > { %v3217_v18 = vadd.f32 %v3216_v8, %v5643_v36  ;;  %v3261_v1 = vmax.f32 %v3215_v14, 0.0  ;;  %v3197_v36 = vadd.f32 %v3196_v34, %v5651_v48  ;;  %v3191_v34 = vadd.f32 %v5673_v29, %v5649_v42 }
 0x93b   : > { %v3220_v3 = vpop.f32.mrf.mxu0 }
 0x93c   : > { %v3221_v40 = vadd.f32 %v3220_v3, %v5637_v28  ;;  %v3254_v49 = vmax.f32 %v3197_v36, 0.0 }
 0x93d   : > { %v3222_v63 = vpop.f32.mrf.mxu0 }
 0x93e   : > { %v3223_v22 = vadd.f32 %v3222_v63, %v5637_v28  ;;  %v3263_v10 = vmax.f32 %v3221_v40, 0.0  ;;  %v3203_v28 = vadd.f32 %v3202_v58, %v5645_v50  ;;  %v3259_v63 = vmax.f32 %v3211_v59, 0.0 }
 0x93f   : > { %v3224_v15 = vpop.f32.mrf.mxu0  ;;  %v3195_v58 = vadd.f32 %v3194_v45, %v5651_v48  ;;  %v3185_v48 = vadd.f32 %v5669_v37, %v5655_v0 }
 0x940   : > { %v3225_v12 = vadd.f32 %v3224_v15, %v5639_v44  ;;  %v3264_v7 = vmax.f32 %v3223_v22, 0.0  ;;  %v3256_v16 = vmax.f32 %v3203_v28, 0.0  ;;  %v3257_v15 = vmax.f32 %v3205_v6, 0.0 }
 0x941   : > { %v3226_v2 = vpop.f32.mrf.mxu0  ;;  %v3253_v45 = vmax.f32 %v3195_v58, 0.0  ;;  %v3249_v29 = vmax.f32 %v3185_v48, 0.0 }
 0x942   : > { %v3227_v38 = vadd.f32 %v3226_v2, %v5639_v44  ;;  %v3265_v60 = vmax.f32 %v3225_v12, 0.0  ;;  %v3262_v44 = vmax.f32 %v3217_v18, 0.0  ;;  %v3282_v2 = vpack.c.bf16 %v3261_v1, %v3259_v63 }
 0x943   : > { %v3230_v41 = vpop.f32.mrf.mxu0 }
 0x944   : > { %v3231_v57 = vadd.f32 %v3230_v41, %v5633_v23  ;;  %v3266_v32 = vmax.f32 %v3227_v38, 0.0  ;;  %v3284_v8 = vpack.c.bf16 %v3265_v60, %v3263_v10  ;;  %v3283_v3 = vpack.c.bf16 %v3262_v44, %v3260_v20 }
 0x945   : > { %v3232_v43 = vpop.f32.mrf.mxu0  ;;  %v3279_v38 = vpack.c.bf16 %v3254_v49, %v3252_v24  ;;  %v3372_v60 = vlaneseq }
 0x946   : > { %v3233_v19 = vadd.f32 %v3232_v43, %v5633_v23  ;;  %v3267_v27 = vmax.f32 %v3231_v57, 0.0  ;;  %v3285_v9 = vpack.c.bf16 %v3266_v32, %v3264_v7 }
 0x947   : > { %v3234_v31 = vpop.f32.mrf.mxu0  ;;  %v3373_v20 = vshrl.u32 %v3372_v60, 7 }
 0x948   : > { %v3235_v47 = vadd.f32 %v3234_v31, %v5635_v25  ;;  %v3268_v30 = vmax.f32 %v3233_v19, 0.0  ;;  %v3251_v19 = vmax.f32 %v3191_v34, 0.0 }
 0x949   : > { %v3236_v61 = vpop.f32.mrf.mxu0  ;;  %v3374_v63 = vsub.s32 3, %v3373_v20 }
 0x94a   : > { %v3237_v4 = vadd.f32 %v3236_v61, %v5635_v25  ;;  %v3269_v33 = vmax.f32 %v3235_v47, 0.0  ;;  %v3207_v25 = vadd.f32 %v3206_v46, %v5647_v39  ;;  %v3201_v46 = vadd.f32 %v3200_v35, %v5645_v50 }
 0x94b   : > { %v3187_v39 = vadd.f32 %v5671_v51, %v5655_v0  ;;  %v3183_v50 = vadd.f32 %v5665_v62, %v5653_v13  ;;  %v3181_v51 = vadd.f32 %v5661_v5, %v5653_v13  ;;  %v3278_v47 = vpack.c.bf16 %v3253_v45, %v3251_v19  ;;  %v3271_v13 = vld [vmem:[%s5729_s5] sm:$0xf]  ;;  %v3292_v0 = vpop.permute.xlu0 %3291 }
 0x94c   : > { %v3270_v52 = vmax.f32 %v3237_v4, 0.0  ;;  %v3286_v56 = vpack.c.bf16 %v3269_v33, %v3267_v27  ;;  %v3258_v54 = vmax.f32 %v3207_v25, 0.0  ;;  %v3255_v43 = vmax.f32 %v3201_v46, 0.0 }
 0x94d   : > { %v3250_v31 = vmax.f32 %v3187_v39, 0.0  ;;  %v3248_v42 = vmax.f32 %v3183_v50, 0.0  ;;  %v3247_v62 = vmax.f32 %v3181_v51, 0.0  ;;  %v3388_v50 = vpop.permute.xlu1 %3387 }
 0x94e   : > { %v3287_v23 = vpack.c.bf16 %v3270_v52, %v3268_v30  ;;  %v3281_v41 = vpack.c.bf16 %v3258_v54, %v3256_v16  ;;  %v3280_v35 = vpack.c.bf16 %v3257_v15, %v3255_v43 }
 0x94f   : > { %v3277_v57 = vpack.c.bf16 %v3250_v31, %v3248_v42  ;;  %v3276_v61 = vpack.c.bf16 %v3249_v29, %v3247_v62 }
 0x950   : > { %3294 = vmatprep.subr.bf16.mxu0 %v3287_v23 }
 0x951   : > { %3295 = vmatpush1.bf16.msra.mxu0 %v3286_v56 }
 0x952   : > { %3296 = vmatprep.subr.bf16.mxu0 %v3285_v9 }
 0x955   : > { %3297 = vmatpush1.bf16.msra.mxu0 %v3284_v8 }
 0x956   : > { %3298 = vmatprep.subr.bf16.mxu0 %v3283_v3 }
 0x959   : > { %3299 = vmatpush1.bf16.msra.mxu0 %v3282_v2 }
 0x95a   : > { %3300 = vmatprep.subr.bf16.mxu0 %v3281_v41 }
 0x95d   : > { %3301 = vmatpush1.bf16.msra.mxu0 %v3280_v35 }
 0x95e   : > { %3302 = vmatprep.subr.bf16.mxu0 %v3279_v38 }
 0x961   : > { %3303 = vmatpush1.bf16.msra.mxu0 %v3278_v47 }
 0x962   : > { %3304 = vmatprep.subr.bf16.mxu0 %v3277_v57 }
 0x965   : > { %3305 = vmatpush1.bf16.msra.mxu0 %v3276_v61 }
 0x966   : > { %3306 = vmatprep.subr.bf16.mxu0 %v5667_v21 }
 0x969   : > { %3307 = vmatpush1.bf16.msra.mxu0 %v5663_v26 }
 0x96a   : > { %3308 = vmatprep.subr.bf16.mxu0 %v5659_v55 }
 0x96d   : > { %3309 = vmatpush1.bf16.msra.mxu0 %v5657_v17 }
 0x970   : > { %3327 = vmatmul.mubr.bf16.vlgmr.msra.gmra.mxu0 %v3271_v13 }
 0xa30   : > { %v3328_v5 = vpop.f32.mrf.mxu0 }
 0xa31   : > { %v3329_v37 = vadd.f32 %v3328_v5, %v3292_v0 }
 0xa32   : > { %v3330_v22 = vpop.f32.mrf.mxu0 }
 0xa33   : > { %v3335_v4 = vmul.f32 0.92419624, %v3329_v37  ;;  %v3331_v12 = vadd.f32 %v3330_v22, %v3292_v0 }
 0xa34   : > { %v3332_v33 = vpop.f32.mrf.mxu0 }
 0xa35   : > { %v3339_v18 = vmin.f32 %v3335_v4, 20.0  ;;  %v3336_v21 = vmul.f32 0.92419624, %v3331_v12  ;;  %vm3337_vm3 = vcmp.gt.f32.partialorder %v3335_v4, 20.0 }
 0xa36   : > { %v3333_v32 = vpop.f32.mrf.mxu0 }
 0xa37   : > { %v3341_v26 = vmul.f32 1.442695, %v3339_v18  ;;  %v3340_v30 = vmin.f32 %v3336_v21, 20.0  ;;  %vm3338_vm4 = vcmp.gt.f32.partialorder %v3336_v21, 20.0 }
 0xa39   : > { %3892 = vpow2.f32 %v3341_v26  ;;  %v3343_v55 = vmul.f32 1.442695, %v3340_v30 }
 0xa3b   : > { %3894 = vpow2.f32 %v3343_v55 }
 0xa46   : > { %v3893_v17 = vpop.eup %3892 }
 0xa47   : > { %v3345_v52 = vadd.f32 1.0, %v3893_v17  ;;  %v3348_v53 = vmul.f32 -0.5, %v3893_v17  ;;  %v3351_v14 = vand.u32 2147483647, %v3893_v17 }
 0xa48   : > { %v3895_v40 = vpop.eup %3894 }
 0xa49   : > { %3896 = vlog2.f32 %v3345_v52  ;;  %v3354_v27 = vadd.f32 1.0, %v3895_v40  ;;  %v3357_v7 = vmul.f32 -0.5, %v3895_v40  ;;  %v3349_v23 = vadd.f32 1.0, %v3348_v53 }
 0xa4a   : > { %v3360_v44 = vand.u32 2147483647, %v3895_v40  ;;  %vm3352_vm1 = vcmp.lt.f32.partialorder %v3351_v14, 0.0004427343 }
 0xa4b   : > { %3898 = vlog2.f32 %v3354_v27  ;;  %v3358_v56 = vadd.f32 1.0, %v3357_v7  ;;  %v3350_v59 = vmul.f32 %v3893_v17, %v3349_v23 }
 0xa4c   : > { %vm3361_vm2 = vcmp.lt.f32.partialorder %v3360_v44, 0.0004427343 }
 0xa4d   : > { %v3359_v1 = vmul.f32 %v3895_v40, %v3358_v56 }
 0xa56   : > { %v3897_v25 = vpop.eup %3896 }
 0xa57   : > { %v3347_v9 = vmul.f32 0.6931472, %v3897_v25 }
 0xa58   : > { %v3899_v10 = vpop.eup %3898 }
 0xa59   : > { %v3353_v28 = vsel %vm3352_vm1, %v3350_v59, %v3347_v9  ;;  %v3356_v6 = vmul.f32 0.6931472, %v3899_v10 }
 0xa5a   : > { %v3364_v8 = vmul.f32 1.0820212, %v3353_v28 }
 0xa5b   : > { %v3362_v36 = vsel %vm3361_vm2, %v3359_v1, %v3356_v6 }
 0xa5c   : > { %v3366_v54 = vsel %vm3337_vm3, %v3329_v37, %v3364_v8  ;;  %v3365_v3 = vmul.f32 1.0820212, %v3362_v36 }
 0xa5d   : > { %v3368_v46 = vadd.f32 0.25, %v3366_v54 }
 0xa5e   : > { %v3367_v11 = vsel %vm3338_vm4, %v3331_v12, %v3365_v3 }
 0xa5f   : > { %v3370_v16 = vmin.f32 %v3368_v46, 100.0  ;;  %v3369_v58 = vadd.f32 0.25, %v3367_v11 }
 0xa61   : > { %v3375_v15 = vrot.slane %v3370_v16, %v3374_v63  ;;  %v3371_v2 = vmin.f32 %v3369_v58, 100.0 }
 0xa63   : > { %3900 = vrcp.f32 %v3375_v15  ;;  %v3379_v39 = vrot.slane %v3371_v2, %v3374_v63 }
 0xa65   : > { %3902 = vrcp.f32 %v3379_v39 }
 0xa70   : > { %v3901_v49 = vpop.eup %3900 }
 0xa71   : > { %v3381_v41 = vmul.f32 %v3901_v49, %v3329_v37 }
 0xa72   : > { %v3903_v34 = vpop.eup %3902 }
 0xa73   : > { %v3383_v43 = vmul.f32 %v3903_v34, %v3331_v12  ;;  %v3390_v24 = vadd.f32 %v3388_v50, %v3381_v41 }
 0xa75   : > { %v3391_v48 = vadd.f32 %v3388_v50, %v3383_v43 }
 0xa77   : > { %v3394_v45 = vcombine.low %v3390_v24, %v3391_v48 }
 0xa79   : > { %3396 = vst [vmem:[%s343_s22] sm:$0x77] %v3394_v45 }
 0xa7a PF: > { %s18_s29 = sadd.s32 1, %s3926_s29   ;;  %s5997_s27 = smov %s3922_s28 }
 0xa7b   : > { %p15_p5 = scmp.ge.s32.totalorder %s18_s29, 4   ;;  %s5998_s28 = smov %s6000_s30 }
 0xa7d   :  { %17 = sbr.rel (!%p15_p5) target bundleno = 2 (0x2), region = 94 }

</bundles_post_ra>
